<compile_context>
chip_gen: v7x
topology: tpu7x:2x2x1
jax: 0.10.0
libtpu: 0.0.40
codegen_flags: <defaults>
</compile_context>

<pallas_src>
import functools

import jax
import jax.numpy as jnp
from jax.experimental import pallas as pl
from jax.experimental.pallas import tpu as pltpu

BN_EPS = 1e-5
# MXU input dtype: bf16 is the native high-throughput MXU path and halves the
# activation DMA bytes.  Set to jnp.float32 to recover exact f32 semantics.
MXU_DTYPE = jnp.bfloat16
_VMEM_LIMIT = 32 * 1024 * 1024


# --------------------------------------------------------------------------- kernels
def _conv3x3_stats_kernel(x_ref, w_ref, mask_ref, y_ref, stats_ref, *, rows, wp, co):
    """Pass 1: 3x3 conv as 9 shifted MXU dots + per-tile BN partial statistics.

    x_ref:     (1, (TH+2)*Wp + 2, Cin)  flattened padded row tile (bf16)
    w_ref:     (3, 3, Cin, Co)          conv weight (bf16)
    mask_ref:  (rows, 1)                1.0 on valid positions, 0.0 on the 2
                                        garbage columns of each padded row
    y_ref:     (1, rows, Co)            pre-BN conv output (f32), rows = TH*Wp
    stats_ref: (1, 2, Co)               this tile's [sum, sum_sq] over valid rows
    """
    acc = jnp.zeros((rows, co), jnp.float32)
    for dh in range(3):                     # static unroll: 9 taps
        for dw in range(3):
            off = dh * wp + dw              # row shift in the flattened (H,W) layout
            slab = x_ref[0, off:off + rows, :]              # (rows, Cin) bf16
            acc = acc + jnp.dot(slab, w_ref[dh, dw],
                                preferred_element_type=jnp.float32)
    y_ref[0, :, :] = acc

    accm = acc * mask_ref[...]              # zero out the padding/garbage rows
    stats_ref[0, 0:1, :] = jnp.sum(accm, axis=0, keepdims=True)
    stats_ref[0, 1:2, :] = jnp.sum(accm * acc, axis=0, keepdims=True)


def _bn_relu_kernel(y_ref, scale_ref, shift_ref, o_ref, *, out_cols):
    """Pass 2: folded BN affine + ReLU over lane-dense (rows, W*Co) tiles."""
    y = y_ref[:, :out_cols]                 # drop the garbage columns
    o_ref[...] = jnp.maximum(y * scale_ref[...] + shift_ref[...], 0.0)


# --------------------------------------------------------------------------- tiling helpers
def _auto_row_tile(h, w):
    """Largest divisor of H whose tile has at most ~4K output pixels."""
    best = 1
    for d in range(1, h + 1):
        if h % d == 0 and d * w <= 4096:
            best = d
    return best


def _pick_row_block(total, cap=512):
    """Largest multiple-of-8 divisor of `total` <= cap (keep >=2 blocks)."""
    if total % 8 != 0:
        return total                        # full-extent block (always legal)
    cap = min(cap, total if total < 16 else total // 2)
    best = total
    d = 8
    while d <= cap:
        if total % d == 0:
            best = d
        d += 8
    return best


# --------------------------------------------------------------------------- one conv stage
def _conv_bn_relu_stage(x_nhwc, w_hwio, gamma, beta, row_tile=None):
    """One (conv3x3 pad=1 no-bias -> BatchNorm2d(train) -> ReLU) stage, NHWC in/out."""
    n, h, w, cin = x_nhwc.shape
    co = w_hwio.shape[-1]
    wp = w + 2
    if row_tile is None or h % row_tile != 0:
        row_tile = _auto_row_tile(h, w)
    th = row_tile
    nh = h // th
    t = n * nh                              # number of row tiles == pass-1 grid
    rows = th * wp                          # conv rows per tile (incl. 2 garbage / padded row)

    # Glue: pad, halo-stack row tiles, flatten (row, col) so every conv tap is a
    # contiguous 2-D slab inside the kernel.  Halo duplication is ~(TH+2)/TH of the
    # input (vs 9x for an HBM im2col).  Cast to bf16 at the kernel boundary.
    xp = jnp.pad(x_nhwc, ((0, 0), (1, 1), (1, 1), (0, 0)))          # (n, h+2, wp, cin)
    tiles = jnp.stack([xp[:, i * th:i * th + th + 2] for i in range(nh)], axis=1)
    xt = tiles.reshape(t, (th + 2) * wp, cin)
    xt = jnp.pad(xt, ((0, 0), (0, 2), (0, 0))).astype(MXU_DTYPE)    # keep tap slices in-bounds
    wb = w_hwio.astype(MXU_DTYPE)

    # Valid-position mask: last 2 positions of every padded row are garbage.
    mask = jnp.tile(jnp.concatenate([jnp.ones((w,), jnp.float32),
                                     jnp.zeros((2,), jnp.float32)]), th)
    mask = mask.reshape(rows, 1)

    kern1 = functools.partial(_conv3x3_stats_kernel, rows=rows, wp=wp, co=co)
    y, stats = pl.pallas_call(
        kern1,
        out_shape=(jax.ShapeDtypeStruct((t, rows, co), jnp.float32),
                   jax.ShapeDtypeStruct((t, 2, co), jnp.float32)),
        grid=(t,),
        in_specs=[
            pl.BlockSpec((1, (th + 2) * wp + 2, cin), lambda i: (i, 0, 0)),
            pl.BlockSpec((3, 3, cin, co), lambda i: (0, 0, 0, 0)),
            pl.BlockSpec((rows, 1), lambda i: (0, 0)),
        ],
        out_specs=(
            pl.BlockSpec((1, rows, co), lambda i: (i, 0, 0)),
            pl.BlockSpec((1, 2, co), lambda i: (i, 0, 0)),
        ),
        compiler_params=pltpu.CompilerParams(
            dimension_semantics=("parallel",),      # independent tiles -> both v7x TCs
            vmem_limit_bytes=_VMEM_LIMIT),
    )(xt, wb, mask)

    # Global BN statistics (training mode, biased variance), folded into a single
    # per-channel scale/shift.  Tiny (Co,)-sized math, done in f32 JAX.
    m = jnp.float32(n * h * w)
    total = jnp.sum(stats, axis=0)                  # (2, co)
    mean = total[0] / m
    var = jnp.maximum(total[1] / m - mean * mean, 0.0)
    scale = gamma * jax.lax.rsqrt(var + BN_EPS)
    shift = beta - mean * scale

    # Pass 2: lane-dense affine + ReLU.  The y reshape is a bitwise view of the
    # same row-major HBM bytes; the output's last dim is W*Co (lane-dense stores).
    nh_rows = n * h
    y2d = y.reshape(nh_rows, wp * co)
    scale_t = jnp.tile(scale, w).reshape(1, w * co)
    shift_t = jnp.tile(shift, w).reshape(1, w * co)
    tb = _pick_row_block(nh_rows)
    kern2 = functools.partial(_bn_relu_kernel, out_cols=w * co)
    z2d = pl.pallas_call(
        kern2,
        out_shape=jax.ShapeDtypeStruct((nh_rows, w * co), jnp.float32),
        grid=(nh_rows // tb,),
        in_specs=[
            pl.BlockSpec((tb, wp * co), lambda i: (i, 0)),
            pl.BlockSpec((1, w * co), lambda i: (0, 0)),
            pl.BlockSpec((1, w * co), lambda i: (0, 0)),
        ],
        out_specs=pl.BlockSpec((tb, w * co), lambda i: (i, 0)),
        compiler_params=pltpu.CompilerParams(
            dimension_semantics=("parallel",),
            vmem_limit_bytes=_VMEM_LIMIT),
    )(y2d, scale_t, shift_t)
    return z2d.reshape(n, h, w, co)


# --------------------------------------------------------------------------- module forward
def init_double_conv_params(key, in_channels, out_channels, mid_channels=None):
    """Deterministic synthetic parameters matching the module's shapes."""
    if not mid_channels:
        mid_channels = out_channels
    k1, k2 = jax.random.split(key)
    w1 = 0.1 * jax.random.normal(k1, (3, 3, in_channels, mid_channels), jnp.float32)
    w2 = 0.1 * jax.random.normal(k2, (3, 3, mid_channels, out_channels), jnp.float32)
    return dict(
        w1=w1,
        g1=jnp.ones((mid_channels,), jnp.float32),
        b1=jnp.zeros((mid_channels,), jnp.float32),
        w2=w2,
        g2=jnp.ones((out_channels,), jnp.float32),
        b2=jnp.zeros((out_channels,), jnp.float32),
    )


def double_conv_nhwc(x_nhwc, params, row_tile=None):
    """DoubleConv on NHWC activations (keep NHWC across a UNet stack)."""
    y = _conv_bn_relu_stage(x_nhwc, params["w1"], params["g1"], params["b1"], row_tile)
    return _conv_bn_relu_stage(y, params["w2"], params["g2"], params["b2"], row_tile)


@functools.partial(jax.jit, static_argnames=("row_tile",))
def double_conv_forward(x_nchw, params, row_tile=None):
    """Forward of DoubleConv; NCHW in/out to match the PyTorch module."""
    x = jnp.transpose(x_nchw, (0, 2, 3, 1))       # NCHW -> NHWC (once per DoubleConv)
    z = double_conv_nhwc(x, params, row_tile)
    return jnp.transpose(z, (0, 3, 1, 2))         # NHWC -> NCHW


# --------------------------------------------------------------------------- reference
def _reference_forward(x_nchw, params):
    """Pure-JAX reference (lax conv + training-mode BN + ReLU).

    Mirrors the bf16 MXU-input cast so the comparison isolates kernel bugs from
    the intentional bf16 quantization of the matmul inputs."""
    def stage(x, w, g, b):
        y = jax.lax.conv_general_dilated(
            x.astype(MXU_DTYPE), w.astype(MXU_DTYPE),
            window_strides=(1, 1), padding="SAME",
            dimension_numbers=("NHWC", "HWIO", "NHWC"),
            preferred_element_type=jnp.float32)
        mean = jnp.mean(y, axis=(0, 1, 2), keepdims=True)
        var = jnp.mean((y - mean) ** 2, axis=(0, 1, 2), keepdims=True)
        yh = (y - mean) * jax.lax.rsqrt(var + BN_EPS)
        yh = yh * g.reshape(1, 1, 1, -1) + b.reshape(1, 1, 1, -1)
        return jnp.maximum(yh, 0.0)

    x = jnp.transpose(x_nchw, (0, 2, 3, 1))
    y = stage(x, params["w1"], params["g1"], params["b1"])
    z = stage(y, params["w2"], params["g2"], params["b2"])
    return jnp.transpose(z, (0, 3, 1, 2))


if __name__ == "__main__":
    key = jax.random.PRNGKey(0)
    k_x, k_p = jax.random.split(key)

    N, C_IN, H, W = 2, 4, 16, 16
    C_OUT = 8          # mid_channels defaults to out_channels

    x = jax.random.normal(k_x, (N, C_IN, H, W), jnp.float32)
    params = init_double_conv_params(k_p, C_IN, C_OUT)

    # row_tile=8 -> 4 conv tiles per stage: exercises the tiled/pipelined path.
    out = jax.block_until_ready(double_conv_forward(x, params, row_tile=8))
    assert out.shape == (N, C_OUT, H, W), out.shape

    ref = _reference_forward(x, params)
    # Tolerance reflects bf16 MXU inputs + differing f32 reduction orders.
    err = float(jnp.max(jnp.abs(out - ref)))
    assert jnp.allclose(out, ref, atol=2e-3, rtol=2e-3), err

    print("KERNEL_OK")
</pallas_src>

<mosaic_0001>
module attributes {stable_mosaic.version = 11 : i64} {
  func.func @_conv3x3_stats_kernel(%arg0: i32, %arg1: memref<1x182x4xbf16, #tpu.memory_space<vmem>>, %arg2: memref<3x3x4x8xbf16, #tpu.memory_space<vmem>>, %arg3: memref<144x1xf32, #tpu.memory_space<vmem>>, %arg4: memref<1x144x8xf32, #tpu.memory_space<vmem>>, %arg5: memref<1x2x8xf32, #tpu.memory_space<vmem>>) attributes {dimension_semantics = [#tpu.dimension_semantics<parallel>], iteration_bounds = array<i64: 4>, scalar_prefetch = 0 : i64, scratch_operands = 0 : i64, tpu.core_type = #tpu.core_type<tc>, window_params = [{transform_indices = @transform_0, window_bounds = array<i64: 1, 182, 4>}, {pipeline_mode = #tpu.pipeline_mode<synchronous>, transform_indices = @transform_1, window_bounds = array<i64: 3, 3, 4, 8>}, {pipeline_mode = #tpu.pipeline_mode<synchronous>, transform_indices = @transform_2, window_bounds = array<i64: 144, 1>}, {transform_indices = @transform_3, window_bounds = array<i64: 1, 144, 8>}, {transform_indices = @transform_4, window_bounds = array<i64: 1, 2, 8>}]} {
    %cst = arith.constant 0.000000e+00 : f32
    %0 = vector.broadcast %cst : f32 to vector<144x8xf32>
    %c0 = arith.constant 0 : index
    %c0_0 = arith.constant 0 : index
    %c0_1 = arith.constant 0 : index
    %1 = vector.load %arg1[%c0, %c0_0, %c0_1] : memref<1x182x4xbf16, #tpu.memory_space<vmem>>, vector<1x144x4xbf16>
    %2 = vector.shape_cast %1 : vector<1x144x4xbf16> to vector<144x4xbf16>
    %c0_2 = arith.constant 0 : index
    %c0_3 = arith.constant 0 : index
    %c0_4 = arith.constant 0 : index
    %c0_5 = arith.constant 0 : index
    %3 = vector.load %arg2[%c0_2, %c0_3, %c0_4, %c0_5] : memref<3x3x4x8xbf16, #tpu.memory_space<vmem>>, vector<1x1x4x8xbf16>
    %4 = vector.shape_cast %3 : vector<1x1x4x8xbf16> to vector<4x8xbf16>
    %cst_6 = arith.constant dense<0.000000e+00> : vector<144x8xf32>
    %5 = tpu.matmul %2, %4, %cst_6 {dimension_numbers = #tpu.dot_dimension_numbers<[1], [0], [0], [1], [0, 0, 1, 1], [], []>} : vector<144x4xbf16>, vector<4x8xbf16>, vector<144x8xf32> -> vector<144x8xf32>
    %6 = arith.addf %0, %5 : vector<144x8xf32>
    %c0_7 = arith.constant 0 : index
    %c1 = arith.constant 1 : index
    %c0_8 = arith.constant 0 : index
    %7 = vector.load %arg1[%c0_7, %c1, %c0_8] : memref<1x182x4xbf16, #tpu.memory_space<vmem>>, vector<1x144x4xbf16>
    %8 = vector.shape_cast %7 : vector<1x144x4xbf16> to vector<144x4xbf16>
    %c0_9 = arith.constant 0 : index
    %c1_10 = arith.constant 1 : index
    %c0_11 = arith.constant 0 : index
    %c0_12 = arith.constant 0 : index
    %9 = vector.load %arg2[%c0_9, %c1_10, %c0_11, %c0_12] : memref<3x3x4x8xbf16, #tpu.memory_space<vmem>>, vector<1x1x4x8xbf16>
    %10 = vector.shape_cast %9 : vector<1x1x4x8xbf16> to vector<4x8xbf16>
    %cst_13 = arith.constant dense<0.000000e+00> : vector<144x8xf32>
    %11 = tpu.matmul %8, %10, %cst_13 {dimension_numbers = #tpu.dot_dimension_numbers<[1], [0], [0], [1], [0, 0, 1, 1], [], []>} : vector<144x4xbf16>, vector<4x8xbf16>, vector<144x8xf32> -> vector<144x8xf32>
    %12 = arith.addf %6, %11 : vector<144x8xf32>
    %c0_14 = arith.constant 0 : index
    %c2 = arith.constant 2 : index
    %c0_15 = arith.constant 0 : index
    %13 = vector.load %arg1[%c0_14, %c2, %c0_15] : memref<1x182x4xbf16, #tpu.memory_space<vmem>>, vector<1x144x4xbf16>
    %14 = vector.shape_cast %13 : vector<1x144x4xbf16> to vector<144x4xbf16>
    %c0_16 = arith.constant 0 : index
    %c2_17 = arith.constant 2 : index
    %c0_18 = arith.constant 0 : index
    %c0_19 = arith.constant 0 : index
    %15 = vector.load %arg2[%c0_16, %c2_17, %c0_18, %c0_19] : memref<3x3x4x8xbf16, #tpu.memory_space<vmem>>, vector<1x1x4x8xbf16>
    %16 = vector.shape_cast %15 : vector<1x1x4x8xbf16> to vector<4x8xbf16>
    %cst_20 = arith.constant dense<0.000000e+00> : vector<144x8xf32>
    %17 = tpu.matmul %14, %16, %cst_20 {dimension_numbers = #tpu.dot_dimension_numbers<[1], [0], [0], [1], [0, 0, 1, 1], [], []>} : vector<144x4xbf16>, vector<4x8xbf16>, vector<144x8xf32> -> vector<144x8xf32>
    %18 = arith.addf %12, %17 : vector<144x8xf32>
    %c0_21 = arith.constant 0 : index
    %c18 = arith.constant 18 : index
    %c0_22 = arith.constant 0 : index
    %19 = vector.load %arg1[%c0_21, %c18, %c0_22] : memref<1x182x4xbf16, #tpu.memory_space<vmem>>, vector<1x144x4xbf16>
    %20 = vector.shape_cast %19 : vector<1x144x4xbf16> to vector<144x4xbf16>
    %c1_23 = arith.constant 1 : index
    %c0_24 = arith.constant 0 : index
    %c0_25 = arith.constant 0 : index
    %c0_26 = arith.constant 0 : index
    %21 = vector.load %arg2[%c1_23, %c0_24, %c0_25, %c0_26] : memref<3x3x4x8xbf16, #tpu.memory_space<vmem>>, vector<1x1x4x8xbf16>
    %22 = vector.shape_cast %21 : vector<1x1x4x8xbf16> to vector<4x8xbf16>
    %cst_27 = arith.constant dense<0.000000e+00> : vector<144x8xf32>
    %23 = tpu.matmul %20, %22, %cst_27 {dimension_numbers = #tpu.dot_dimension_numbers<[1], [0], [0], [1], [0, 0, 1, 1], [], []>} : vector<144x4xbf16>, vector<4x8xbf16>, vector<144x8xf32> -> vector<144x8xf32>
    %24 = arith.addf %18, %23 : vector<144x8xf32>
    %c0_28 = arith.constant 0 : index
    %c19 = arith.constant 19 : index
    %c0_29 = arith.constant 0 : index
    %25 = vector.load %arg1[%c0_28, %c19, %c0_29] : memref<1x182x4xbf16, #tpu.memory_space<vmem>>, vector<1x144x4xbf16>
    %26 = vector.shape_cast %25 : vector<1x144x4xbf16> to vector<144x4xbf16>
    %c1_30 = arith.constant 1 : index
    %c1_31 = arith.constant 1 : index
    %c0_32 = arith.constant 0 : index
    %c0_33 = arith.constant 0 : index
    %27 = vector.load %arg2[%c1_30, %c1_31, %c0_32, %c0_33] : memref<3x3x4x8xbf16, #tpu.memory_space<vmem>>, vector<1x1x4x8xbf16>
    %28 = vector.shape_cast %27 : vector<1x1x4x8xbf16> to vector<4x8xbf16>
    %cst_34 = arith.constant dense<0.000000e+00> : vector<144x8xf32>
    %29 = tpu.matmul %26, %28, %cst_34 {dimension_numbers = #tpu.dot_dimension_numbers<[1], [0], [0], [1], [0, 0, 1, 1], [], []>} : vector<144x4xbf16>, vector<4x8xbf16>, vector<144x8xf32> -> vector<144x8xf32>
    %30 = arith.addf %24, %29 : vector<144x8xf32>
    %c0_35 = arith.constant 0 : index
    %c20 = arith.constant 20 : index
    %c0_36 = arith.constant 0 : index
    %31 = vector.load %arg1[%c0_35, %c20, %c0_36] : memref<1x182x4xbf16, #tpu.memory_space<vmem>>, vector<1x144x4xbf16>
    %32 = vector.shape_cast %31 : vector<1x144x4xbf16> to vector<144x4xbf16>
    %c1_37 = arith.constant 1 : index
    %c2_38 = arith.constant 2 : index
    %c0_39 = arith.constant 0 : index
    %c0_40 = arith.constant 0 : index
    %33 = vector.load %arg2[%c1_37, %c2_38, %c0_39, %c0_40] : memref<3x3x4x8xbf16, #tpu.memory_space<vmem>>, vector<1x1x4x8xbf16>
    %34 = vector.shape_cast %33 : vector<1x1x4x8xbf16> to vector<4x8xbf16>
    %cst_41 = arith.constant dense<0.000000e+00> : vector<144x8xf32>
    %35 = tpu.matmul %32, %34, %cst_41 {dimension_numbers = #tpu.dot_dimension_numbers<[1], [0], [0], [1], [0, 0, 1, 1], [], []>} : vector<144x4xbf16>, vector<4x8xbf16>, vector<144x8xf32> -> vector<144x8xf32>
    %36 = arith.addf %30, %35 : vector<144x8xf32>
    %c0_42 = arith.constant 0 : index
    %c36 = arith.constant 36 : index
    %c0_43 = arith.constant 0 : index
    %37 = vector.load %arg1[%c0_42, %c36, %c0_43] : memref<1x182x4xbf16, #tpu.memory_space<vmem>>, vector<1x144x4xbf16>
    %38 = vector.shape_cast %37 : vector<1x144x4xbf16> to vector<144x4xbf16>
    %c2_44 = arith.constant 2 : index
    %c0_45 = arith.constant 0 : index
    %c0_46 = arith.constant 0 : index
    %c0_47 = arith.constant 0 : index
    %39 = vector.load %arg2[%c2_44, %c0_45, %c0_46, %c0_47] : memref<3x3x4x8xbf16, #tpu.memory_space<vmem>>, vector<1x1x4x8xbf16>
    %40 = vector.shape_cast %39 : vector<1x1x4x8xbf16> to vector<4x8xbf16>
    %cst_48 = arith.constant dense<0.000000e+00> : vector<144x8xf32>
    %41 = tpu.matmul %38, %40, %cst_48 {dimension_numbers = #tpu.dot_dimension_numbers<[1], [0], [0], [1], [0, 0, 1, 1], [], []>} : vector<144x4xbf16>, vector<4x8xbf16>, vector<144x8xf32> -> vector<144x8xf32>
    %42 = arith.addf %36, %41 : vector<144x8xf32>
    %c0_49 = arith.constant 0 : index
    %c37 = arith.constant 37 : index
    %c0_50 = arith.constant 0 : index
    %43 = vector.load %arg1[%c0_49, %c37, %c0_50] : memref<1x182x4xbf16, #tpu.memory_space<vmem>>, vector<1x144x4xbf16>
    %44 = vector.shape_cast %43 : vector<1x144x4xbf16> to vector<144x4xbf16>
    %c2_51 = arith.constant 2 : index
    %c1_52 = arith.constant 1 : index
    %c0_53 = arith.constant 0 : index
    %c0_54 = arith.constant 0 : index
    %45 = vector.load %arg2[%c2_51, %c1_52, %c0_53, %c0_54] : memref<3x3x4x8xbf16, #tpu.memory_space<vmem>>, vector<1x1x4x8xbf16>
    %46 = vector.shape_cast %45 : vector<1x1x4x8xbf16> to vector<4x8xbf16>
    %cst_55 = arith.constant dense<0.000000e+00> : vector<144x8xf32>
    %47 = tpu.matmul %44, %46, %cst_55 {dimension_numbers = #tpu.dot_dimension_numbers<[1], [0], [0], [1], [0, 0, 1, 1], [], []>} : vector<144x4xbf16>, vector<4x8xbf16>, vector<144x8xf32> -> vector<144x8xf32>
    %48 = arith.addf %42, %47 : vector<144x8xf32>
    %c0_56 = arith.constant 0 : index
    %c38 = arith.constant 38 : index
    %c0_57 = arith.constant 0 : index
    %49 = vector.load %arg1[%c0_56, %c38, %c0_57] : memref<1x182x4xbf16, #tpu.memory_space<vmem>>, vector<1x144x4xbf16>
    %50 = vector.shape_cast %49 : vector<1x144x4xbf16> to vector<144x4xbf16>
    %c2_58 = arith.constant 2 : index
    %c2_59 = arith.constant 2 : index
    %c0_60 = arith.constant 0 : index
    %c0_61 = arith.constant 0 : index
    %51 = vector.load %arg2[%c2_58, %c2_59, %c0_60, %c0_61] : memref<3x3x4x8xbf16, #tpu.memory_space<vmem>>, vector<1x1x4x8xbf16>
    %52 = vector.shape_cast %51 : vector<1x1x4x8xbf16> to vector<4x8xbf16>
    %cst_62 = arith.constant dense<0.000000e+00> : vector<144x8xf32>
    %53 = tpu.matmul %50, %52, %cst_62 {dimension_numbers = #tpu.dot_dimension_numbers<[1], [0], [0], [1], [0, 0, 1, 1], [], []>} : vector<144x4xbf16>, vector<4x8xbf16>, vector<144x8xf32> -> vector<144x8xf32>
    %54 = arith.addf %48, %53 : vector<144x8xf32>
    %c0_63 = arith.constant 0 : index
    %c0_64 = arith.constant 0 : index
    %c0_65 = arith.constant 0 : index
    %55 = vector.load %arg4[%c0_63, %c0_64, %c0_65] : memref<1x144x8xf32, #tpu.memory_space<vmem>>, vector<1x144x8xf32>
    %56 = vector.shape_cast %55 : vector<1x144x8xf32> to vector<144x8xf32>
    %57 = vector.shape_cast %54 : vector<144x8xf32> to vector<1x144x8xf32>
    tpu.vector_store %arg4[%c0_63, %c0_64, %c0_65], %57 {strides = array<i32>} : memref<1x144x8xf32, #tpu.memory_space<vmem>>, vector<1x144x8xf32>,
    %c0_66 = arith.constant 0 : index
    %c0_67 = arith.constant 0 : index
    %58 = vector.load %arg3[%c0_66, %c0_67] : memref<144x1xf32, #tpu.memory_space<vmem>>, vector<144x1xf32>
    %59 = vector.broadcast %58 : vector<144x1xf32> to vector<144x8xf32>
    %60 = arith.mulf %54, %59 : vector<144x8xf32>
    %cst_68 = arith.constant dense<0.000000e+00> : vector<8xf32>
    %61 = vector.multi_reduction <add>, %60, %cst_68 [0] : vector<144x8xf32> to vector<8xf32>
    %62 = vector.shape_cast %61 : vector<8xf32> to vector<1x8xf32>
    %c0_69 = arith.constant 0 : index
    %c0_70 = arith.constant 0 : index
    %c0_71 = arith.constant 0 : index
    %63 = vector.load %arg5[%c0_69, %c0_70, %c0_71] : memref<1x2x8xf32, #tpu.memory_space<vmem>>, vector<1x1x8xf32>
    %64 = vector.shape_cast %63 : vector<1x1x8xf32> to vector<1x8xf32>
    %65 = vector.shape_cast %62 : vector<1x8xf32> to vector<1x1x8xf32>
    tpu.vector_store %arg5[%c0_69, %c0_70, %c0_71], %65 {strides = array<i32>} : memref<1x2x8xf32, #tpu.memory_space<vmem>>, vector<1x1x8xf32>,
    %66 = arith.mulf %60, %54 : vector<144x8xf32>
    %cst_72 = arith.constant dense<0.000000e+00> : vector<8xf32>
    %67 = vector.multi_reduction <add>, %66, %cst_72 [0] : vector<144x8xf32> to vector<8xf32>
    %68 = vector.shape_cast %67 : vector<8xf32> to vector<1x8xf32>
    %c0_73 = arith.constant 0 : index
    %c1_74 = arith.constant 1 : index
    %c0_75 = arith.constant 0 : index
    %69 = vector.load %arg5[%c0_73, %c1_74, %c0_75] : memref<1x2x8xf32, #tpu.memory_space<vmem>>, vector<1x1x8xf32>
    %70 = vector.shape_cast %69 : vector<1x1x8xf32> to vector<1x8xf32>
    %71 = vector.shape_cast %68 : vector<1x8xf32> to vector<1x1x8xf32>
    tpu.vector_store %arg5[%c0_73, %c1_74, %c0_75], %71 {strides = array<i32>} : memref<1x2x8xf32, #tpu.memory_space<vmem>>, vector<1x1x8xf32>,
    return
  }
  func.func @transform_0(%arg0: i32) -> (i32, i32, i32) {
    %c0_i32 = arith.constant 0 : i32
    %c0_i32_0 = arith.constant 0 : i32
    %c0_i32_1 = arith.constant 0 : i32
    return %arg0, %c0_i32, %c0_i32_0 : i32, i32, i32
  }
  func.func @transform_1(%arg0: i32) -> (i32, i32, i32, i32) {
    %c0_i32 = arith.constant 0 : i32
    %c0_i32_0 = arith.constant 0 : i32
    %c0_i32_1 = arith.constant 0 : i32
    %c0_i32_2 = arith.constant 0 : i32
    %c0_i32_3 = arith.constant 0 : i32
    return %c0_i32, %c0_i32_0, %c0_i32_1, %c0_i32_2 : i32, i32, i32, i32
  }
  func.func @transform_2(%arg0: i32) -> (i32, i32) {
    %c0_i32 = arith.constant 0 : i32
    %c0_i32_0 = arith.constant 0 : i32
    %c0_i32_1 = arith.constant 0 : i32
    return %c0_i32, %c0_i32_0 : i32, i32
  }
  func.func @transform_3(%arg0: i32) -> (i32, i32, i32) {
    %c0_i32 = arith.constant 0 : i32
    %c0_i32_0 = arith.constant 0 : i32
    %c0_i32_1 = arith.constant 0 : i32
    return %arg0, %c0_i32, %c0_i32_0 : i32, i32, i32
  }
  func.func @transform_4(%arg0: i32) -> (i32, i32, i32) {
    %c0_i32 = arith.constant 0 : i32
    %c0_i32_0 = arith.constant 0 : i32
    %c0_i32_1 = arith.constant 0 : i32
    return %arg0, %c0_i32, %c0_i32_0 : i32, i32, i32
  }
}

module attributes {stable_mosaic.version = 11 : i64} {
  func.func @_bn_relu_kernel(%arg0: i32, %arg1: memref<16x144xf32, #tpu.memory_space<vmem>>, %arg2: memref<1x128xf32, #tpu.memory_space<vmem>>, %arg3: memref<1x128xf32, #tpu.memory_space<vmem>>, %arg4: memref<16x128xf32, #tpu.memory_space<vmem>>) attributes {dimension_semantics = [#tpu.dimension_semantics<parallel>], iteration_bounds = array<i64: 2>, scalar_prefetch = 0 : i64, scratch_operands = 0 : i64, tpu.core_type = #tpu.core_type<tc>, window_params = [{transform_indices = @transform_0, window_bounds = array<i64: 16, 144>}, {pipeline_mode = #tpu.pipeline_mode<synchronous>, transform_indices = @transform_1, window_bounds = array<i64: 1, 128>}, {pipeline_mode = #tpu.pipeline_mode<synchronous>, transform_indices = @transform_2, window_bounds = array<i64: 1, 128>}, {transform_indices = @transform_3, window_bounds = array<i64: 16, 128>}]} {
    %c0 = arith.constant 0 : index
    %c0_0 = arith.constant 0 : index
    %0 = vector.load %arg1[%c0, %c0_0] : memref<16x144xf32, #tpu.memory_space<vmem>>, vector<16x128xf32>
    %c0_1 = arith.constant 0 : index
    %c0_2 = arith.constant 0 : index
    %1 = vector.load %arg2[%c0_1, %c0_2] : memref<1x128xf32, #tpu.memory_space<vmem>>, vector<1x128xf32>
    %2 = vector.broadcast %1 : vector<1x128xf32> to vector<16x128xf32>
    %3 = arith.mulf %0, %2 : vector<16x128xf32>
    %c0_3 = arith.constant 0 : index
    %c0_4 = arith.constant 0 : index
    %4 = vector.load %arg3[%c0_3, %c0_4] : memref<1x128xf32, #tpu.memory_space<vmem>>, vector<1x128xf32>
    %5 = vector.broadcast %4 : vector<1x128xf32> to vector<16x128xf32>
    %6 = arith.addf %3, %5 : vector<16x128xf32>
    %cst = arith.constant 0.000000e+00 : f32
    %7 = vector.broadcast %cst : f32 to vector<16x128xf32>
    %8 = arith.maximumf %6, %7 : vector<16x128xf32>
    %c0_5 = arith.constant 0 : index
    %c0_6 = arith.constant 0 : index
    %9 = vector.load %arg4[%c0_5, %c0_6] : memref<16x128xf32, #tpu.memory_space<vmem>>, vector<16x128xf32>
    tpu.vector_store %arg4[%c0_5, %c0_6], %8 {strides = array<i32>} : memref<16x128xf32, #tpu.memory_space<vmem>>, vector<16x128xf32>,
    return
  }
  func.func @transform_0(%arg0: i32) -> (i32, i32) {
    %c0_i32 = arith.constant 0 : i32
    %c0_i32_0 = arith.constant 0 : i32
    return %arg0, %c0_i32 : i32, i32
  }
  func.func @transform_1(%arg0: i32) -> (i32, i32) {
    %c0_i32 = arith.constant 0 : i32
    %c0_i32_0 = arith.constant 0 : i32
    %c0_i32_1 = arith.constant 0 : i32
    return %c0_i32, %c0_i32_0 : i32, i32
  }
  func.func @transform_2(%arg0: i32) -> (i32, i32) {
    %c0_i32 = arith.constant 0 : i32
    %c0_i32_0 = arith.constant 0 : i32
    %c0_i32_1 = arith.constant 0 : i32
    return %c0_i32, %c0_i32_0 : i32, i32
  }
  func.func @transform_3(%arg0: i32) -> (i32, i32) {
    %c0_i32 = arith.constant 0 : i32
    %c0_i32_0 = arith.constant 0 : i32
    return %arg0, %c0_i32 : i32, i32
  }
}

module attributes {stable_mosaic.version = 11 : i64} {
  func.func @_conv3x3_stats_kernel(%arg0: i32, %arg1: memref<1x182x8xbf16, #tpu.memory_space<vmem>>, %arg2: memref<3x3x8x8xbf16, #tpu.memory_space<vmem>>, %arg3: memref<144x1xf32, #tpu.memory_space<vmem>>, %arg4: memref<1x144x8xf32, #tpu.memory_space<vmem>>, %arg5: memref<1x2x8xf32, #tpu.memory_space<vmem>>) attributes {dimension_semantics = [#tpu.dimension_semantics<parallel>], iteration_bounds = array<i64: 4>, scalar_prefetch = 0 : i64, scratch_operands = 0 : i64, tpu.core_type = #tpu.core_type<tc>, window_params = [{transform_indices = @transform_0, window_bounds = array<i64: 1, 182, 8>}, {pipeline_mode = #tpu.pipeline_mode<synchronous>, transform_indices = @transform_1, window_bounds = array<i64: 3, 3, 8, 8>}, {pipeline_mode = #tpu.pipeline_mode<synchronous>, transform_indices = @transform_2, window_bounds = array<i64: 144, 1>}, {transform_indices = @transform_3, window_bounds = array<i64: 1, 144, 8>}, {transform_indices = @transform_4, window_bounds = array<i64: 1, 2, 8>}]} {
    %cst = arith.constant 0.000000e+00 : f32
    %0 = vector.broadcast %cst : f32 to vector<144x8xf32>
    %c0 = arith.constant 0 : index
    %c0_0 = arith.constant 0 : index
    %c0_1 = arith.constant 0 : index
    %1 = vector.load %arg1[%c0, %c0_0, %c0_1] : memref<1x182x8xbf16, #tpu.memory_space<vmem>>, vector<1x144x8xbf16>
    %2 = vector.shape_cast %1 : vector<1x144x8xbf16> to vector<144x8xbf16>
    %c0_2 = arith.constant 0 : index
    %c0_3 = arith.constant 0 : index
    %c0_4 = arith.constant 0 : index
    %c0_5 = arith.constant 0 : index
    %3 = vector.load %arg2[%c0_2, %c0_3, %c0_4, %c0_5] : memref<3x3x8x8xbf16, #tpu.memory_space<vmem>>, vector<1x1x8x8xbf16>
    %4 = vector.shape_cast %3 : vector<1x1x8x8xbf16> to vector<8x8xbf16>
    %cst_6 = arith.constant dense<0.000000e+00> : vector<144x8xf32>
    %5 = tpu.matmul %2, %4, %cst_6 {dimension_numbers = #tpu.dot_dimension_numbers<[1], [0], [0], [1], [0, 0, 1, 1], [], []>} : vector<144x8xbf16>, vector<8x8xbf16>, vector<144x8xf32> -> vector<144x8xf32>
    %6 = arith.addf %0, %5 : vector<144x8xf32>
    %c0_7 = arith.constant 0 : index
    %c1 = arith.constant 1 : index
    %c0_8 = arith.constant 0 : index
    %7 = vector.load %arg1[%c0_7, %c1, %c0_8] : memref<1x182x8xbf16, #tpu.memory_space<vmem>>, vector<1x144x8xbf16>
    %8 = vector.shape_cast %7 : vector<1x144x8xbf16> to vector<144x8xbf16>
    %c0_9 = arith.constant 0 : index
    %c1_10 = arith.constant 1 : index
    %c0_11 = arith.constant 0 : index
    %c0_12 = arith.constant 0 : index
    %9 = vector.load %arg2[%c0_9, %c1_10, %c0_11, %c0_12] : memref<3x3x8x8xbf16, #tpu.memory_space<vmem>>, vector<1x1x8x8xbf16>
    %10 = vector.shape_cast %9 : vector<1x1x8x8xbf16> to vector<8x8xbf16>
    %cst_13 = arith.constant dense<0.000000e+00> : vector<144x8xf32>
    %11 = tpu.matmul %8, %10, %cst_13 {dimension_numbers = #tpu.dot_dimension_numbers<[1], [0], [0], [1], [0, 0, 1, 1], [], []>} : vector<144x8xbf16>, vector<8x8xbf16>, vector<144x8xf32> -> vector<144x8xf32>
    %12 = arith.addf %6, %11 : vector<144x8xf32>
    %c0_14 = arith.constant 0 : index
    %c2 = arith.constant 2 : index
    %c0_15 = arith.constant 0 : index
    %13 = vector.load %arg1[%c0_14, %c2, %c0_15] : memref<1x182x8xbf16, #tpu.memory_space<vmem>>, vector<1x144x8xbf16>
    %14 = vector.shape_cast %13 : vector<1x144x8xbf16> to vector<144x8xbf16>
    %c0_16 = arith.constant 0 : index
    %c2_17 = arith.constant 2 : index
    %c0_18 = arith.constant 0 : index
    %c0_19 = arith.constant 0 : index
    %15 = vector.load %arg2[%c0_16, %c2_17, %c0_18, %c0_19] : memref<3x3x8x8xbf16, #tpu.memory_space<vmem>>, vector<1x1x8x8xbf16>
    %16 = vector.shape_cast %15 : vector<1x1x8x8xbf16> to vector<8x8xbf16>
    %cst_20 = arith.constant dense<0.000000e+00> : vector<144x8xf32>
    %17 = tpu.matmul %14, %16, %cst_20 {dimension_numbers = #tpu.dot_dimension_numbers<[1], [0], [0], [1], [0, 0, 1, 1], [], []>} : vector<144x8xbf16>, vector<8x8xbf16>, vector<144x8xf32> -> vector<144x8xf32>
    %18 = arith.addf %12, %17 : vector<144x8xf32>
    %c0_21 = arith.constant 0 : index
    %c18 = arith.constant 18 : index
    %c0_22 = arith.constant 0 : index
    %19 = vector.load %arg1[%c0_21, %c18, %c0_22] : memref<1x182x8xbf16, #tpu.memory_space<vmem>>, vector<1x144x8xbf16>
    %20 = vector.shape_cast %19 : vector<1x144x8xbf16> to vector<144x8xbf16>
    %c1_23 = arith.constant 1 : index
    %c0_24 = arith.constant 0 : index
    %c0_25 = arith.constant 0 : index
    %c0_26 = arith.constant 0 : index
    %21 = vector.load %arg2[%c1_23, %c0_24, %c0_25, %c0_26] : memref<3x3x8x8xbf16, #tpu.memory_space<vmem>>, vector<1x1x8x8xbf16>
    %22 = vector.shape_cast %21 : vector<1x1x8x8xbf16> to vector<8x8xbf16>
    %cst_27 = arith.constant dense<0.000000e+00> : vector<144x8xf32>
    %23 = tpu.matmul %20, %22, %cst_27 {dimension_numbers = #tpu.dot_dimension_numbers<[1], [0], [0], [1], [0, 0, 1, 1], [], []>} : vector<144x8xbf16>, vector<8x8xbf16>, vector<144x8xf32> -> vector<144x8xf32>
    %24 = arith.addf %18, %23 : vector<144x8xf32>
    %c0_28 = arith.constant 0 : index
    %c19 = arith.constant 19 : index
    %c0_29 = arith.constant 0 : index
    %25 = vector.load %arg1[%c0_28, %c19, %c0_29] : memref<1x182x8xbf16, #tpu.memory_space<vmem>>, vector<1x144x8xbf16>
    %26 = vector.shape_cast %25 : vector<1x144x8xbf16> to vector<144x8xbf16>
    %c1_30 = arith.constant 1 : index
    %c1_31 = arith.constant 1 : index
    %c0_32 = arith.constant 0 : index
    %c0_33 = arith.constant 0 : index
    %27 = vector.load %arg2[%c1_30, %c1_31, %c0_32, %c0_33] : memref<3x3x8x8xbf16, #tpu.memory_space<vmem>>, vector<1x1x8x8xbf16>
    %28 = vector.shape_cast %27 : vector<1x1x8x8xbf16> to vector<8x8xbf16>
    %cst_34 = arith.constant dense<0.000000e+00> : vector<144x8xf32>
    %29 = tpu.matmul %26, %28, %cst_34 {dimension_numbers = #tpu.dot_dimension_numbers<[1], [0], [0], [1], [0, 0, 1, 1], [], []>} : vector<144x8xbf16>, vector<8x8xbf16>, vector<144x8xf32> -> vector<144x8xf32>
    %30 = arith.addf %24, %29 : vector<144x8xf32>
    %c0_35 = arith.constant 0 : index
    %c20 = arith.constant 20 : index
    %c0_36 = arith.constant 0 : index
    %31 = vector.load %arg1[%c0_35, %c20, %c0_36] : memref<1x182x8xbf16, #tpu.memory_space<vmem>>, vector<1x144x8xbf16>
    %32 = vector.shape_cast %31 : vector<1x144x8xbf16> to vector<144x8xbf16>
    %c1_37 = arith.constant 1 : index
    %c2_38 = arith.constant 2 : index
    %c0_39 = arith.constant 0 : index
    %c0_40 = arith.constant 0 : index
    %33 = vector.load %arg2[%c1_37, %c2_38, %c0_39, %c0_40] : memref<3x3x8x8xbf16, #tpu.memory_space<vmem>>, vector<1x1x8x8xbf16>
    %34 = vector.shape_cast %33 : vector<1x1x8x8xbf16> to vector<8x8xbf16>
    %cst_41 = arith.constant dense<0.000000e+00> : vector<144x8xf32>
    %35 = tpu.matmul %32, %34, %cst_41 {dimension_numbers = #tpu.dot_dimension_numbers<[1], [0], [0], [1], [0, 0, 1, 1], [], []>} : vector<144x8xbf16>, vector<8x8xbf16>, vector<144x8xf32> -> vector<144x8xf32>
    %36 = arith.addf %30, %35 : vector<144x8xf32>
    %c0_42 = arith.constant 0 : index
    %c36 = arith.constant 36 : index
    %c0_43 = arith.constant 0 : index
    %37 = vector.load %arg1[%c0_42, %c36, %c0_43] : memref<1x182x8xbf16, #tpu.memory_space<vmem>>, vector<1x144x8xbf16>
    %38 = vector.shape_cast %37 : vector<1x144x8xbf16> to vector<144x8xbf16>
    %c2_44 = arith.constant 2 : index
    %c0_45 = arith.constant 0 : index
    %c0_46 = arith.constant 0 : index
    %c0_47 = arith.constant 0 : index
    %39 = vector.load %arg2[%c2_44, %c0_45, %c0_46, %c0_47] : memref<3x3x8x8xbf16, #tpu.memory_space<vmem>>, vector<1x1x8x8xbf16>
    %40 = vector.shape_cast %39 : vector<1x1x8x8xbf16> to vector<8x8xbf16>
    %cst_48 = arith.constant dense<0.000000e+00> : vector<144x8xf32>
    %41 = tpu.matmul %38, %40, %cst_48 {dimension_numbers = #tpu.dot_dimension_numbers<[1], [0], [0], [1], [0, 0, 1, 1], [], []>} : vector<144x8xbf16>, vector<8x8xbf16>, vector<144x8xf32> -> vector<144x8xf32>
    %42 = arith.addf %36, %41 : vector<144x8xf32>
    %c0_49 = arith.constant 0 : index
    %c37 = arith.constant 37 : index
    %c0_50 = arith.constant 0 : index
    %43 = vector.load %arg1[%c0_49, %c37, %c0_50] : memref<1x182x8xbf16, #tpu.memory_space<vmem>>, vector<1x144x8xbf16>
    %44 = vector.shape_cast %43 : vector<1x144x8xbf16> to vector<144x8xbf16>
    %c2_51 = arith.constant 2 : index
    %c1_52 = arith.constant 1 : index
    %c0_53 = arith.constant 0 : index
    %c0_54 = arith.constant 0 : index
    %45 = vector.load %arg2[%c2_51, %c1_52, %c0_53, %c0_54] : memref<3x3x8x8xbf16, #tpu.memory_space<vmem>>, vector<1x1x8x8xbf16>
    %46 = vector.shape_cast %45 : vector<1x1x8x8xbf16> to vector<8x8xbf16>
    %cst_55 = arith.constant dense<0.000000e+00> : vector<144x8xf32>
    %47 = tpu.matmul %44, %46, %cst_55 {dimension_numbers = #tpu.dot_dimension_numbers<[1], [0], [0], [1], [0, 0, 1, 1], [], []>} : vector<144x8xbf16>, vector<8x8xbf16>, vector<144x8xf32> -> vector<144x8xf32>
    %48 = arith.addf %42, %47 : vector<144x8xf32>
    %c0_56 = arith.constant 0 : index
    %c38 = arith.constant 38 : index
    %c0_57 = arith.constant 0 : index
    %49 = vector.load %arg1[%c0_56, %c38, %c0_57] : memref<1x182x8xbf16, #tpu.memory_space<vmem>>, vector<1x144x8xbf16>
    %50 = vector.shape_cast %49 : vector<1x144x8xbf16> to vector<144x8xbf16>
    %c2_58 = arith.constant 2 : index
    %c2_59 = arith.constant 2 : index
    %c0_60 = arith.constant 0 : index
    %c0_61 = arith.constant 0 : index
    %51 = vector.load %arg2[%c2_58, %c2_59, %c0_60, %c0_61] : memref<3x3x8x8xbf16, #tpu.memory_space<vmem>>, vector<1x1x8x8xbf16>
    %52 = vector.shape_cast %51 : vector<1x1x8x8xbf16> to vector<8x8xbf16>
    %cst_62 = arith.constant dense<0.000000e+00> : vector<144x8xf32>
    %53 = tpu.matmul %50, %52, %cst_62 {dimension_numbers = #tpu.dot_dimension_numbers<[1], [0], [0], [1], [0, 0, 1, 1], [], []>} : vector<144x8xbf16>, vector<8x8xbf16>, vector<144x8xf32> -> vector<144x8xf32>
    %54 = arith.addf %48, %53 : vector<144x8xf32>
    %c0_63 = arith.constant 0 : index
    %c0_64 = arith.constant 0 : index
    %c0_65 = arith.constant 0 : index
    %55 = vector.load %arg4[%c0_63, %c0_64, %c0_65] : memref<1x144x8xf32, #tpu.memory_space<vmem>>, vector<1x144x8xf32>
    %56 = vector.shape_cast %55 : vector<1x144x8xf32> to vector<144x8xf32>
    %57 = vector.shape_cast %54 : vector<144x8xf32> to vector<1x144x8xf32>
    tpu.vector_store %arg4[%c0_63, %c0_64, %c0_65], %57 {strides = array<i32>} : memref<1x144x8xf32, #tpu.memory_space<vmem>>, vector<1x144x8xf32>,
    %c0_66 = arith.constant 0 : index
    %c0_67 = arith.constant 0 : index
    %58 = vector.load %arg3[%c0_66, %c0_67] : memref<144x1xf32, #tpu.memory_space<vmem>>, vector<144x1xf32>
    %59 = vector.broadcast %58 : vector<144x1xf32> to vector<144x8xf32>
    %60 = arith.mulf %54, %59 : vector<144x8xf32>
    %cst_68 = arith.constant dense<0.000000e+00> : vector<8xf32>
    %61 = vector.multi_reduction <add>, %60, %cst_68 [0] : vector<144x8xf32> to vector<8xf32>
    %62 = vector.shape_cast %61 : vector<8xf32> to vector<1x8xf32>
    %c0_69 = arith.constant 0 : index
    %c0_70 = arith.constant 0 : index
    %c0_71 = arith.constant 0 : index
    %63 = vector.load %arg5[%c0_69, %c0_70, %c0_71] : memref<1x2x8xf32, #tpu.memory_space<vmem>>, vector<1x1x8xf32>
    %64 = vector.shape_cast %63 : vector<1x1x8xf32> to vector<1x8xf32>
    %65 = vector.shape_cast %62 : vector<1x8xf32> to vector<1x1x8xf32>
    tpu.vector_store %arg5[%c0_69, %c0_70, %c0_71], %65 {strides = array<i32>} : memref<1x2x8xf32, #tpu.memory_space<vmem>>, vector<1x1x8xf32>,
    %66 = arith.mulf %60, %54 : vector<144x8xf32>
    %cst_72 = arith.constant dense<0.000000e+00> : vector<8xf32>
    %67 = vector.multi_reduction <add>, %66, %cst_72 [0] : vector<144x8xf32> to vector<8xf32>
    %68 = vector.shape_cast %67 : vector<8xf32> to vector<1x8xf32>
    %c0_73 = arith.constant 0 : index
    %c1_74 = arith.constant 1 : index
    %c0_75 = arith.constant 0 : index
    %69 = vector.load %arg5[%c0_73, %c1_74, %c0_75] : memref<1x2x8xf32, #tpu.memory_space<vmem>>, vector<1x1x8xf32>
    %70 = vector.shape_cast %69 : vector<1x1x8xf32> to vector<1x8xf32>
    %71 = vector.shape_cast %68 : vector<1x8xf32> to vector<1x1x8xf32>
    tpu.vector_store %arg5[%c0_73, %c1_74, %c0_75], %71 {strides = array<i32>} : memref<1x2x8xf32, #tpu.memory_space<vmem>>, vector<1x1x8xf32>,
    return
  }
  func.func @transform_0(%arg0: i32) -> (i32, i32, i32) {
    %c0_i32 = arith.constant 0 : i32
    %c0_i32_0 = arith.constant 0 : i32
    %c0_i32_1 = arith.constant 0 : i32
    return %arg0, %c0_i32, %c0_i32_0 : i32, i32, i32
  }
  func.func @transform_1(%arg0: i32) -> (i32, i32, i32, i32) {
    %c0_i32 = arith.constant 0 : i32
    %c0_i32_0 = arith.constant 0 : i32
    %c0_i32_1 = arith.constant 0 : i32
    %c0_i32_2 = arith.constant 0 : i32
    %c0_i32_3 = arith.constant 0 : i32
    return %c0_i32, %c0_i32_0, %c0_i32_1, %c0_i32_2 : i32, i32, i32, i32
  }
  func.func @transform_2(%arg0: i32) -> (i32, i32) {
    %c0_i32 = arith.constant 0 : i32
    %c0_i32_0 = arith.constant 0 : i32
    %c0_i32_1 = arith.constant 0 : i32
    return %c0_i32, %c0_i32_0 : i32, i32
  }
  func.func @transform_3(%arg0: i32) -> (i32, i32, i32) {
    %c0_i32 = arith.constant 0 : i32
    %c0_i32_0 = arith.constant 0 : i32
    %c0_i32_1 = arith.constant 0 : i32
    return %arg0, %c0_i32, %c0_i32_0 : i32, i32, i32
  }
  func.func @transform_4(%arg0: i32) -> (i32, i32, i32) {
    %c0_i32 = arith.constant 0 : i32
    %c0_i32_0 = arith.constant 0 : i32
    %c0_i32_1 = arith.constant 0 : i32
    return %arg0, %c0_i32, %c0_i32_0 : i32, i32, i32
  }
}

</mosaic_0001>

<bundles_post_ra>
// kernel: tile.30
= control target key start
LH: loop header
LB: loop body
LE: loop exit
PB: predicated region body
PF: predicated region fallthrough
CT: control target
= control target key end

     0   :  { %s22_s0 = inlined_call_operand.vmem [shape: f32[18], index: 0, kind: input, shape index: {}]   ;;  %s23_s1 = inlined_call_operand.vmem [shape: f32[8,18], index: 1, kind: output, shape index: {}]  }
   0x1   :  { %v4_v0 = vld [vmem:[%s22_s0] ss:$0 sm:$0xff] }
   0x2   :  { %5 = vst [vmem:[%s23_s1] sm:$0xff] %v4_v0 }

// kernel: tile.0
= control target key start
LH: loop header
LB: loop body
LE: loop exit
PB: predicated region body
PF: predicated region fallthrough
CT: control target
= control target key end

     0   :  { %s228_s10 = smov 127   ;;  %s229_s11 = smov 125   ;;  %vm3_vm0 = vcmask 7168   ;;  %s461_s0 = inlined_call_operand.vmem [shape: f32[8,18], index: 0, kind: input, shape index: {}]   ;;  %s462_s1 = inlined_call_operand.vmem [shape: f32[144,1], index: 1, kind: output, shape index: {}]  }
   0x1   :  { %v5_v0 = vld.sshfl [vmem:[%s461_s0] sm:$0xff pattern:$0x75316420]   ;;  %s230_s12 = smov 126   ;;  %s231_s13 = smov 124  }
   0x2   :  { %v23_v1 = vld.sshfl [vmem:[%s461_s0] sm:$0xff pattern:$0x53164207]   ;;  %6 = vrot.lane.b32.xlu0 %v5_v0, %s228_s10  ;;  %s232_s16 = smov 123   ;;  %s233_s17 = smov 122  }
   0x3   :  { %24 = vrot.lane.b32.xlu1 %v23_v1, %s229_s11  ;;  %v53_v2 = vld.sshfl [vmem:[%s461_s0] sm:$0xff pattern:$0x31642075]   ;;  %s234_s18 = smov 121   ;;  %s235_s19 = smov 120  }
   0x4   :  { %v93_v3 = vld.sshfl [vmem:[%s461_s0] sm:$0xff pattern:$0x16420753]   ;;  %s236_s22 = smov 119   ;;  %s237_s23 = smov 118  }
   0x5   :  { %v2_v4 = vld [vmem:[%s461_s0] sm:$0xff]   ;;  %s238_s28 = smov 117   ;;  %s239_s29 = smov 116  }
   0x6   :  { %14 = vrot.lane.b32.xlu0 %v23_v1, %s230_s12  ;;  %4 = vst.msk [vmem:[%s462_s1] ss:$18 sm:$0xff] %vm3_vm0, %v2_v4   ;;  %v133_v5 = vld.sshfl [vmem:[%s461_s0] sm:$0xff pattern:$0x64207531]   ;;  %s240_s0 = smov 115  }
   0x7   :  { %34 = vrot.lane.b32.xlu1 %v23_v1, %s231_s13  ;;  %s241_s3 = smov 114   ;;  %s242_s4 = smov 113  }
   0x8   :  { %s243_s5 = smov 112   ;;  %s244_s6 = smov 111  }
   0xa   :  { %44 = vrot.lane.b32.xlu0 %v23_v1, %s232_s16 }
   0xb   :  { %54 = vrot.lane.b32.xlu1 %v53_v2, %s233_s17 }
   0xe   :  { %64 = vrot.lane.b32.xlu0 %v53_v2, %s234_s18 }
   0xf   :  { %74 = vrot.lane.b32.xlu1 %v53_v2, %s235_s19 }
  0x12   :  { %84 = vrot.lane.b32.xlu0 %v53_v2, %s236_s22 }
  0x13   :  { %94 = vrot.lane.b32.xlu1 %v93_v3, %s237_s23 }
  0x16   :  { %104 = vrot.lane.b32.xlu0 %v93_v3, %s238_s28 }
  0x17   :  { %114 = vrot.lane.b32.xlu1 %v93_v3, %s239_s29 }
  0x1a   :  { %124 = vrot.lane.b32.xlu0 %v93_v3, %s240_s0 }
  0x1b   :  { %134 = vrot.lane.b32.xlu1 %v133_v5, %s241_s3 }
  0x1e   :  { %142 = vrot.lane.b32.xlu0 %v133_v5, %s242_s4 }
  0x1f   :  { %150 = vrot.lane.b32.xlu1 %v133_v5, %s243_s5 }
  0x22   :  { %158 = vrot.lane.b32.xlu0 %v133_v5, %s244_s6 }
  0x74   :  { %v7_v6 = vpop.permute.xlu0 %6  }
  0x75   :  { %v25_v7 = vpop.permute.xlu1 %24   ;;  %165 = vst.msk [vmem:[%s462_s1 + $0x1] ss:$36 sm:$0xf] %vm3_vm0, %v7_v6   ;;  %166 = vst.msk [vmem:[%s462_s1 - $0x7d] ss:$36 sm:$0xf0] %vm3_vm0, %v7_v6  }
  0x76   :  { %170 = vst.msk [vmem:[%s462_s1 + $0x81] ss:$-126 sm:$0x3] %vm3_vm0, %v25_v7   ;;  %171 = vst.msk [vmem:[%s462_s1 - $0x21] ss:$36 sm:$0x1c] %vm3_vm0, %v25_v7  }
  0x77   :  { %172 = vst.msk [vmem:[%s462_s1 - $0x9f] ss:$36 sm:$0xe0] %vm3_vm0, %v25_v7  }
  0x78   :  { %v15_v8 = vpop.permute.xlu0 %14  }
  0x79   :  { %v35_v9 = vpop.permute.xlu1 %34   ;;  %167 = vst.msk [vmem:[%s462_s1 + $0x80] ss:$-126 sm:$0x3] %vm3_vm0, %v15_v8   ;;  %168 = vst.msk [vmem:[%s462_s1 - $0x22] ss:$36 sm:$0x1c] %vm3_vm0, %v15_v8  }
  0x7a   :  { %169 = vst.msk [vmem:[%s462_s1 - $0xa0] ss:$36 sm:$0xe0] %vm3_vm0, %v15_v8   ;;  %173 = vst.msk [vmem:[%s462_s1 + $0x82] ss:$-126 sm:$0x3] %vm3_vm0, %v35_v9  }
  0x7b   :  { %174 = vst.msk [vmem:[%s462_s1 - $0x20] ss:$36 sm:$0x1c] %vm3_vm0, %v35_v9   ;;  %175 = vst.msk [vmem:[%s462_s1 - $0x9e] ss:$36 sm:$0xe0] %vm3_vm0, %v35_v9  }
  0x7c   :  { %v45_v10 = vpop.permute.xlu0 %44  }
  0x7d   :  { %v55_v11 = vpop.permute.xlu1 %54   ;;  %176 = vst.msk [vmem:[%s462_s1 + $0x83] ss:$-126 sm:$0x3] %vm3_vm0, %v45_v10   ;;  %177 = vst.msk [vmem:[%s462_s1 - $0x1f] ss:$36 sm:$0x1c] %vm3_vm0, %v45_v10  }
  0x7e   :  { %178 = vst.msk [vmem:[%s462_s1 - $0x9d] ss:$36 sm:$0xe0] %vm3_vm0, %v45_v10   ;;  %179 = vst.msk [vmem:[%s462_s1 + $0x60] ss:$36 sm:$0x3] %vm3_vm0, %v55_v11  }
  0x7f   :  { %180 = vst.msk [vmem:[%s462_s1 - $0x42] ss:$36 sm:$0x3c] %vm3_vm0, %v55_v11   ;;  %181 = vst.msk [vmem:[%s462_s1 - $0xc0] ss:$36 sm:$0xc0] %vm3_vm0, %v55_v11  }
  0x80   :  { %v65_v12 = vpop.permute.xlu0 %64  }
  0x81   :  { %v75_v13 = vpop.permute.xlu1 %74   ;;  %182 = vst.msk [vmem:[%s462_s1 + $0x61] ss:$36 sm:$0x3] %vm3_vm0, %v65_v12   ;;  %183 = vst.msk [vmem:[%s462_s1 - $0x41] ss:$36 sm:$0x3c] %vm3_vm0, %v65_v12  }
  0x82   :  { %184 = vst.msk [vmem:[%s462_s1 - $0xbf] ss:$36 sm:$0xc0] %vm3_vm0, %v65_v12   ;;  %185 = vst.msk [vmem:[%s462_s1 + $0x62] ss:$36 sm:$0x3] %vm3_vm0, %v75_v13  }
  0x83   :  { %186 = vst.msk [vmem:[%s462_s1 - $0x40] ss:$36 sm:$0x3c] %vm3_vm0, %v75_v13   ;;  %187 = vst.msk [vmem:[%s462_s1 - $0xbe] ss:$36 sm:$0xc0] %vm3_vm0, %v75_v13  }
  0x84   :  { %v85_v14 = vpop.permute.xlu0 %84  }
  0x85   :  { %v95_v15 = vpop.permute.xlu1 %94   ;;  %188 = vst.msk [vmem:[%s462_s1 + $0x63] ss:$36 sm:$0x3] %vm3_vm0, %v85_v14   ;;  %189 = vst.msk [vmem:[%s462_s1 - $0x3f] ss:$36 sm:$0x3c] %vm3_vm0, %v85_v14  }
  0x86   :  { %190 = vst.msk [vmem:[%s462_s1 - $0xbd] ss:$36 sm:$0xc0] %vm3_vm0, %v85_v14   ;;  %191 = vst.msk [vmem:[%s462_s1 + $0x40] ss:$36 sm:$0x7] %vm3_vm0, %v95_v15  }
  0x87   :  { %192 = vst.msk [vmem:[%s462_s1 - $0x62] ss:$36 sm:$0x78] %vm3_vm0, %v95_v15   ;;  %193 = vst.msk [vmem:[%s462_s1 + $0x15] sm:$0x80] %vm3_vm0, %v95_v15  }
  0x88   :  { %v105_v16 = vpop.permute.xlu0 %104  }
  0x89   :  { %v115_v17 = vpop.permute.xlu1 %114   ;;  %194 = vst.msk [vmem:[%s462_s1 + $0x41] ss:$36 sm:$0x7] %vm3_vm0, %v105_v16   ;;  %195 = vst.msk [vmem:[%s462_s1 - $0x61] ss:$36 sm:$0x78] %vm3_vm0, %v105_v16  }
  0x8a   :  { %196 = vst.msk [vmem:[%s462_s1 + $0x16] sm:$0x80] %vm3_vm0, %v105_v16   ;;  %197 = vst.msk [vmem:[%s462_s1 + $0x42] ss:$36 sm:$0x7] %vm3_vm0, %v115_v17  }
  0x8b   :  { %198 = vst.msk [vmem:[%s462_s1 - $0x60] ss:$36 sm:$0x78] %vm3_vm0, %v115_v17   ;;  %199 = vst.msk [vmem:[%s462_s1 + $0x17] sm:$0x80] %vm3_vm0, %v115_v17  }
  0x8c   :  { %v125_v18 = vpop.permute.xlu0 %124  }
  0x8d   :  { %v135_v19 = vpop.permute.xlu1 %134   ;;  %200 = vst.msk [vmem:[%s462_s1 + $0x43] ss:$36 sm:$0x7] %vm3_vm0, %v125_v18   ;;  %201 = vst.msk [vmem:[%s462_s1 - $0x5f] ss:$36 sm:$0x78] %vm3_vm0, %v125_v18  }
  0x8e   :  { %202 = vst.msk [vmem:[%s462_s1 + $0x18] sm:$0x80] %vm3_vm0, %v125_v18   ;;  %203 = vst.msk [vmem:[%s462_s1 + $0x20] ss:$36 sm:$0xf] %vm3_vm0, %v135_v19  }
  0x8f   :  { %204 = vst.msk [vmem:[%s462_s1 - $0x82] ss:$36 sm:$0xf0] %vm3_vm0, %v135_v19  }
  0x90   :  { %v143_v20 = vpop.permute.xlu0 %142  }
  0x91   :  { %v151_v21 = vpop.permute.xlu1 %150   ;;  %205 = vst.msk [vmem:[%s462_s1 + $0x21] ss:$36 sm:$0xf] %vm3_vm0, %v143_v20   ;;  %206 = vst.msk [vmem:[%s462_s1 - $0x81] ss:$36 sm:$0xf0] %vm3_vm0, %v143_v20  }
  0x92   :  { %207 = vst.msk [vmem:[%s462_s1 + $0x22] ss:$36 sm:$0xf] %vm3_vm0, %v151_v21   ;;  %208 = vst.msk [vmem:[%s462_s1 - $0x80] ss:$36 sm:$0xf0] %vm3_vm0, %v151_v21  }
  0x94   :  { %v159_v22 = vpop.permute.xlu0 %158  }
  0x95   :  { %209 = vst.msk [vmem:[%s462_s1 + $0x23] ss:$36 sm:$0xf] %vm3_vm0, %v159_v22   ;;  %210 = vst.msk [vmem:[%s462_s1 - $0x7f] ss:$36 sm:$0xf0] %vm3_vm0, %v159_v22  }

// kernel: tile.35
= control target key start
LH: loop header
LB: loop body
LE: loop exit
PB: predicated region body
PF: predicated region fallthrough
CT: control target
= control target key end

     0   :  { %s28_s0 = inlined_call_operand.vmem [shape: f32[8], index: 0, kind: input, shape index: {}]   ;;  %s29_s1 = inlined_call_operand.vmem [shape: f32[16,8], index: 1, kind: output, shape index: {}]  }
   0x1   :  { %v4_v0 = vld [vmem:[%s28_s0] ss:$0 sm:$0xff] }
   0x2   :  { %5 = vst [vmem:[%s29_s1] sm:$0xff] %v4_v0  ;;  %8 = vst [vmem:[%s29_s1 + $0x8] sm:$0xff] %v4_v0 }

// kernel: tile.36
= control target key start
LH: loop header
LB: loop body
LE: loop exit
PB: predicated region body
PF: predicated region fallthrough
CT: control target
= control target key end

     0   :  { %s131_s10 = smov 120   ;;  %s132_s11 = smov 104   ;;  %vm3_vm0 = vcmask 64512   ;;  %vm9_vm1 = vcmask 1048512   ;;  %vm15_vm2 = vcmask 982912   ;;  %vm21_vm3 = vcmask 917312   ;;  %s207_s0 = inlined_call_operand.vmem [shape: f32[16,8], index: 0, kind: input, shape index: {}]   ;;  %s208_s1 = inlined_call_operand.vmem [shape: f32[1,128], index: 1, kind: output, shape index: {}]  }
   0x1   :  { %v101_v0 = vld [vmem:[%s207_s0 + $0xf] sm:$0x1]   ;;  %v103_v1 = vld [vmem:[%s207_s0 + $0xd] sm:$0x1]   ;;  %v102_v2 = vld [vmem:[%s207_s0 + $0xe] sm:$0x1]  }
   0x2   :  { %7 = vrot.lane.b32.xlu0 %v101_v0, %s131_s10  ;;  %19 = vrot.lane.b32.xlu1 %v103_v1, %s132_s11  ;;  %v104_v3 = vld [vmem:[%s207_s0 + $0xc] sm:$0x1]   ;;  %s133_s16 = smov 112   ;;  %s134_s17 = smov 96   ;;  %v105_v4 = vld [vmem:[%s207_s0 + $0xb] sm:$0x1]  }
   0x3   :  { %v106_v5 = vld [vmem:[%s207_s0 + $0xa] sm:$0x1]   ;;  %v2_v6 = vld [vmem:[%s207_s0] sm:$0x1]   ;;  %s135_s24 = smov 88   ;;  %s136_s25 = smov 80  }
   0x4   :  { %4 = vst.msk [vmem:[#allocation0] sm:$0x1] %vm3_vm0, %v2_v6   ;;  %v107_v7 = vld [vmem:[%s207_s0 + $0x9] sm:$0x1]   ;;  %v108_v8 = vld [vmem:[%s207_s0 + $0x8] sm:$0x1]  }
   0x5   :  { %s137_s30 = smov 72   ;;  %s138_s2 = smov 64   ;;  %v109_v9 = vld [vmem:[%s207_s0 + $0x7] sm:$0x1]   ;;  %v110_v10 = vld [vmem:[%s207_s0 + $0x6] sm:$0x1]  }
   0x6   :  { %13 = vrot.lane.b32.xlu0 %v102_v2, %s133_s16  ;;  %25 = vrot.lane.b32.xlu1 %v104_v3, %s134_s17  ;;  %s139_s7 = smov 56   ;;  %s140_s8 = smov 48   ;;  %v111_v11 = vld [vmem:[%s207_s0 + $0x5] sm:$0x1]   ;;  %v112_v12 = vld [vmem:[%s207_s0 + $0x4] sm:$0x1]  }
   0x7   :  { %s141_s13 = smov 40   ;;  %s142_s14 = smov 32   ;;  %v113_v13 = vld [vmem:[%s207_s0 + $0x3] sm:$0x1]   ;;  %v114_v14 = vld [vmem:[%s207_s0 + $0x2] sm:$0x1]  }
   0x8   :  { %s143_s19 = smov 24   ;;  %s144_s20 = smov 16   ;;  %v115_v15 = vld [vmem:[%s207_s0 + $0x1] sm:$0x1]   ;;  %vm27_vm4 = vcmask 851712   ;;  %vm33_vm5 = vcmask 786112  }
   0x9   :  { %s145_s0 = smov 8   ;;  %vm39_vm6 = vcmask 720512   ;;  %vm45_vm7 = vcmask 654912   ;;  %vm51_vm8 = vcmask 589312   ;;  %vm57_vm9 = vcmask 523712  }
   0xa   :  { %31 = vrot.lane.b32.xlu0 %v105_v4, %s135_s24  ;;  %37 = vrot.lane.b32.xlu1 %v106_v5, %s136_s25  ;;  %vm63_vm10 = vcmask 458112   ;;  %vm69_vm11 = vcmask 392512   ;;  %vm75_vm12 = vcmask 326912   ;;  %vm81_vm13 = vcmask 261312  }
   0xb   :  { %vm87_vm14 = vcmask 195712   ;;  %vm93_vm15 = vcmask 130112  }
   0xe   :  { %43 = vrot.lane.b32.xlu0 %v107_v7, %s137_s30  ;;  %49 = vrot.lane.b32.xlu1 %v108_v8, %s138_s2 }
  0x12   :  { %55 = vrot.lane.b32.xlu0 %v109_v9, %s139_s7  ;;  %61 = vrot.lane.b32.xlu1 %v110_v10, %s140_s8 }
  0x16   :  { %67 = vrot.lane.b32.xlu0 %v111_v11, %s141_s13  ;;  %73 = vrot.lane.b32.xlu1 %v112_v12, %s142_s14 }
  0x1a   :  { %79 = vrot.lane.b32.xlu0 %v113_v13, %s143_s19  ;;  %85 = vrot.lane.b32.xlu1 %v114_v14, %s144_s20 }
  0x1e   :  { %91 = vrot.lane.b32.xlu0 %v115_v15, %s145_s0 }
  0x74   :  { %v8_v16 = vpop.permute.xlu0 %7   ;;  %v20_v17 = vpop.permute.xlu1 %19  }
  0x75   :  { %10 = vst.msk [vmem:[#allocation0] sm:$0x1] %vm9_vm1, %v8_v16  }
  0x78   :  { %v14_v18 = vpop.permute.xlu0 %13   ;;  %v26_v19 = vpop.permute.xlu1 %25  }
  0x79   :  { %16 = vst.msk [vmem:[#allocation0] sm:$0x1] %vm15_vm2, %v14_v18  }
  0x7a   :  { %22 = vst.msk [vmem:[#allocation0] sm:$0x1] %vm21_vm3, %v20_v17  }
  0x7b   :  { %28 = vst.msk [vmem:[#allocation0] sm:$0x1] %vm27_vm4, %v26_v19  }
  0x7c   :  { %v32_v20 = vpop.permute.xlu0 %31   ;;  %v38_v21 = vpop.permute.xlu1 %37  }
  0x7d   :  { %34 = vst.msk [vmem:[#allocation0] sm:$0x1] %vm33_vm5, %v32_v20  }
  0x7e   :  { %40 = vst.msk [vmem:[#allocation0] sm:$0x1] %vm39_vm6, %v38_v21  }
  0x80   :  { %v44_v22 = vpop.permute.xlu0 %43   ;;  %v50_v23 = vpop.permute.xlu1 %49  }
  0x81   :  { %46 = vst.msk [vmem:[#allocation0] sm:$0x1] %vm45_vm7, %v44_v22  }
  0x82   :  { %52 = vst.msk [vmem:[#allocation0] sm:$0x1] %vm51_vm8, %v50_v23  }
  0x84   :  { %v56_v24 = vpop.permute.xlu0 %55   ;;  %v62_v25 = vpop.permute.xlu1 %61  }
  0x85   :  { %58 = vst.msk [vmem:[#allocation0] sm:$0x1] %vm57_vm9, %v56_v24  }
  0x86   :  { %64 = vst.msk [vmem:[#allocation0] sm:$0x1] %vm63_vm10, %v62_v25  }
  0x88   :  { %v68_v26 = vpop.permute.xlu0 %67   ;;  %v74_v27 = vpop.permute.xlu1 %73  }
  0x89   :  { %70 = vst.msk [vmem:[#allocation0] sm:$0x1] %vm69_vm11, %v68_v26  }
  0x8a   :  { %76 = vst.msk [vmem:[#allocation0] sm:$0x1] %vm75_vm12, %v74_v27  }
  0x8c   :  { %v80_v28 = vpop.permute.xlu0 %79   ;;  %v86_v29 = vpop.permute.xlu1 %85  }
  0x8d   :  { %82 = vst.msk [vmem:[#allocation0] sm:$0x1] %vm81_vm13, %v80_v28  }
  0x8e   :  { %88 = vst.msk [vmem:[#allocation0] sm:$0x1] %vm87_vm14, %v86_v29  }
  0x90   :  { %v92_v30 = vpop.permute.xlu0 %91  }
  0x91   :  { %94 = vst.msk [vmem:[#allocation0] sm:$0x1] %vm93_vm15, %v92_v30  }
  0x98   :  { %v98_v31 = vld [vmem:[#allocation0] sm:$0x1] }
  0x99   :  { %100 = vst [vmem:[%s208_s1] sm:$0x1] %v98_v31 }

// kernel: double_conv_forward.5
= control target key start
LH: loop header
LB: loop body
LE: loop exit
PB: predicated region body
PF: predicated region fallthrough
CT: control target
= control target key end

     0   :  { %s308_s12 = smov 0   ;;  %s325_s0 = inlined_call_operand.vmem [shape: f32[32,144], index: 0, kind: input, shape index: {}]   ;;  %s326_s1 = inlined_call_operand.vmem [shape: f32[1,128], index: 1, kind: input, shape index: {}]   ;;  %s327_s2 = inlined_call_operand.vmem [shape: f32[1,128], index: 2, kind: input, shape index: {}]   ;;  %s328_s3 = inlined_call_operand.vmem [shape: f32[32,128], index: 3, kind: output, shape index: {}]  }
   0x1 LB: > { %s257_s13 = sadd.s32 4294967295, %s286_s12   ;;  %p261_p0 = scmp.ge.s32.totalorder %s286_s12, 1  ;;  %s286_s12 = sphi %s308_s12, %s13_s12  }
   0x2   : > { %p139_p1 = scmp.lt.s32.totalorder %s286_s12, 3 }
   0x4   : > { %p140_p2 = pnand %p261_p0, %p139_p1 }
   0x5   : > { %s262_s14 = sshll.u32 (!%p140_p2), %s257_s13, 1  ;;  %v267_v0 = vld [vmem:[%s326_s1] ss:$0 sm:$0xff] (!%p140_p2) }
   0x6   : > { %143 = sbr.rel (%p140_p2) target bundleno = 24 (0x18), region = 32  ;;  %p165_p3 = scmp.lt.s32.totalorder (!%p140_p2), %s262_s14, 3  ;;  %v268_v3 = vld [vmem:[%s327_s2] ss:$0 sm:$0xff] (!%p140_p2) }
   0xd   : > { %s330_s14 = smov (!%p165_p3, %s262_s14), 3 }
   0xe   : > { %s271_s15 = sshll.u32 %s330_s14, 4  ;;  %s266_s23 = sshll.u32 %s330_s14, 3 }
   0xf   : > { %s169_s20 = scalar_lea.vmem %s325_s0, %s271_s15  ;;  %s175_s26 = scalar_lea.vmem %s328_s3, %s266_s23 }
  0x10   : > { %v177_v1 = vld [vmem:[%s169_s20] sm:$0xff]  ;;  %v178_v2 = vld [vmem:[%s169_s20 + $0x10] sm:$0xff] }
  0x11   : > { %v186_v4 = vmul.f32 %v267_v0, %v177_v1  ;;  %v187_v5 = vmul.f32 %v267_v0, %v178_v2 }
  0x13   : > { %v195_v6 = vadd.f32 %v268_v3, %v186_v4  ;;  %v196_v7 = vadd.f32 %v268_v3, %v187_v5 }
  0x15   : > { %v197_v8 = vmax.f32 %v195_v6, 0.0  ;;  %v198_v9 = vmax.f32 %v196_v7, 0.0 }
  0x17   : > { %199 = vst [vmem:[%s175_s26] sm:$0xff] %v197_v8  ;;  %200 = vst [vmem:[%s175_s26 + $0x8] sm:$0xff] %v198_v9 }
  0x18 PF: > { %s13_s12 = sadd.s32 1, %s286_s12  }
  0x19   : > { %p10_p4 = scmp.ge.s32.totalorder %s13_s12, 4  }
  0x1b   :  { %12 = sbr.rel (!%p10_p4) target bundleno = 1 (0x1), region = 62 }

// kernel: double_conv_forward.4
= control target key start
LH: loop header
LB: loop body
LE: loop exit
PB: predicated region body
PF: predicated region fallthrough
CT: control target
= control target key end

     0   :  { %s3395_s15 = smov 0   ;;  %s4154_s0 = inlined_call_operand.vmem [shape: bf16[4,182,4], index: 0, kind: input, shape index: {}]   ;;  %s4155_s1 = inlined_call_operand.vmem [shape: bf16[3,3,4,8], index: 1, kind: input, shape index: {}]   ;;  %s4156_s2 = inlined_call_operand.vmem [shape: f32[144,1], index: 2, kind: input, shape index: {}]   ;;  %s4157_s3 = inlined_call_operand.vmem [shape: f32[4,144,8], index: 3, kind: output, shape index: {0}]   ;;  %s4158_s4 = inlined_call_operand.vmem [shape: f32[4,2,8], index: 4, kind: output, shape index: {1}]  }
   0x1 LB: > { %s2471_s16 = sadd.s32 4294967295, %s3365_s15   ;;  %p2475_p0 = scmp.ge.s32.totalorder %s3365_s15, 1  ;;  %s3365_s15 = sphi %s3395_s15, %s15_s15  }
   0x2   : > { %p165_p1 = scmp.lt.s32.totalorder %s3365_s15, 5 }
   0x4   : > { %p166_p2 = pnand %p2475_p0, %p165_p1 }
   0x5   : > { %vm385_vm0 = vcmask (!%p166_p2), 1041408   ;;  %v2539_v0 = vld [vmem:[%s4155_s1 + $0x8] sm:$0x3] (!%p166_p2)  ;;  %v2479_v1 = vld [vmem:[%s4155_s1 + $0x2] sm:$0x3] (!%p166_p2)  ;;  %v3367_v2 = vmov (!%p166_p2), 0.0  }
   0x6   : > { %169 = sbr.rel (%p166_p2) target bundleno = 585 (0x249), region = 32  ;;  %2847 = vmatprep.subr.bf16.mxu0 (!%p166_p2), %v3367_v2  ;;  %2695 = vmatprep.subr.bf16.mxu1 (!%p166_p2), %v3367_v2  ;;  %v3412_v3 = vsel (!%p166_p2), %vm385_vm0, %v2539_v0, 0  ;;  %v387_v4 = vsel (!%p166_p2), %vm385_vm0, %v2479_v1, 0  ;;  %p195_p3 = scmp.lt.s32.totalorder (!%p166_p2), %s2471_s16, 3  ;;  %vm3368_vm1 = vmmov (!%p166_p2), 0   ;;  %vm357_vm4 = vcmask (!%p166_p2), 31744  }
   0x7   : > { %2848 = vmatpush3.bf16.msra.mxu0 (!%p166_p2), %v3412_v3  ;;  %2696 = vmatpush3.bf16.msra.mxu1 (!%p166_p2), %v387_v4  ;;  %vm280_vm2 = vsmask.f32 (!%p166_p2), 7424  ;;  %vm1046_vm3 = vsmask.f32 (!%p166_p2), 6400  ;;  %v228_v16 = vld [vmem:[%s4155_s1] sm:$0x3] (!%p166_p2) }
   0x8   : > { %2697 = vmatprep.mubr.msk.bf16.mxu1 (!%p166_p2), %vm3368_vm1, %v3367_v2  ;;  %2849 = vmatprep.mubr.msk.bf16.mxu0 (!%p166_p2), %vm3368_vm1, %v3367_v2  ;;  %v2550_v24 = vld [vmem:[%s4155_s1 + $0xa] sm:$0x3] (!%p166_p2)  ;;  %v513_v33 = vsel (!%p166_p2), %vm385_vm0, %v228_v16, 0  ;;  %vm1295_vm5 = vcmask (!%p166_p2), 1045504   ;;  %vm626_vm6 = vcmask (!%p166_p2), 1046528   ;;  %vm1964_vm8 = vcmask (!%p166_p2), 1044480  }
   0x9   : > { %2885 = vmatprep.subr.bf16.mxu0 (!%p166_p2), %v3367_v2  ;;  %2733 = vmatprep.subr.bf16.mxu1 (!%p166_p2), %v3367_v2  ;;  %v1343_v41 = vsel (!%p166_p2), %vm385_vm0, %v2550_v24, 0  ;;  %vm1715_vm7 = vsmask.f32 (!%p166_p2), 5376  ;;  %vm2137_vm9 = vcmask (!%p166_p2), 64512   ;;  %vm2323_vm10 = vcmask (!%p166_p2), 57344  }
   0xd   : > { %s4160_s16 = smov (!%p195_p3, %s2471_s16), 3 }
   0xe   : > { %s3309_s21 = smul.u32 92, %s4160_s16  ;;  %s2478_s6 = sshll.u32 %s4160_s16, 1 }
   0xf   : > { %s208_s9 = scalar_lea.vmem %s4158_s4, %s2478_s6 }
  0x10   : > { %s3428_s24 = scalar_lea.vmem %s4154_s0, %s3309_s21 }
  0x11   : > { %v210_v5 = vld [vmem:[%s3428_s24] sm:$0xf]  ;;  %v3432_v6 = vld [vmem:[%s3428_s24 + $0x4] sm:$0xf]  ;;  %v3438_v8 = vld [vmem:[%s3428_s24 + $0x8] sm:$0xff]  }
  0x12   : > { %v3435_v7 = vcombine.low %v210_v5, %v3432_v6  ;;  %v799_v9 = vld [vmem:[%s3428_s24 + $0x8] sm:$0xe]  ;;  %v3442_v10 = vld [vmem:[%s3428_s24 + $0xc] sm:$0xf]  ;;  %v289_v13 = vshll.u32 %v3438_v8, 16  ;;  %v3451_v15 = vld [vmem:[%s3428_s24 + $0x10] sm:$0xff]  }
  0x13   : > { %v3448_v14 = vcombine.low %v799_v9, %v3442_v10  ;;  %v3457_v17 = vld [vmem:[%s3428_s24 + $0x10] sm:$0xff]   ;;  %v1056_v22 = vshrl.u32 %v3451_v15, 16  ;;  %v1059_v23 = vshll.u32 %v3451_v15, 16  ;;  %v293_v25 = vshrl.u32 %v3438_v8, 16  ;;  %v3468_v26 = vld [vmem:[%s3428_s24 + $0x18] sm:$0xff]   ;;  %v3477_v40 = vld [vmem:[%s3428_s24 + $0x20] sm:$0xff]  }
  0x14   : > { %v282_v11 = vshrl.u32 %v3435_v7, 16  ;;  %v284_v12 = vshll.u32 %v3435_v7, 16  ;;  %v291_v19 = vrot.slane %v289_v13, 1  ;;  %v297_v30 = vshll.u32 %v3457_v17, 16  ;;  %v3483_v45 = vld [vmem:[%s3428_s24 + $0x18] sm:$0xff]   ;;  %v3499_v56 = vld [vmem:[%s3428_s24 + $0x28] sm:$0xff]  }
  0x15   : > { %v1048_v20 = vshrl.u32 %v3448_v14, 16  ;;  %v1051_v21 = vshll.u32 %v3448_v14, 16  ;;  %v1058_v31 = vrot.slane %v1056_v22, 1  ;;  %v1061_v32 = vrot.slane %v1059_v23, 2  ;;  %v3504_v59 = vld [vmem:[%s3428_s24 + $0x20] sm:$0xff]   ;;  %v3522_v16 = vld [vmem:[%s3428_s24 + $0x28] sm:$0xff]  }
  0x16   : > { %v286_v18 = vrot.slane %v284_v12, 1  ;;  %v1065_v34 = vshrl.u32 %v3468_v26, 16  ;;  %v1068_v37 = vshll.u32 %v3468_v26, 16  ;;  %v295_v42 = vor.u32 %v293_v25, %v291_v19 }
  0x17   : > { %v1050_v28 = vrot.slane %v1048_v20, 1  ;;  %v1053_v29 = vrot.slane %v1051_v21, 2  ;;  %v1062_v38 = vor.u32 %v1061_v32, %v1058_v31  ;;  %v299_v43 = vrot.slane %v297_v30, 1  ;;  %v3537_v30 = vld [vmem:[%s3428_s24 + $0x30] sm:$0xff]  }
  0x18   : > { %v287_v27 = vor.u32 %v286_v18, %v282_v11  ;;  %v1067_v39 = vrot.slane %v1065_v34, 1  ;;  %v1070_v44 = vrot.slane %v1068_v37, 2  ;;  %v1074_v48 = vshrl.u32 %v3477_v40, 16  ;;  %v3517_v11 = vld [vmem:[%s3428_s24 + $0x30] sm:$0xff]  }
  0x19   : > { %v1054_v36 = vor.u32 %v1053_v29, %v1050_v28  ;;  %v1077_v49 = vshll.u32 %v3477_v40, 16  ;;  %v300_v50 = vsel %vm280_vm2, %v295_v42, %v299_v43  ;;  %v301_v51 = vshrl.u32 %v3457_v17, 16 }
  0x1a   : > { %v292_v35 = vsel %vm280_vm2, %v287_v27, %v291_v19  ;;  %v1071_v47 = vor.u32 %v1070_v44, %v1067_v39  ;;  %v305_v52 = vshll.u32 %v3483_v45, 16  ;;  %v1076_v54 = vrot.slane %v1074_v48, 1 }
  0x1b   : > { %2698 = vmatmul.mubr.msk.bf16.vlgmr.msra.gmra.mrb[0].mxu1 %vm357_vm4, %v292_v35  ;;  %v1063_v46 = vsel %vm1046_vm3, %v1054_v36, %v1062_v38  ;;  %v1079_v55 = vrot.slane %v1077_v49, 2  ;;  %v303_v57 = vor.u32 %v301_v51, %v299_v43  ;;  %v1083_v61 = vshrl.u32 %v3499_v56, 16  ;;  %v1289_v35 = vld [vmem:[%s3428_s24 + $0x8] sm:$0xc] }
  0x1c   : > { %2701 = vmatprep.mubr.msk.bf16.mxu1 %vm3368_vm1, %v3367_v2  ;;  %2734 = vmatpush3.bf16.msra.mxu1 %v513_v33  ;;  %v1072_v53 = vsel %vm1046_vm3, %v1062_v38, %v1071_v47  ;;  %v307_v58 = vrot.slane %v305_v52, 1  ;;  %v1086_v62 = vshll.u32 %v3499_v56, 16  ;;  %v309_v0 = vshrl.u32 %v3483_v45, 16  ;;  %v3573_v52 = vld [vmem:[%s3428_s24 + $0x40] sm:$0xff]  }
  0x1d   : > { %2771 = vmatprep.subr.bf16.mxu1 %v3367_v2  ;;  %2850 = vmatmul.mubr.msk.bf16.vlgmr.msra.gmra.mrb[0].mxu0 %vm357_vm4, %v1063_v46  ;;  %v1080_v60 = vor.u32 %v1079_v55, %v1076_v54  ;;  %v313_v1 = vshll.u32 %v3504_v59, 16  ;;  %v1085_v5 = vrot.slane %v1083_v61, 1  ;;  %v1092_v19 = vshrl.u32 %v3517_v11, 16 }
  0x1e   : > { %2886 = vmatpush3.bf16.msra.mxu0 %v1343_v41  ;;  %2853 = vmatprep.mubr.msk.bf16.mxu0 %vm3368_vm1, %v3367_v2  ;;  %v308_v63 = vsel %vm280_vm2, %v303_v57, %v307_v58  ;;  %v1088_v9 = vrot.slane %v1086_v62, 2  ;;  %v311_v12 = vor.u32 %v309_v0, %v307_v58  ;;  %v1095_v20 = vshll.u32 %v3517_v11, 16  ;;  %v3555_v41 = vld [vmem:[%s3428_s24 + $0x38] sm:$0xff]   ;;  %v3588_v62 = vld [vmem:[%s3428_s24 + $0x48] ss:$0 sps:$4 sm:$0x11]  }
  0x1f   : > { %2923 = vmatprep.subr.bf16.mxu0 %v3367_v2  ;;  %v1081_v4 = vsel %vm1046_vm3, %v1071_v47, %v1080_v60  ;;  %v315_v13 = vrot.slane %v313_v1, 1  ;;  %v317_v22 = vshrl.u32 %v3504_v59, 16  ;;  %v321_v23 = vshll.u32 %v3522_v16, 16  ;;  %v2561_v47 = vld [vmem:[%s4155_s1 + $0xc] sm:$0x3] }
  0x20   : > { %v1089_v18 = vor.u32 %v1088_v9, %v1085_v5  ;;  %v1094_v25 = vrot.slane %v1092_v19, 1  ;;  %v1097_v27 = vrot.slane %v1095_v20, 2  ;;  %v325_v33 = vshrl.u32 %v3522_v16, 16  ;;  %v2508_v20 = vld [vmem:[%s4155_s1 + $0x4] sm:$0x3] }
  0x21   : > { %v316_v21 = vsel %vm280_vm2, %v311_v12, %v315_v13  ;;  %v319_v28 = vor.u32 %v317_v22, %v315_v13  ;;  %v323_v29 = vrot.slane %v321_v23, 1  ;;  %v329_v34 = vshll.u32 %v3537_v30, 16 }
  0x22   : > { %v1090_v24 = vsel %vm1046_vm3, %v1080_v60, %v1089_v18  ;;  %v3542_v31 = vor.u32 %v1097_v27, %v1094_v25  ;;  %v2551_v37 = vcombine.low %v1289_v35, %v3442_v10  ;;  %v1297_v43 = vrot.slane %v3451_v15, 2  ;;  %v3635_v27 = vld [vmem:[%s3428_s24 + $0x40] sm:$0xff]   ;;  %v3659_v35 = vld [vmem:[%s3428_s24 + $0x50] ss:$0 sps:$4 sm:$0x33]  }
  0x23   : > { %2702 = vmatmul.mubr.msk.bf16.gmra.mrb[4].mxu1 %vm357_vm4, %v300_v50  ;;  %v324_v32 = vsel %vm280_vm2, %v319_v28, %v323_v29  ;;  %v327_v38 = vor.u32 %v325_v33, %v323_v29  ;;  %v331_v39 = vrot.slane %v329_v34, 1  ;;  %v333_v10 = vshrl.u32 %v3537_v30, 16 }
  0x24   : > { %2705 = vmatprep.mubr.msk.bf16.mxu1 %vm3368_vm1, %v3367_v2  ;;  %v1099_v36 = vsel %vm1046_vm3, %v1089_v18, %v3542_v31  ;;  %v1296_v42 = vrot.slane %v2551_v37, 2  ;;  %v337_v46 = vshll.u32 %v3555_v41, 16  ;;  %v1584_v49 = vsel %vm385_vm0, %v2561_v47, 0  ;;  %v1468_v37 = vld [vmem:[%s3428_s24 + $0x10] sm:$0xc] }
  0x25   : > { %2854 = vmatmul.mubr.msk.bf16.gmra.mrb[4].mxu0 %vm357_vm4, %v1072_v53  ;;  %v332_v44 = vsel %vm280_vm2, %v327_v38, %v331_v39  ;;  %v335_v50 = vor.u32 %v333_v10, %v331_v39  ;;  %v1299_v53 = vrot.slane %v3468_v26, 2  ;;  %v341_v55 = vshrl.u32 %v3555_v41, 16  ;;  %v3669_v38 = vld [vmem:[%s3428_s24 + $0x14] sm:$0xf] }
  0x26   : > { %2857 = vmatprep.mubr.msk.bf16.mxu0 %vm3368_vm1, %v3367_v2  ;;  %v1298_v48 = vsel %vm1295_vm5, %v1296_v42, %v1297_v43  ;;  %v339_v51 = vrot.slane %v337_v46, 1  ;;  %v345_v57 = vshll.u32 %v3573_v52, 16  ;;  %v349_v1 = vshrl.u32 %v3573_v52, 16  ;;  %v2581_v46 = vld [vmem:[%s4155_s1 + $0xe] sm:$0x3] }
  0x27   : > { %v1300_v58 = vsel %vm1295_vm5, %v1297_v43, %v1299_v53  ;;  %v1303_v13 = vrot.slane %v3499_v56, 2  ;;  %v674_v22 = vsel %vm385_vm0, %v2508_v20, 0  ;;  %v1309_v28 = vrot.slane %v3635_v27, 2  ;;  %v3678_v43 = vld [vmem:[%s3428_s24 + $0x18] sm:$0xff]  }
  0x28   : > { %v340_v54 = vsel %vm280_vm2, %v335_v50, %v339_v51  ;;  %v343_v60 = vor.u32 %v341_v55, %v339_v51  ;;  %v347_v61 = vrot.slane %v345_v57, 1  ;;  %v3675_v42 = vcombine.low %v1468_v37, %v3669_v38  ;;  %v3720_v57 = vld [vmem:[%s3428_s24 + $0x30] sm:$0xff]  }
  0x29   : > { %v1538_v10 = vrot.slane %v3678_v43, 2  ;;  %v636_v37 = vrot.slane %v3522_v16, 1 }
  0x2a   : > { %v348_v0 = vsel %vm280_vm2, %v343_v60, %v347_v61  ;;  %v351_v9 = vor.u32 %v349_v1, %v347_v61  ;;  %v1544_v60 = vrot.slane %v3720_v57, 2 }
  0x2b   : > { %2706 = vmatmul.mubr.msk.bf16.gmra.mrb[8].mxu1 %vm357_vm4, %v308_v63  ;;  %v1301_v63 = vrot.slane %v3477_v40, 2 }
  0x2c   : > { %2709 = vmatprep.mubr.msk.bf16.mxu1 %vm3368_vm1, %v3367_v2 }
  0x2d   : > { %2858 = vmatmul.mubr.msk.bf16.gmra.mrb[8].mxu0 %vm357_vm4, %v1081_v4  ;;  %v353_v4 = vshll.u32 %v3588_v62, 16  ;;  %v1302_v5 = vsel %vm1295_vm5, %v1299_v53, %v1301_v63  ;;  %v1304_v19 = vsel %vm1295_vm5, %v1301_v63, %v1303_v13  ;;  %v3708_v53 = vld [vmem:[%s3428_s24 + $0x28] sm:$0xff]  }
  0x2e   : > { %2861 = vmatprep.mubr.msk.bf16.mxu0 %vm3368_vm1, %v3367_v2 }
  0x2f   : > { %v355_v12 = vrot.slane %v353_v4, 1  ;;  %v628_v4 = vrot.slane %v3438_v8, 1 }
  0x31   : > { %v356_v18 = vsel %vm280_vm2, %v351_v9, %v355_v12 }
  0x33   : > { %2710 = vmatmul.mubr.msk.bf16.gmra.mrb[12].mxu1 %vm357_vm4, %v316_v21  ;;  %v1305_v21 = vrot.slane %v3517_v11, 2 }
  0x34   : > { %2713 = vmatprep.mubr.msk.bf16.mxu1 %vm3368_vm1, %v3367_v2 }
  0x35   : > { %2862 = vmatmul.mubr.msk.bf16.gmra.mrb[12].mxu0 %vm357_vm4, %v1090_v24  ;;  %v1306_v23 = vsel %vm1295_vm5, %v1303_v13, %v1305_v21  ;;  %v3622_v24 = vld [vmem:[%s3428_s24 + $0x38] sm:$0xff]   ;;  %v3751_v13 = vld [vmem:[%s3428_s24 + $0x40] sm:$0xff]  }
  0x36   : > { %2865 = vmatprep.mubr.msk.bf16.mxu0 %vm3368_vm1, %v3367_v2  ;;  %v1307_v25 = vrot.slane %v3622_v24, 2 }
  0x38   : > { %v1310_v29 = vsel %vm1295_vm5, %v1307_v25, %v1309_v28 }
  0x3b   : > { %2714 = vmatmul.mubr.msk.bf16.gmra.mrb[16].mxu1 %vm357_vm4, %v324_v32  ;;  %v3647_v32 = vld [vmem:[%s3428_s24 + $0x48] sm:$0xff]  }
  0x3c   : > { %2717 = vmatprep.mubr.msk.bf16.mxu1 %vm3368_vm1, %v3367_v2  ;;  %v1311_v33 = vrot.slane %v3647_v32, 2 }
  0x3d   : > { %2866 = vmatmul.mubr.msk.bf16.gmra.mrb[16].mxu0 %vm357_vm4, %v1099_v36  ;;  %v1313_v36 = vrot.slane %v3659_v35, 2 }
  0x3e   : > { %2887 = vmatprep.mubr.msk.bf16.mxu0 %vm3368_vm1, %v3367_v2  ;;  %v1312_v34 = vsel %vm1295_vm5, %v1309_v28, %v1311_v33  ;;  %v3778_v28 = vld [vmem:[%s3428_s24 + $0x50] sm:$0xff]  }
  0x3f   : > { %v1314_v39 = vsel %vm1295_vm5, %v1311_v33, %v1313_v36 }
  0x43   : > { %2718 = vmatmul.mubr.msk.bf16.gmra.mrb[20].mxu1 %vm357_vm4, %v332_v44  ;;  %v1537_v44 = vrot.slane %v3675_v42, 2 }
  0x44   : > { %2721 = vmatprep.mubr.msk.bf16.mxu1 %vm3368_vm1, %v3367_v2 }
  0x45   : > { %2888 = vmatmul.mubr.msk.bf16.vlgmr.msra.gmra.mrb[0].mxu0 %vm357_vm4, %v1298_v48  ;;  %v1539_v47 = vsel %vm1295_vm5, %v1537_v44, %v1538_v10  ;;  %v3694_v48 = vld [vmem:[%s3428_s24 + $0x20] sm:$0xff]   ;;  %v1720_v44 = vshll.u32 %v3675_v42, 16 }
  0x46   : > { %2924 = vmatpush3.bf16.msra.mxu0 %v1584_v49  ;;  %2891 = vmatprep.mubr.msk.bf16.mxu0 %vm3368_vm1, %v3367_v2  ;;  %v1833_v49 = vsel %vm385_vm0, %v2581_v46, 0  ;;  %v1540_v50 = vrot.slane %v3694_v48, 2  ;;  %v1728_v46 = vshll.u32 %v3678_v43, 16 }
  0x47   : > { %2961 = vmatprep.subr.bf16.mxu0 %v3367_v2 }
  0x48   : > { %v1541_v51 = vsel %vm1295_vm5, %v1538_v10, %v1540_v50  ;;  %v1725_v10 = vshrl.u32 %v3678_v43, 16 }
  0x4b   : > { %2722 = vmatmul.mubr.msk.bf16.gmra.mrb[24].mxu1 %vm357_vm4, %v340_v54  ;;  %v1542_v54 = vrot.slane %v3708_v53, 2 }
  0x4c   : > { %2725 = vmatprep.mubr.msk.bf16.mxu1 %vm3368_vm1, %v3367_v2 }
  0x4d   : > { %2892 = vmatmul.mubr.msk.bf16.gmra.mrb[4].mxu0 %vm357_vm4, %v1300_v58  ;;  %v1543_v55 = vsel %vm1295_vm5, %v1540_v50, %v1542_v54  ;;  %v620_v58 = vld [vmem:[%s3428_s24] sm:$0xe]  ;;  %v1545_v63 = vsel %vm1295_vm5, %v1542_v54, %v1544_v60  ;;  %v1722_v50 = vrot.slane %v1720_v44, 3  ;;  %v1730_v54 = vrot.slane %v1728_v46, 3  ;;  %v2161_v46 = vld [vmem:[%s4156_s2 + $0x28] sm:$0xff] }
  0x4e   : > { %2895 = vmatprep.mubr.msk.bf16.mxu0 %vm3368_vm1, %v3367_v2  ;;  %v2509_v61 = vcombine.low %v620_v58, %v3432_v6  ;;  %v2519_v6 = vld [vmem:[%s4155_s1 + $0x6] sm:$0x3]  ;;  %v644_v44 = vrot.slane %v3588_v62, 1 }
  0x4f   : > { %v915_v12 = vsel %vm385_vm0, %v2519_v6, 0 }
  0x50   : > { %v627_v1 = vrot.slane %v2509_v61, 1  ;;  %v1737_v61 = vshll.u32 %v3694_v48, 16 }
  0x52   : > { %v629_v9 = vsel %vm626_vm6, %v627_v1, %v628_v4  ;;  %v2592_v1 = vld [vmem:[%s4155_s1 + $0x10] sm:$0x3]  ;;  %v1739_v6 = vrot.slane %v1737_v61, 3  ;;  %v2164_v61 = vld [vmem:[%s4156_s2 + $0x40] sm:$0xff] }
  0x53   : > { %2726 = vmatmul.mubr.msk.bf16.gmra.mrb[28].mxu1 %vm357_vm4, %v348_v0  ;;  %v3734_v0 = vld [vmem:[%s3428_s24 + $0x38] sm:$0xff]  }
  0x54   : > { %2729 = vmatprep.mubr.msk.bf16.mxu1 %vm3368_vm1, %v3367_v2  ;;  %v1764_v62 = vshll.u32 %v3734_v0, 16 }
  0x55   : > { %2896 = vmatmul.mubr.msk.bf16.gmra.mrb[8].mxu0 %vm357_vm4, %v1302_v5  ;;  %v1546_v5 = vrot.slane %v3734_v0, 2 }
  0x56   : > { %2899 = vmatprep.mubr.msk.bf16.mxu0 %vm3368_vm1, %v3367_v2 }
  0x5b   : > { %2730 = vmatmul.mubr.msk.bf16.gmra.mrb[32].mxu1 %vm357_vm4, %v356_v18  ;;  %v630_v18 = vrot.slane %v3457_v17, 1 }
  0x5c   : > { %2735 = vmatprep.mubr.msk.bf16.mxu1 %vm3368_vm1, %v3367_v2 }
  0x5d   : > { %2900 = vmatmul.mubr.msk.bf16.gmra.mrb[12].mxu0 %vm357_vm4, %v1304_v19  ;;  %v1548_v19 = vrot.slane %v3751_v13, 2  ;;  %v631_v20 = vsel %vm626_vm6, %v628_v4, %v630_v18 }
  0x5e   : > { %2903 = vmatprep.mubr.msk.bf16.mxu0 %vm3368_vm1, %v3367_v2 }
  0x63   : > { %2736 = vmatmul.mubr.msk.bf16.vlgmr.msra.gmra.mrb[0].mxu1 %vm357_vm4, %v3435_v7  ;;  %v1308_v7 = vsel %vm1295_vm5, %v1305_v21, %v1307_v25  ;;  %v1549_v21 = vsel %vm1295_vm5, %v1546_v5, %v1548_v19 }
  0x64   : > { %2739 = vmatprep.mubr.msk.bf16.mxu1 %vm3368_vm1, %v3367_v2  ;;  %2772 = vmatpush3.bf16.msra.mxu1 %v674_v22  ;;  %v3765_v22 = vld [vmem:[%s3428_s24 + $0x48] sm:$0xff]  }
  0x65   : > { %2809 = vmatprep.subr.bf16.mxu1 %v3367_v2  ;;  %2904 = vmatmul.mubr.msk.bf16.gmra.mrb[16].mxu0 %vm357_vm4, %v1306_v23  ;;  %v1550_v23 = vrot.slane %v3765_v22, 2 }
  0x66   : > { %2907 = vmatprep.mubr.msk.bf16.mxu0 %vm3368_vm1, %v3367_v2 }
  0x6b   : > { %2740 = vmatmul.mubr.msk.bf16.gmra.mrb[4].mxu1 %vm357_vm4, %v3438_v8  ;;  %v1547_v8 = vsel %vm1295_vm5, %v1544_v60, %v1546_v5  ;;  %v1734_v60 = vshrl.u32 %v3694_v48, 16  ;;  %v2012_v5 = vsel %vm385_vm0, %v2592_v1, 0 }
  0x6c   : > { %2743 = vmatprep.mubr.msk.bf16.mxu1 %vm3368_vm1, %v3367_v2 }
  0x6d   : > { %2908 = vmatmul.mubr.msk.bf16.gmra.mrb[20].mxu0 %vm357_vm4, %v1308_v7  ;;  %v1551_v7 = vsel %vm1295_vm5, %v1548_v19, %v1550_v23  ;;  %v1736_v4 = vrot.slane %v1734_v60, 2  ;;  %v869_v60 = vrot.slane %v3451_v15, 1  ;;  %v1773_v15 = vshll.u32 %v3751_v13, 16 }
  0x6e   : > { %2911 = vmatprep.mubr.msk.bf16.mxu0 %vm3368_vm1, %v3367_v2 }
  0x73   : > { %2744 = vmatmul.mubr.msk.bf16.gmra.mrb[8].mxu1 %vm357_vm4, %v3457_v17  ;;  %v632_v17 = vrot.slane %v3483_v45, 1 }
  0x74   : > { %2747 = vmatprep.mubr.msk.bf16.mxu1 %vm3368_vm1, %v3367_v2 }
  0x75   : > { %2912 = vmatmul.mubr.msk.bf16.gmra.mrb[24].mxu0 %vm357_vm4, %v1310_v29  ;;  %v633_v25 = vsel %vm626_vm6, %v630_v18, %v632_v17  ;;  %v1552_v29 = vrot.slane %v3778_v28, 2  ;;  %v1746_v18 = vshll.u32 %v3708_v53, 16 }
  0x76   : > { %2915 = vmatprep.mubr.msk.bf16.mxu0 %vm3368_vm1, %v3367_v2 }
  0x77   : > { %v1553_v36 = vsel %vm1295_vm5, %v1550_v23, %v1552_v29  ;;  %v2156_v23 = vld [vmem:[%s4156_s2] sm:$0xff] }
  0x7b   : > { %2748 = vmatmul.mubr.msk.bf16.gmra.mrb[12].mxu1 %vm357_vm4, %v3483_v45  ;;  %v634_v45 = vrot.slane %v3504_v59, 1 }
  0x7c   : > { %2751 = vmatprep.mubr.msk.bf16.mxu1 %vm3368_vm1, %v3367_v2 }
  0x7d   : > { %2916 = vmatmul.mubr.msk.bf16.gmra.mrb[28].mxu0 %vm357_vm4, %v1312_v34  ;;  %v635_v33 = vsel %vm626_vm6, %v632_v17, %v634_v45  ;;  %v3355_v34 = vld [vmem:[%s3428_s24 + $0x58] ss:$0 sps:$4 sm:$0x33]   ;;  %v1748_v17 = vrot.slane %v1746_v18, 3  ;;  %v2168_v18 = vld [vmem:[%s4156_s2 + $0x60] sm:$0xff] }
  0x7e   : > { %2919 = vmatprep.mubr.msk.bf16.mxu0 %vm3368_vm1, %v3367_v2 }
  0x83   : > { %2752 = vmatmul.mubr.msk.bf16.gmra.mrb[16].mxu1 %vm357_vm4, %v3504_v59  ;;  %v1554_v59 = vrot.slane %v3355_v34, 2  ;;  %v2157_v34 = vld [vmem:[%s4156_s2 + $0x8] sm:$0xff] }
  0x84   : > { %2755 = vmatprep.mubr.msk.bf16.mxu1 %vm3368_vm1, %v3367_v2 }
  0x85   : > { %2920 = vmatmul.mubr.msk.bf16.gmra.mrb[32].mxu0 %vm357_vm4, %v1314_v39  ;;  %v1717_v39 = vshrl.u32 %v3675_v42, 16 }
  0x86   : > { %2925 = vmatprep.mubr.msk.bf16.mxu0 %vm3368_vm1, %v3367_v2 }
  0x8b   : > { %2756 = vmatmul.mubr.msk.bf16.gmra.mrb[20].mxu1 %vm357_vm4, %v3522_v16  ;;  %v1719_v16 = vrot.slane %v1717_v39, 2 }
  0x8c   : > { %2759 = vmatprep.mubr.msk.bf16.mxu1 %vm3368_vm1, %v3367_v2 }
  0x8d   : > { %2926 = vmatmul.mubr.msk.bf16.vlgmr.msra.gmra.mrb[0].mxu0 %vm357_vm4, %v1539_v47  ;;  %v637_v47 = vsel %vm626_vm6, %v634_v45, %v636_v37  ;;  %v1723_v42 = vor.u32 %v1722_v50, %v1719_v16  ;;  %v1752_v45 = vshrl.u32 %v3720_v57, 16  ;;  %v2162_v50 = vld [vmem:[%s4156_s2 + $0x30] sm:$0xff] }
  0x8e   : > { %2962 = vmatpush3.bf16.msra.mxu0 %v1833_v49  ;;  %2929 = vmatprep.mubr.msk.bf16.mxu0 %vm3368_vm1, %v3367_v2  ;;  %v1555_v49 = vsel %vm1295_vm5, %v1552_v29, %v1554_v59  ;;  %v1755_v29 = vshll.u32 %v3720_v57, 16 }
  0x8f   : > { %2999 = vmatprep.subr.bf16.mxu0 %v3367_v2  ;;  %v1754_v59 = vrot.slane %v1752_v45, 2  ;;  %v873_v45 = vrot.slane %v3477_v40, 1  ;;  %v1791_v40 = vshll.u32 %v3778_v28, 16 }
  0x90   : > { %v1757_v39 = vrot.slane %v1755_v29, 3  ;;  %v2172_v29 = vld [vmem:[%s4156_s2 + $0x80] sm:$0xff] }
  0x93   : > { %2760 = vmatmul.mubr.msk.bf16.gmra.mrb[24].mxu1 %vm357_vm4, %v3537_v30 }
  0x94   : > { %2763 = vmatprep.mubr.msk.bf16.mxu1 %vm3368_vm1, %v3367_v2 }
  0x95   : > { %2930 = vmatmul.mubr.msk.bf16.gmra.mrb[4].mxu0 %vm357_vm4, %v1541_v51  ;;  %v1727_v51 = vrot.slane %v1725_v10, 2  ;;  %v2160_v10 = vld [vmem:[%s4156_s2 + $0x20] sm:$0xff] }
  0x96   : > { %2933 = vmatprep.mubr.msk.bf16.mxu0 %vm3368_vm1, %v3367_v2 }
  0x97   : > { %v1731_v58 = vor.u32 %v1730_v54, %v1727_v51  ;;  %v2163_v51 = vld [vmem:[%s4156_s2 + $0x38] sm:$0xff] }
  0x9b   : > { %2764 = vmatmul.mubr.msk.bf16.gmra.mrb[28].mxu1 %vm357_vm4, %v3555_v41 }
  0x9c   : > { %2767 = vmatprep.mubr.msk.bf16.mxu1 %vm3368_vm1, %v3367_v2 }
  0x9d   : > { %2934 = vmatmul.mubr.msk.bf16.gmra.mrb[8].mxu0 %vm357_vm4, %v1543_v55  ;;  %v638_v55 = vrot.slane %v3537_v30, 1  ;;  %v1732_v30 = vsel %vm1715_vm7, %v1723_v42, %v1731_v58  ;;  %v1766_v42 = vrot.slane %v1764_v62, 3 }
  0x9e   : > { %2937 = vmatprep.mubr.msk.bf16.mxu0 %vm3368_vm1, %v3367_v2 }
  0xa3   : > { %2768 = vmatmul.mubr.msk.bf16.gmra.mrb[32].mxu1 %vm357_vm4, %v3573_v52 }
  0xa4   : > { %2773 = vmatprep.mubr.msk.bf16.mxu1 %vm3368_vm1, %v3367_v2 }
  0xa5   : > { %2938 = vmatmul.mubr.msk.bf16.gmra.mrb[12].mxu0 %vm357_vm4, %v1545_v63  ;;  %v639_v63 = vsel %vm626_vm6, %v636_v37, %v638_v55 }
  0xa6   : > { %2941 = vmatprep.mubr.msk.bf16.mxu0 %vm3368_vm1, %v3367_v2 }
  0xab   : > { %2774 = vmatmul.mubr.msk.bf16.vlgmr.msra.gmra.mrb[0].mxu1 %vm357_vm4, %v629_v9  ;;  %v640_v9 = vrot.slane %v3555_v41, 1  ;;  %v642_v41 = vrot.slane %v3573_v52, 1 }
  0xac   : > { %2777 = vmatprep.mubr.msk.bf16.mxu1 %vm3368_vm1, %v3367_v2  ;;  %2810 = vmatpush3.bf16.msra.mxu1 %v915_v12  ;;  %v1740_v12 = vor.u32 %v1739_v6, %v1736_v4  ;;  %v2166_v4 = vld [vmem:[%s4156_s2 + $0x50] sm:$0xff]  ;;  %v2167_v6 = vld [vmem:[%s4156_s2 + $0x58] sm:$0xff] }
  0xad   : > { %3037 = vmatprep.subr.bf16.mxu1 %v3367_v2  ;;  %2942 = vmatmul.mubr.msk.bf16.gmra.mrb[16].mxu0 %vm357_vm4, %v1547_v8  ;;  %v1743_v8 = vshrl.u32 %v3708_v53, 16  ;;  %v641_v19 = vsel %vm626_vm6, %v638_v55, %v640_v9  ;;  %v643_v52 = vsel %vm626_vm6, %v640_v9, %v642_v41  ;;  %v645_v16 = vsel %vm626_vm6, %v642_v41, %v644_v44  ;;  %v2171_v41 = vld [vmem:[%s4156_s2 + $0x78] sm:$0xff] }
  0xae   : > { %2945 = vmatprep.mubr.msk.bf16.mxu0 %vm3368_vm1, %v3367_v2  ;;  %v3942_v44 = vld [vmem:[%s3428_s24 + $0x58] ss:$0 sps:$4 sm:$0x77]  }
  0xb3   : > { %2778 = vmatmul.mubr.msk.bf16.gmra.mrb[4].mxu1 %vm357_vm4, %v631_v20  ;;  %v1741_v20 = vsel %vm1715_vm7, %v1731_v58, %v1740_v12  ;;  %v868_v58 = vrot.slane %v3448_v14, 1  ;;  %v1770_v14 = vshrl.u32 %v3751_v13, 16 }
  0xb4   : > { %2781 = vmatprep.mubr.msk.bf16.mxu1 %vm3368_vm1, %v3367_v2 }
  0xb5   : > { %2946 = vmatmul.mubr.msk.bf16.gmra.mrb[20].mxu0 %vm357_vm4, %v1549_v21  ;;  %v1745_v21 = vrot.slane %v1743_v8, 2  ;;  %v1772_v9 = vrot.slane %v1770_v14, 2  ;;  %v871_v8 = vrot.slane %v3468_v26, 1  ;;  %v1779_v26 = vshrl.u32 %v3765_v22, 16 }
  0xb6   : > { %2949 = vmatprep.mubr.msk.bf16.mxu0 %vm3368_vm1, %v3367_v2  ;;  %v881_v14 = vrot.slane %v3635_v27, 1 }
  0xbb   : > { %2782 = vmatmul.mubr.msk.bf16.gmra.mrb[8].mxu1 %vm357_vm4, %v633_v25  ;;  %v2158_v25 = vld [vmem:[%s4156_s2 + $0x10] sm:$0xff] }
  0xbc   : > { %2785 = vmatprep.mubr.msk.bf16.mxu1 %vm3368_vm1, %v3367_v2 }
  0xbd   : > { %2950 = vmatmul.mubr.msk.bf16.gmra.mrb[24].mxu0 %vm357_vm4, %v1551_v7  ;;  %v1749_v7 = vor.u32 %v1748_v17, %v1745_v21  ;;  %v872_v21 = vsel %vm626_vm6, %v869_v60, %v871_v8  ;;  %v2170_v17 = vld [vmem:[%s4156_s2 + $0x70] sm:$0xff] }
  0xbe   : > { %2953 = vmatprep.mubr.msk.bf16.mxu0 %vm3368_vm1, %v3367_v2 }
  0xbf   : > { %v1750_v37 = vsel %vm1715_vm7, %v1740_v12, %v1749_v7  ;;  %v1775_v12 = vrot.slane %v1773_v15, 3 }
  0xc3   : > { %2786 = vmatmul.mubr.msk.bf16.gmra.mrb[12].mxu1 %vm357_vm4, %v635_v33  ;;  %v3369_v33 = vmov 0  }
  0xc4   : > { %2789 = vmatprep.mubr.msk.bf16.mxu1 %vm3368_vm1, %v3367_v2  ;;  %3322 = vset.pattern.permute.xlu0 %v3369_v33 }
  0xc5   : > { %2954 = vmatmul.mubr.msk.bf16.gmra.mrb[28].mxu0 %vm357_vm4, %v1553_v36  ;;  %2176 = vperm.xlu0 %3322, %v2156_v23   ;;  %v2159_v36 = vld [vmem:[%s4156_s2 + $0x18] sm:$0xff] }
  0xc6   : > { %2957 = vmatprep.mubr.msk.bf16.mxu0 %vm3368_vm1, %v3367_v2  ;;  %3323 = vset.pattern.permute.xlu1 %v3369_v33  ;;  %v2173_v33 = vld [vmem:[%s4156_s2 + $0x88] sm:$0xff] }
  0xc7   : > { %2186 = vperm.xlu1 %3323, %v2158_v25   ;;  %v1781_v25 = vrot.slane %v1779_v26, 2 }
  0xc9   : > { %2181 = vperm.xlu0 %3322, %v2157_v34   ;;  %v1788_v34 = vshrl.u32 %v3778_v28, 16 }
  0xcb   : > { %2790 = vmatmul.mubr.msk.bf16.gmra.mrb[16].mxu1 %vm357_vm4, %v637_v47  ;;  %2191 = vperm.xlu1 %3323, %v2159_v36   ;;  %v1758_v47 = vor.u32 %v1757_v39, %v1754_v59  ;;  %v874_v36 = vsel %vm626_vm6, %v871_v8, %v873_v45  ;;  %v1790_v59 = vrot.slane %v1788_v34, 2  ;;  %v1793_v39 = vrot.slane %v1791_v40, 3 }
  0xcc   : > { %2793 = vmatprep.mubr.msk.bf16.mxu1 %vm3368_vm1, %v3367_v2  ;;  %v1101_v8 = vshrl.u32 %v3622_v24, 16 }
  0xcd   : > { %2958 = vmatmul.mubr.msk.bf16.gmra.mrb[32].mxu0 %vm357_vm4, %v1555_v49  ;;  %v1761_v49 = vshrl.u32 %v3734_v0, 16  ;;  %2196 = vperm.xlu0 %3322, %v2160_v10   ;;  %v1759_v54 = vsel %vm1715_vm7, %v1749_v7, %v1758_v47  ;;  %v875_v10 = vrot.slane %v3499_v56, 1  ;;  %v877_v56 = vrot.slane %v3517_v11, 1 }
  0xce   : > { %2963 = vmatprep.mubr.msk.bf16.mxu0 %vm3368_vm1, %v3367_v2  ;;  %v879_v11 = vrot.slane %v3622_v24, 1 }
  0xcf   : > { %2201 = vperm.xlu1 %3323, %v2161_v46   ;;  %v1763_v55 = vrot.slane %v1761_v49, 2  ;;  %v1794_v46 = vor.u32 %v1793_v39, %v1790_v59  ;;  %v1800_v49 = vshll.u32 %v3942_v44, 16  ;;  %v876_v62 = vsel %vm626_vm6, %v873_v45, %v875_v10 }
  0xd0   : > { %v882_v15 = vsel %vm626_vm6, %v879_v11, %v881_v14  ;;  %v1119_v45 = vshrl.u32 %v3647_v32, 16 }
  0xd1   : > { %2206 = vperm.xlu0 %3322, %v2162_v50   ;;  %v1767_v1 = vor.u32 %v1766_v42, %v1763_v55  ;;  %v878_v55 = vsel %vm626_vm6, %v875_v10, %v877_v56  ;;  %v1958_v42 = vld [vmem:[%s3428_s24 + $0x10] sm:$0x8] }
  0xd3   : > { %2794 = vmatmul.mubr.msk.bf16.gmra.mrb[20].mxu1 %vm357_vm4, %v639_v63  ;;  %2211 = vperm.xlu1 %3323, %v2163_v51   ;;  %v2165_v63 = vld [vmem:[%s4156_s2 + $0x48] sm:$0xff]  ;;  %v1802_v51 = vrot.slane %v1800_v49, 3  ;;  %v1982_v49 = vrot.slane %v3942_v44, 3 }
  0xd4   : > { %2797 = vmatprep.mubr.msk.bf16.mxu1 %vm3368_vm1, %v3367_v2 }
  0xd5   : > { %2964 = vmatmul.mubr.msk.bf16.vlgmr.msra.gmra.mrb[0].mxu0 %vm357_vm4, %v1732_v30  ;;  %v870_v30 = vsel %vm626_vm6, %v868_v58, %v869_v60  ;;  %2216 = vperm.xlu0 %3322, %v2164_v61   ;;  %v2593_v60 = vcombine.low %v1958_v42, %v3669_v38 }
  0xd6   : > { %3000 = vmatpush3.bf16.msra.mxu0 %v2012_v5  ;;  %2967 = vmatprep.mubr.msk.bf16.mxu0 %vm3368_vm1, %v3367_v2  ;;  %v1768_v5 = vsel %vm1715_vm7, %v1758_v47, %v1767_v1  ;;  %v1797_v47 = vshrl.u32 %v3942_v44, 16 }
  0xd7   : > { %2221 = vperm.xlu1 %3323, %v2165_v63   ;;  %v1965_v61 = vrot.slane %v2593_v60, 3  ;;  %v1966_v63 = vrot.slane %v3678_v43, 3  ;;  %v1968_v43 = vrot.slane %v3694_v48, 3 }
  0xd8   : > { %v1799_v50 = vrot.slane %v1797_v47, 2 }
  0xd9   : > { %2226 = vperm.xlu0 %3322, %v2166_v4   ;;  %v1967_v38 = vsel %vm1964_vm8, %v1965_v61, %v1966_v63  ;;  %v883_v4 = vrot.slane %v3647_v32, 1 }
  0xdb   : > { %2798 = vmatmul.mubr.msk.bf16.gmra.mrb[24].mxu1 %vm357_vm4, %v641_v19  ;;  %2231 = vperm.xlu1 %3323, %v2167_v6   ;;  %v2169_v19 = vld [vmem:[%s4156_s2 + $0x68] sm:$0xff]  ;;  %v1970_v6 = vrot.slane %v3708_v53, 3  ;;  %v884_v48 = vsel %vm626_vm6, %v881_v14, %v883_v4  ;;  %v1972_v53 = vrot.slane %v3720_v57, 3  ;;  %v1974_v57 = vrot.slane %v3734_v0, 3 }
  0xdc   : > { %2801 = vmatprep.mubr.msk.bf16.mxu1 %vm3368_vm1, %v3367_v2 }
  0xdd   : > { %2968 = vmatmul.mubr.msk.bf16.gmra.mrb[4].mxu0 %vm357_vm4, %v1741_v20  ;;  %v1776_v20 = vor.u32 %v1775_v12, %v1772_v9  ;;  %2236 = vperm.xlu0 %3322, %v2168_v18   ;;  %v1971_v9 = vsel %vm1964_vm8, %v1968_v43, %v1970_v6  ;;  %v1104_v18 = vshll.u32 %v3622_v24, 16  ;;  %v1110_v24 = vshrl.u32 %v3635_v27, 16 }
  0xde   : > { %2971 = vmatprep.mubr.msk.bf16.mxu0 %vm3368_vm1, %v3367_v2 }
  0xdf   : > { %2241 = vperm.xlu1 %3323, %v2169_v19   ;;  %v1777_v23 = vsel %vm1715_vm7, %v1767_v1, %v1776_v20  ;;  %v880_v1 = vsel %vm626_vm6, %v877_v56, %v879_v11  ;;  %v1106_v26 = vrot.slane %v1104_v18, 2 }
  0xe1   : > { %2246 = vperm.xlu0 %3322, %v2170_v17   ;;  %v1113_v17 = vshll.u32 %v3635_v27, 16 }
  0xe3   : > { %2802 = vmatmul.mubr.msk.bf16.gmra.mrb[28].mxu1 %vm357_vm4, %v643_v52  ;;  %2251 = vperm.xlu1 %3323, %v2171_v41  }
  0xe4   : > { %2805 = vmatprep.mubr.msk.bf16.mxu1 %vm3368_vm1, %v3367_v2 }
  0xe5   : > { %2972 = vmatmul.mubr.msk.bf16.gmra.mrb[8].mxu0 %vm357_vm4, %v1750_v37  ;;  %2256 = vperm.xlu0 %3322, %v2172_v29   ;;  %v1122_v29 = vshll.u32 %v3647_v32, 16  ;;  %v1128_v32 = vshrl.u32 %v3659_v35, 16 }
  0xe6   : > { %2975 = vmatprep.mubr.msk.bf16.mxu0 %vm3368_vm1, %v3367_v2 }
  0xe7   : > { %2261 = vperm.xlu1 %3323, %v2173_v33   ;;  %v1121_v33 = vrot.slane %v1119_v45, 1  ;;  %v1130_v59 = vrot.slane %v1128_v32, 1 }
  0xeb   : > { %2806 = vmatmul.mubr.msk.bf16.gmra.mrb[32].mxu1 %vm357_vm4, %v645_v16 }
  0xec   : > { %2811 = vmatprep.mubr.msk.bf16.mxu1 %vm3368_vm1, %v3367_v2 }
  0xed   : > { %2976 = vmatmul.mubr.msk.bf16.gmra.mrb[12].mxu0 %vm357_vm4, %v1759_v54  ;;  %v1803_v54 = vor.u32 %v1802_v51, %v1799_v50 }
  0xee   : > { %2979 = vmatprep.mubr.msk.bf16.mxu0 %vm3368_vm1, %v3367_v2 }
  0xef   : > { %v1804_v58 = vsel %vm1715_vm7, %v1794_v46, %v1803_v54 }
  0xf3   : > { %2812 = vmatmul.mubr.msk.bf16.vlgmr.msra.gmra.mrb[0].mxu1 %vm357_vm4, %v870_v30  ;;  %v1969_v30 = vsel %vm1964_vm8, %v1966_v63, %v1968_v43 }
  0xf4   : > { %2815 = vmatprep.mubr.msk.bf16.mxu1 %vm3368_vm1, %v3367_v2  ;;  %3038 = vmatpush3.bf16.msra.mxu1 %v3412_v3  ;;  %v1782_v3 = vshll.u32 %v3765_v22, 16 }
  0xf5   : > { %2980 = vmatmul.mubr.msk.bf16.gmra.mrb[16].mxu0 %vm357_vm4, %v1768_v5  ;;  %v3358_v5 = vld [vmem:[%s3428_s24 + $0x50] ss:$0 sps:$4 sm:$0x11]   ;;  %s3310_s24 = smul.u32 144, %s4160_s16 }
  0xf6   : > { %2983 = vmatprep.mubr.msk.bf16.mxu0 %vm3368_vm1, %v3367_v2  ;;  %v1784_v7 = vrot.slane %v1782_v3, 3  ;;  %v885_v12 = vrot.slane %v3358_v5, 1  ;;  %v1973_v3 = vsel %vm1964_vm8, %v1970_v6, %v1972_v53 }
  0xf7   : > { %s4069_s5 = scalar_lea.vmem %s4157_s3, %s3310_s24 }
  0xf8   : > { %v1785_v52 = vor.u32 %v1784_v7, %v1781_v25  ;;  %v886_v19 = vsel %vm626_vm6, %v883_v4, %v885_v12  ;;  %v1115_v25 = vrot.slane %v1113_v17, 2  ;;  %v1975_v7 = vsel %vm1964_vm8, %v1972_v53, %v1974_v57 }
  0xfa   : > { %v1786_v37 = vsel %vm1715_vm7, %v1776_v20, %v1785_v52  ;;  %v1795_v16 = vsel %vm1715_vm7, %v1785_v52, %v1794_v46  ;;  %v1103_v20 = vrot.slane %v1101_v8, 1  ;;  %v1124_v52 = vrot.slane %v1122_v29, 2 }
  0xfb   : > { %2816 = vmatmul.mubr.msk.bf16.gmra.mrb[4].mxu1 %vm357_vm4, %v872_v21 }
  0xfc   : > { %2819 = vmatprep.mubr.msk.bf16.mxu1 %vm3368_vm1, %v3367_v2  ;;  %v1107_v21 = vor.u32 %v1106_v26, %v1103_v20  ;;  %v1125_v40 = vor.u32 %v1124_v52, %v1121_v33 }
  0xfd   : > { %2984 = vmatmul.mubr.msk.bf16.gmra.mrb[20].mxu0 %vm357_vm4, %v1777_v23  ;;  %v1112_v23 = vrot.slane %v1110_v24, 1 }
  0xfe   : > { %2987 = vmatprep.mubr.msk.bf16.mxu0 %vm3368_vm1, %v3367_v2  ;;  %v1108_v41 = vsel %vm1046_vm3, %v3542_v31, %v1107_v21  ;;  %v1976_v31 = vrot.slane %v3751_v13, 3  ;;  %v1978_v13 = vrot.slane %v3765_v22, 3 }
  0xff   : > { %v1116_v27 = vor.u32 %v1115_v25, %v1112_v23 }
 0x100   : > { %v1977_v34 = vsel %vm1964_vm8, %v1974_v57, %v1976_v31  ;;  %v1979_v10 = vsel %vm1964_vm8, %v1976_v31, %v1978_v13 }
 0x101   : > { %v1117_v0 = vsel %vm1046_vm3, %v1107_v21, %v1116_v27 }
 0x103   : > { %2820 = vmatmul.mubr.msk.bf16.gmra.mrb[8].mxu1 %vm357_vm4, %v874_v36  ;;  %v1131_v36 = vshll.u32 %v3659_v35, 16  ;;  %v1980_v35 = vrot.slane %v3778_v28, 3 }
 0x104   : > { %2823 = vmatprep.mubr.msk.bf16.mxu1 %vm3368_vm1, %v3367_v2 }
 0x105   : > { %2988 = vmatmul.mubr.msk.bf16.gmra.mrb[24].mxu0 %vm357_vm4, %v1786_v37  ;;  %v1126_v37 = vsel %vm1046_vm3, %v1116_v27, %v1125_v40  ;;  %v1133_v39 = vrot.slane %v1131_v36, 2  ;;  %v1981_v47 = vsel %vm1964_vm8, %v1978_v13, %v1980_v35 }
 0x106   : > { %2991 = vmatprep.mubr.msk.bf16.mxu0 %vm3368_vm1, %v3367_v2 }
 0x107   : > { %v1134_v46 = vor.u32 %v1133_v39, %v1130_v59 }
 0x109   : > { %v1135_v22 = vsel %vm1046_vm3, %v1125_v40, %v1134_v46 }
 0x10b   : > { %2824 = vmatmul.mubr.msk.bf16.gmra.mrb[12].mxu1 %vm357_vm4, %v876_v62  ;;  %v1983_v62 = vsel %vm1964_vm8, %v1980_v35, %v1982_v49 }
 0x10c   : > { %2827 = vmatprep.mubr.msk.bf16.mxu1 %vm3368_vm1, %v3367_v2 }
 0x10d   : > { %2992 = vmatmul.mubr.msk.bf16.gmra.mrb[28].mxu0 %vm357_vm4, %v1795_v16 }
 0x10e   : > { %2995 = vmatprep.mubr.msk.bf16.mxu0 %vm3368_vm1, %v3367_v2 }
 0x113   : > { %2828 = vmatmul.mubr.msk.bf16.gmra.mrb[16].mxu1 %vm357_vm4, %v878_v55 }
 0x114   : > { %2831 = vmatprep.mubr.msk.bf16.mxu1 %vm3368_vm1, %v3367_v2 }
 0x115   : > { %2996 = vmatmul.mubr.msk.bf16.gmra.mrb[32].mxu0 %vm357_vm4, %v1804_v58 }
 0x116   : > { %3001 = vmatprep.mubr.msk.bf16.mxu0 %vm3368_vm1, %v3367_v2 }
 0x11b   : > { %2832 = vmatmul.mubr.msk.bf16.gmra.mrb[20].mxu1 %vm357_vm4, %v880_v1 }
 0x11c   : > { %2835 = vmatprep.mubr.msk.bf16.mxu1 %vm3368_vm1, %v3367_v2 }
 0x11d   : > { %3002 = vmatmul.mubr.msk.bf16.vlgmr.msra.gmra.mrb[0].mxu0 %vm357_vm4, %v1967_v38 }
 0x11e   : > { %3005 = vmatprep.mubr.msk.bf16.mxu0 %vm3368_vm1, %v3367_v2 }
 0x123   : > { %2836 = vmatmul.mubr.msk.bf16.gmra.mrb[24].mxu1 %vm357_vm4, %v882_v15 }
 0x124   : > { %2839 = vmatprep.mubr.msk.bf16.mxu1 %vm3368_vm1, %v3367_v2 }
 0x125   : > { %3006 = vmatmul.mubr.msk.bf16.gmra.mrb[4].mxu0 %vm357_vm4, %v1969_v30 }
 0x126   : > { %3009 = vmatprep.mubr.msk.bf16.mxu0 %vm3368_vm1, %v3367_v2 }
 0x12b   : > { %2840 = vmatmul.mubr.msk.bf16.gmra.mrb[28].mxu1 %vm357_vm4, %v884_v48 }
 0x12c   : > { %2843 = vmatprep.mubr.msk.bf16.mxu1 %vm3368_vm1, %v3367_v2 }
 0x12d   : > { %3010 = vmatmul.mubr.msk.bf16.gmra.mrb[8].mxu0 %vm357_vm4, %v1971_v9 }
 0x12e   : > { %3013 = vmatprep.mubr.msk.bf16.mxu0 %vm3368_vm1, %v3367_v2 }
 0x133   : > { %2844 = vmatmul.mubr.msk.bf16.gmra.mrb[32].mxu1 %vm357_vm4, %v886_v19 }
 0x134   : > { %2869 = vmatprep.mubr.msk.bf16.mxu1 %vm3368_vm1, %v3367_v2 }
 0x135   : > { %3014 = vmatmul.mubr.msk.bf16.gmra.mrb[12].mxu0 %vm357_vm4, %v1973_v3 }
 0x136   : > { %3017 = vmatprep.mubr.msk.bf16.mxu0 %vm3368_vm1, %v3367_v2 }
 0x13b   : > { %2870 = vmatmul.mubr.msk.bf16.vlgmr.msra.gmra.mrb[20].mxu1 %vm357_vm4, %v1108_v41 }
 0x13c   : > { %2873 = vmatprep.mubr.msk.bf16.mxu1 %vm3368_vm1, %v3367_v2 }
 0x13d   : > { %3018 = vmatmul.mubr.msk.bf16.gmra.mrb[16].mxu0 %vm357_vm4, %v1975_v7 }
 0x13e   : > { %3021 = vmatprep.mubr.msk.bf16.mxu0 %vm3368_vm1, %v3367_v2 }
 0x143   : > { %2874 = vmatmul.mubr.msk.bf16.gmra.mrb[24].mxu1 %vm357_vm4, %v1117_v0 }
 0x144   : > { %2877 = vmatprep.mubr.msk.bf16.mxu1 %vm3368_vm1, %v3367_v2  ;;  %v2177_v30 = vpop.permute.xlu0 %2176 }
 0x145   : > { %3022 = vmatmul.mubr.msk.bf16.gmra.mrb[20].mxu0 %vm357_vm4, %v1977_v34 }
 0x146   : > { %3025 = vmatprep.mubr.msk.bf16.mxu0 %vm3368_vm1, %v3367_v2  ;;  %v2187_v20 = vpop.permute.xlu1 %2186 }
 0x148   : > { %v2182_v9 = vpop.permute.xlu0 %2181 }
 0x14a   : > { %v2192_v0 = vpop.permute.xlu1 %2191 }
 0x14b   : > { %2878 = vmatmul.mubr.msk.bf16.gmra.mrb[28].mxu1 %vm357_vm4, %v1126_v37 }
 0x14c   : > { %2881 = vmatprep.mubr.msk.bf16.mxu1 %vm3368_vm1, %v3367_v2 }
 0x14d   : > { %3026 = vmatmul.mubr.msk.bf16.gmra.mrb[24].mxu0 %vm357_vm4, %v1979_v10 }
 0x14e   : > { %3029 = vmatprep.mubr.msk.bf16.mxu0 %vm3368_vm1, %v3367_v2 }
 0x153   : > { %2882 = vmatmul.mubr.msk.bf16.gmra.mrb[32].mxu1 %vm357_vm4, %v1135_v22  ;;  %v2197_v22 = vpop.permute.xlu0 %2196 }
 0x155   : > { %3030 = vmatmul.mubr.msk.bf16.gmra.mrb[28].mxu0 %vm357_vm4, %v1981_v47 }
 0x156   : > { %3033 = vmatprep.mubr.msk.bf16.mxu0 %vm3368_vm1, %v3367_v2 }
 0x15d   : > { %3034 = vmatmul.mubr.msk.bf16.gmra.mrb[32].mxu0 %vm357_vm4, %v1983_v62 }
 0x1c6   : > { %v951_v16 = vpop.f32.mrb[0].mxu1 }
 0x1c7   : > { %v2813_v50 = vpop.f32.mrb[1].mxu1 }
 0x1c8   : > { %v954_v28 = vpop.f32.mrb[2].mxu1 }
 0x1c9   : > { %v2814_v51 = vpop.f32.mrb[3].mxu1 }
 0x1ce   : > { %v959_v56 = vpop.f32.mrb[4].mxu1 }
 0x1cf   : > { %v2817_v54 = vpop.f32.mrb[5].mxu1 }
 0x1d0   : > { %v962_v55 = vpop.f32.mrb[6].mxu1 }
 0x1d1   : > { %v2818_v42 = vpop.f32.mrb[7].mxu1 }
 0x1d6   : > { %v967_v58 = vpop.f32.mrb[8].mxu1 }
 0x1d7   : > { %v2821_v60 = vpop.f32.mrb[9].mxu1 }
 0x1d8   : > { %v970_v11 = vpop.f32.mrb[10].mxu1 }
 0x1d9   : > { %v2822_v61 = vpop.f32.mrb[11].mxu1 }
 0x1de   : > { %v4057_v2 = vpop.f32.mrb[12].mxu1 }
 0x1df   : > { %v2825_v44 = vpop.f32.mrb[13].mxu1 }
 0x1e0   : > { %v4059_v63 = vpop.f32.mrb[14].mxu1 }
 0x1e1   : > { %v2826_v1 = vpop.f32.mrb[15].mxu1 }
 0x1e6   : > { %v4061_v38 = vpop.f32.mrb[16].mxu1 }
 0x1e7   : > { %v2829_v14 = vpop.f32.mrb[17].mxu1 }
 0x1e8   : > { %v4063_v43 = vpop.f32.mrb[18].mxu1 }
 0x1e9   : > { %v2830_v15 = vpop.f32.mrb[19].mxu1 }
 0x1f0   : > { %v2048_v4 = vpop.f32.mrb[0].mxu0 }
 0x1f1   : > { %v3039_v6 = vadd.f32 %v2048_v4, %v951_v16  ;;  %v3003_v48 = vpop.f32.mrb[1].mxu0 }
 0x1f2   : > { %v2051_v5 = vpop.f32.mrb[2].mxu0 }
 0x1f3   : > { %2138 = vst.msk [vmem:[%s4069_s5] sm:$0xff] %vm2137_vm9, %v3039_v6  ;;  %v2264_v12 = vmul.f32 %v3039_v6, %v2177_v30  ;;  %v3040_v8 = vadd.f32 %v2051_v5, %v954_v28  ;;  %v3004_v18 = vpop.f32.mrb[3].mxu0  ;;  %v2202_v28 = vpop.permute.xlu1 %2201 }
 0x1f4   : > { %v2207_v30 = vpop.permute.xlu0 %2206 }
 0x1f5   : > { %v2325_v53 = vmul.f32 %v3039_v6, %v2264_v12  ;;  %2139 = vst.msk [vmem:[%s4069_s5 + $0x8] sm:$0xff] %vm2137_vm9, %v3040_v8  ;;  %v2265_v19 = vmul.f32 %v3040_v8, %v2182_v9  ;;  %v2282_v26 = vsel %vm2137_vm9, %v2264_v12, 0.0 }
 0x1f7   : > { %v2283_v3 = vsel %vm2137_vm9, %v2265_v19, 0.0  ;;  %v2326_v21 = vmul.f32 %v3040_v8, %v2265_v19  ;;  %v2343_v57 = vsel %vm2137_vm9, %v2325_v53, 0.0  ;;  %v2212_v12 = vpop.permute.xlu1 %2211 }
 0x1f8   : > { %v2284_v24 = vadd.f32 %v2283_v3, %v2282_v26  ;;  %v2056_v17 = vpop.f32.mrb[4].mxu0 }
 0x1f9   : > { %v2344_v41 = vsel %vm2137_vm9, %v2326_v21, 0.0  ;;  %v3041_v23 = vadd.f32 %v2056_v17, %v959_v56  ;;  %v3007_v25 = vpop.f32.mrb[5].mxu0 }
 0x1fa   : > { %v2345_v7 = vadd.f32 %v2344_v41, %v2343_v57  ;;  %v2059_v27 = vpop.f32.mrb[6].mxu0 }
 0x1fb   : > { %2140 = vst.msk [vmem:[%s4069_s5 + $0x10] sm:$0xff] %vm2137_vm9, %v3041_v23  ;;  %v2266_v45 = vmul.f32 %v3041_v23, %v2187_v20  ;;  %v3042_v29 = vadd.f32 %v2059_v27, %v962_v55  ;;  %v3008_v31 = vpop.f32.mrb[7].mxu0  ;;  %v2217_v27 = vpop.permute.xlu0 %2216 }
 0x1fd   : > { %v2285_v33 = vsel %vm2137_vm9, %v2266_v45, 0.0  ;;  %v2327_v52 = vmul.f32 %v3041_v23, %v2266_v45  ;;  %2141 = vst.msk [vmem:[%s4069_s5 + $0x18] sm:$0xff] %vm2137_vm9, %v3042_v29  ;;  %v2267_v34 = vmul.f32 %v3042_v29, %v2192_v0 }
 0x1fe   : > { %v2286_v40 = vadd.f32 %v2285_v33, %v2284_v24 }
 0x1ff   : > { %v2346_v32 = vsel %vm2137_vm9, %v2327_v52, 0.0  ;;  %v2287_v36 = vsel %vm2137_vm9, %v2267_v34, 0.0  ;;  %v2328_v13 = vmul.f32 %v3042_v29, %v2267_v34  ;;  %v2222_v52 = vpop.permute.xlu1 %2221 }
 0x200   : > { %v2347_v37 = vadd.f32 %v2346_v32, %v2345_v7  ;;  %v2288_v59 = vadd.f32 %v2287_v36, %v2286_v40  ;;  %v2064_v39 = vpop.f32.mrb[8].mxu0 }
 0x201   : > { %v2348_v10 = vsel %vm2137_vm9, %v2328_v13, 0.0  ;;  %v3043_v46 = vadd.f32 %v2064_v39, %v967_v58  ;;  %v3011_v35 = vpop.f32.mrb[9].mxu0 }
 0x202   : > { %v2349_v47 = vadd.f32 %v2348_v10, %v2347_v37  ;;  %v2067_v49 = vpop.f32.mrb[10].mxu0 }
 0x203   : > { %2142 = vst.msk [vmem:[%s4069_s5 + $0x20] sm:$0xff] %vm2137_vm9, %v3043_v46  ;;  %v2268_v62 = vmul.f32 %v3043_v46, %v2197_v22  ;;  %v3044_v16 = vadd.f32 %v2067_v49, %v970_v11  ;;  %v3012_v50 = vpop.f32.mrb[11].mxu0 }
 0x205   : > { %v2289_v51 = vsel %vm2137_vm9, %v2268_v62, 0.0  ;;  %v2329_v56 = vmul.f32 %v3043_v46, %v2268_v62  ;;  %2143 = vst.msk [vmem:[%s4069_s5 + $0x28] sm:$0xff] %vm2137_vm9, %v3044_v16  ;;  %v2269_v54 = vmul.f32 %v3044_v16, %v2202_v28 }
 0x206   : > { %v2290_v55 = vadd.f32 %v2289_v51, %v2288_v59 }
 0x207   : > { %v2350_v42 = vsel %vm2137_vm9, %v2329_v56, 0.0  ;;  %v2291_v58 = vsel %vm2137_vm9, %v2269_v54, 0.0  ;;  %v2330_v60 = vmul.f32 %v3044_v16, %v2269_v54  ;;  %v2227_v16 = vpop.permute.xlu0 %2226 }
 0x208   : > { %v2351_v61 = vadd.f32 %v2350_v42, %v2349_v47  ;;  %v2292_v44 = vadd.f32 %v2291_v58, %v2290_v55  ;;  %v2072_v1 = vpop.f32.mrb[12].mxu0  ;;  %v2232_v55 = vpop.permute.xlu1 %2231 }
 0x209   : > { %v2352_v11 = vsel %vm2137_vm9, %v2330_v60, 0.0  ;;  %v3045_v14 = vadd.f32 %v2072_v1, %v4057_v2  ;;  %v3015_v15 = vpop.f32.mrb[13].mxu0 }
 0x20a   : > { %v2353_v4 = vadd.f32 %v2352_v11, %v2351_v61  ;;  %v2075_v6 = vpop.f32.mrb[14].mxu0 }
 0x20b   : > { %2144 = vst.msk [vmem:[%s4069_s5 + $0x30] sm:$0xff] %vm2137_vm9, %v3045_v14  ;;  %v2270_v48 = vmul.f32 %v3045_v14, %v2207_v30  ;;  %v3046_v5 = vadd.f32 %v2075_v6, %v4059_v63  ;;  %v3016_v9 = vpop.f32.mrb[15].mxu0 }
 0x20d   : > { %v2293_v8 = vsel %vm2137_vm9, %v2270_v48, 0.0  ;;  %v2331_v18 = vmul.f32 %v3045_v14, %v2270_v48  ;;  %2145 = vst.msk [vmem:[%s4069_s5 + $0x38] sm:$0xff] %vm2137_vm9, %v3046_v5  ;;  %v2271_v53 = vmul.f32 %v3046_v5, %v2212_v12 }
 0x20e   : > { %v1240_v19 = vpop.f32.mrb[20].mxu1  ;;  %v2294_v20 = vadd.f32 %v2293_v8, %v2292_v44 }
 0x20f   : > { %v2871_v2 = vpop.f32.mrb[21].mxu1  ;;  %v2354_v26 = vsel %vm2137_vm9, %v2331_v18, 0.0  ;;  %v2295_v3 = vsel %vm2137_vm9, %v2271_v53, 0.0  ;;  %v2332_v21 = vmul.f32 %v3046_v5, %v2271_v53  ;;  %v2237_v18 = vpop.permute.xlu0 %2236 }
 0x210   : > { %v1243_v24 = vpop.f32.mrb[22].mxu1  ;;  %v2355_v17 = vadd.f32 %v2354_v26, %v2353_v4  ;;  %v2296_v63 = vadd.f32 %v2295_v3, %v2294_v20  ;;  %v2080_v57 = vpop.f32.mrb[16].mxu0 }
 0x211   : > { %v2872_v41 = vpop.f32.mrb[23].mxu1  ;;  %v2356_v23 = vsel %vm2137_vm9, %v2332_v21, 0.0  ;;  %v3047_v25 = vadd.f32 %v2080_v57, %v4061_v38  ;;  %v3019_v7 = vpop.f32.mrb[17].mxu0 }
 0x212   : > { %v2357_v45 = vadd.f32 %v2356_v23, %v2355_v17  ;;  %v2083_v29 = vpop.f32.mrb[18].mxu0  ;;  %v2242_v3 = vpop.permute.xlu1 %2241 }
 0x213   : > { %2146 = vst.msk [vmem:[%s4069_s5 + $0x40] sm:$0xff] %vm2137_vm9, %v3047_v25  ;;  %v2272_v31 = vmul.f32 %v3047_v25, %v2217_v27  ;;  %v3048_v0 = vadd.f32 %v2083_v29, %v4063_v43  ;;  %v3020_v33 = vpop.f32.mrb[19].mxu0 }
 0x215   : > { %v2297_v34 = vsel %vm2137_vm9, %v2272_v31, 0.0  ;;  %v2333_v40 = vmul.f32 %v3047_v25, %v2272_v31  ;;  %2147 = vst.msk [vmem:[%s4069_s5 + $0x48] sm:$0xff] %vm2137_vm9, %v3048_v0  ;;  %v2273_v32 = vmul.f32 %v3048_v0, %v2222_v52 }
 0x216   : > { %v1248_v36 = vpop.f32.mrb[24].mxu1  ;;  %v2298_v13 = vadd.f32 %v2297_v34, %v2296_v63 }
 0x217   : > { %v2875_v38 = vpop.f32.mrb[25].mxu1  ;;  %v2358_v37 = vsel %vm2137_vm9, %v2333_v40, 0.0  ;;  %v2299_v59 = vsel %vm2137_vm9, %v2273_v32, 0.0  ;;  %v2334_v39 = vmul.f32 %v3048_v0, %v2273_v32  ;;  %v2247_v40 = vpop.permute.xlu0 %2246 }
 0x218   : > { %v1251_v10 = vpop.f32.mrb[26].mxu1  ;;  %v2359_v46 = vadd.f32 %v2358_v37, %v2357_v45  ;;  %v2300_v43 = vadd.f32 %v2299_v59, %v2298_v13  ;;  %v2088_v35 = vpop.f32.mrb[20].mxu0 }
 0x219   : > { %v2876_v22 = vpop.f32.mrb[27].mxu1  ;;  %v2360_v47 = vsel %vm2137_vm9, %v2334_v39, 0.0  ;;  %v3049_v49 = vadd.f32 %v2088_v35, %v1240_v19  ;;  %v3023_v62 = vpop.f32.mrb[21].mxu0 }
 0x21a   : > { %v2361_v50 = vadd.f32 %v2360_v47, %v2359_v46  ;;  %v2091_v28 = vpop.f32.mrb[22].mxu0  ;;  %v2252_v59 = vpop.permute.xlu1 %2251 }
 0x21b   : > { %2148 = vst.msk [vmem:[%s4069_s5 + $0x50] sm:$0xff] %vm2137_vm9, %v3049_v49  ;;  %v2274_v51 = vmul.f32 %v3049_v49, %v2227_v16  ;;  %v3050_v56 = vadd.f32 %v2091_v28, %v1243_v24  ;;  %v3024_v54 = vpop.f32.mrb[23].mxu0 }
 0x21d   : > { %v2301_v42 = vsel %vm2137_vm9, %v2274_v51, 0.0  ;;  %v2335_v58 = vmul.f32 %v3049_v49, %v2274_v51  ;;  %2149 = vst.msk [vmem:[%s4069_s5 + $0x58] sm:$0xff] %vm2137_vm9, %v3050_v56  ;;  %v2275_v60 = vmul.f32 %v3050_v56, %v2232_v55 }
 0x21e   : > { %v1256_v61 = vpop.f32.mrb[28].mxu1  ;;  %v2302_v44 = vadd.f32 %v2301_v42, %v2300_v43 }
 0x21f   : > { %v2879_v1 = vpop.f32.mrb[29].mxu1  ;;  %v2362_v11 = vsel %vm2137_vm9, %v2335_v58, 0.0  ;;  %v2303_v14 = vsel %vm2137_vm9, %v2275_v60, 0.0  ;;  %v2336_v15 = vmul.f32 %v3050_v56, %v2275_v60  ;;  %v2257_v56 = vpop.permute.xlu0 %2256 }
 0x220   : > { %v1259_v30 = vpop.f32.mrb[30].mxu1  ;;  %v2363_v4 = vadd.f32 %v2362_v11, %v2361_v50  ;;  %v2304_v6 = vadd.f32 %v2303_v14, %v2302_v44  ;;  %v2096_v48 = vpop.f32.mrb[24].mxu0 }
 0x221   : > { %v2880_v5 = vpop.f32.mrb[31].mxu1  ;;  %v2364_v9 = vsel %vm2137_vm9, %v2336_v15, 0.0  ;;  %v3051_v12 = vadd.f32 %v2096_v48, %v1248_v36  ;;  %v3027_v8 = vpop.f32.mrb[25].mxu0 }
 0x222   : > { %v2365_v53 = vadd.f32 %v2364_v9, %v2363_v4  ;;  %v2099_v19 = vpop.f32.mrb[26].mxu0 }
 0x223   : > { %2150 = vst.msk [vmem:[%s4069_s5 + $0x60] sm:$0xff] %vm2137_vm9, %v3051_v12  ;;  %v2276_v20 = vmul.f32 %v3051_v12, %v2237_v18  ;;  %v3052_v2 = vadd.f32 %v2099_v19, %v1251_v10  ;;  %v3028_v26 = vpop.f32.mrb[27].mxu0 }
 0x225   : > { %v2305_v21 = vsel %vm2137_vm9, %v2276_v20, 0.0  ;;  %v2337_v24 = vmul.f32 %v3051_v12, %v2276_v20  ;;  %2151 = vst.msk [vmem:[%s4069_s5 + $0x68] sm:$0xff] %vm2137_vm9, %v3052_v2  ;;  %v2277_v17 = vmul.f32 %v3052_v2, %v2242_v3 }
 0x226   : > { %v1264_v63 = vpop.f32.mrb[32].mxu1  ;;  %v2306_v57 = vadd.f32 %v2305_v21, %v2304_v6 }
 0x227   : > { %v2883_v41 = vpop.f32.mrb[33].mxu1  ;;  %v2366_v23 = vsel %vm2137_vm9, %v2337_v24, 0.0  ;;  %v2307_v25 = vsel %vm2137_vm9, %v2277_v17, 0.0  ;;  %v2338_v7 = vmul.f32 %v3052_v2, %v2277_v17 }
 0x228   : > { %v1267_v27 = vpop.f32.mrb[34].mxu1  ;;  %v2367_v45 = vadd.f32 %v2366_v23, %v2365_v53  ;;  %v2308_v29 = vadd.f32 %v2307_v25, %v2306_v57  ;;  %v2104_v31 = vpop.f32.mrb[28].mxu0 }
 0x229   : > { %v2884_v0 = vpop.f32.mrb[35].mxu1  ;;  %v2368_v33 = vsel %vm2137_vm9, %v2338_v7, 0.0  ;;  %v3053_v52 = vadd.f32 %v2104_v31, %v1256_v61  ;;  %v3031_v34 = vpop.f32.mrb[29].mxu0 }
 0x22a   : > { %v2369_v32 = vadd.f32 %v2368_v33, %v2367_v45  ;;  %v2107_v36 = vpop.f32.mrb[30].mxu0  ;;  %v2262_v61 = vpop.permute.xlu1 %2261 }
 0x22b   : > { %2152 = vst.msk [vmem:[%s4069_s5 + $0x70] sm:$0xff] %vm2137_vm9, %v3053_v52  ;;  %v2278_v13 = vmul.f32 %v3053_v52, %v2247_v40  ;;  %v3054_v38 = vadd.f32 %v2107_v36, %v1259_v30  ;;  %v3032_v37 = vpop.f32.mrb[31].mxu0 }
 0x22d   : > { %v2309_v39 = vsel %vm2137_vm9, %v2278_v13, 0.0  ;;  %v2339_v10 = vmul.f32 %v3053_v52, %v2278_v13  ;;  %2153 = vst.msk [vmem:[%s4069_s5 + $0x78] sm:$0xff] %vm2137_vm9, %v3054_v38  ;;  %v2279_v46 = vmul.f32 %v3054_v38, %v2252_v59 }
 0x22e   : > { %v2310_v43 = vadd.f32 %v2309_v39, %v2308_v29 }
 0x22f   : > { %v2370_v35 = vsel %vm2137_vm9, %v2339_v10, 0.0  ;;  %v2311_v22 = vsel %vm2137_vm9, %v2279_v46, 0.0  ;;  %v2340_v47 = vmul.f32 %v3054_v38, %v2279_v46 }
 0x230   : > { %v2371_v49 = vadd.f32 %v2370_v35, %v2369_v32  ;;  %v2312_v62 = vadd.f32 %v2311_v22, %v2310_v43  ;;  %v2112_v16 = vpop.f32.mrb[32].mxu0 }
 0x231   : > { %v2372_v50 = vsel %vm2137_vm9, %v2340_v47, 0.0  ;;  %v3055_v28 = vadd.f32 %v2112_v16, %v1264_v63  ;;  %v3035_v51 = vpop.f32.mrb[33].mxu0 }
 0x232   : > { %v2373_v54 = vadd.f32 %v2372_v50, %v2371_v49  ;;  %v2115_v55 = vpop.f32.mrb[34].mxu0 }
 0x233   : > { %2154 = vst.msk [vmem:[%s4069_s5 + $0x80] sm:$0xff] %vm2137_vm9, %v3055_v28  ;;  %v2280_v42 = vmul.f32 %v3055_v28, %v2257_v56  ;;  %v3056_v58 = vadd.f32 %v2115_v55, %v1267_v27  ;;  %v3036_v60 = vpop.f32.mrb[35].mxu0 }
 0x235   : > { %v2313_v44 = vsel %vm2137_vm9, %v2280_v42, 0.0  ;;  %v2341_v1 = vmul.f32 %v3055_v28, %v2280_v42  ;;  %2155 = vst.msk [vmem:[%s4069_s5 + $0x88] sm:$0xff] %vm2137_vm9, %v3056_v58  ;;  %v2281_v11 = vmul.f32 %v3056_v58, %v2262_v61 }
 0x236   : > { %v2314_v14 = vadd.f32 %v2313_v44, %v2312_v62 }
 0x237   : > { %v2374_v15 = vsel %vm2137_vm9, %v2341_v1, 0.0  ;;  %v2315_v30 = vsel %vm2137_vm9, %v2281_v11, 0.0  ;;  %v2342_v4 = vmul.f32 %v3056_v58, %v2281_v11 }
 0x238   : > { %v2375_v6 = vadd.f32 %v2374_v15, %v2373_v54  ;;  %v2316_v48 = vadd.f32 %v2315_v30, %v2314_v14 }
 0x239   : > { %v2376_v5 = vsel %vm2137_vm9, %v2342_v4, 0.0 }
 0x23a   : > { %v2317_v9 = vrot.slane %v2316_v48, 4  ;;  %v2377_v12 = vadd.f32 %v2376_v5, %v2375_v6 }
 0x23c   : > { %v2318_v8 = vadd.f32 %v2317_v9, %v2316_v48  ;;  %v2378_v18 = vrot.slane %v2377_v12, 4 }
 0x23e   : > { %v2319_v53 = vrot.slane %v2318_v8, 2  ;;  %v2379_v19 = vadd.f32 %v2378_v18, %v2377_v12 }
 0x240   : > { %v2320_v20 = vadd.f32 %v2319_v53, %v2318_v8  ;;  %v2380_v2 = vrot.slane %v2379_v19, 2 }
 0x242   : > { %v2321_v26 = vrot.slane %v2320_v20, 1  ;;  %v2381_v3 = vadd.f32 %v2380_v2, %v2379_v19 }
 0x244   : > { %v2322_v21 = vadd.f32 %v2321_v26, %v2320_v20  ;;  %v2382_v24 = vrot.slane %v2381_v3, 1 }
 0x246   : > { %2324 = vst.msk [vmem:[%s208_s9] sm:$0x1] %vm2323_vm10, %v2322_v21  ;;  %v2383_v17 = vadd.f32 %v2382_v24, %v2381_v3 }
 0x248   : > { %2384 = vst.msk [vmem:[%s208_s9 + $0x1] sm:$0x1] %vm2323_vm10, %v2383_v17 }
 0x249 PF: > { %s15_s15 = sadd.s32 1, %s3365_s15  }
 0x24a   : > { %p12_p4 = scmp.ge.s32.totalorder %s15_s15, 6  }
 0x24c   :  { %14 = sbr.rel (!%p12_p4) target bundleno = 1 (0x1), region = 82 }

// kernel: double_conv_forward.6
= control target key start
LH: loop header
LB: loop body
LE: loop exit
PB: predicated region body
PF: predicated region fallthrough
CT: control target
= control target key end

     0   :  { %s3394_s15 = smov 0   ;;  %s4153_s0 = inlined_call_operand.vmem [shape: bf16[4,182,8], index: 0, kind: input, shape index: {}]   ;;  %s4154_s1 = inlined_call_operand.vmem [shape: bf16[3,3,8,8], index: 1, kind: input, shape index: {}]   ;;  %s4155_s2 = inlined_call_operand.vmem [shape: f32[144,1], index: 2, kind: input, shape index: {}]   ;;  %s4156_s3 = inlined_call_operand.vmem [shape: f32[4,144,8], index: 3, kind: output, shape index: {0}]   ;;  %s4157_s4 = inlined_call_operand.vmem [shape: f32[4,2,8], index: 4, kind: output, shape index: {1}]  }
   0x1 LB: > { %s2470_s16 = sadd.s32 4294967295, %s3364_s15   ;;  %p2474_p0 = scmp.ge.s32.totalorder %s3364_s15, 1  ;;  %s3364_s15 = sphi %s3394_s15, %s15_s15  }
   0x2   : > { %p165_p1 = scmp.lt.s32.totalorder %s3364_s15, 5 }
   0x4   : > { %p166_p2 = pnand %p2474_p0, %p165_p1 }
   0x5   : > { %vm385_vm0 = vcmask (!%p166_p2), 1043456   ;;  %v2538_v0 = vld [vmem:[%s4154_s1 + $0x10] sm:$0xf] (!%p166_p2)  ;;  %v2478_v1 = vld [vmem:[%s4154_s1 + $0x4] sm:$0xf] (!%p166_p2)  ;;  %v3366_v2 = vmov (!%p166_p2), 0.0  }
   0x6   : > { %169 = sbr.rel (%p166_p2) target bundleno = 585 (0x249), region = 32  ;;  %2846 = vmatprep.subr.bf16.mxu0 (!%p166_p2), %v3366_v2  ;;  %2694 = vmatprep.subr.bf16.mxu1 (!%p166_p2), %v3366_v2  ;;  %v3411_v3 = vsel (!%p166_p2), %vm385_vm0, %v2538_v0, 0  ;;  %v387_v4 = vsel (!%p166_p2), %vm385_vm0, %v2478_v1, 0  ;;  %p195_p3 = scmp.lt.s32.totalorder (!%p166_p2), %s2470_s16, 3  ;;  %vm3367_vm1 = vmmov (!%p166_p2), 0   ;;  %vm357_vm4 = vcmask (!%p166_p2), 64512  }
   0x7   : > { %2847 = vmatpush3.bf16.msra.mxu0 (!%p166_p2), %v3411_v3  ;;  %2695 = vmatpush3.bf16.msra.mxu1 (!%p166_p2), %v387_v4  ;;  %vm280_vm2 = vsmask.f32 (!%p166_p2), 7424  ;;  %vm1046_vm3 = vsmask.f32 (!%p166_p2), 6400  ;;  %v228_v16 = vld [vmem:[%s4154_s1] sm:$0xf] (!%p166_p2) }
   0x8   : > { %2696 = vmatprep.mubr.msk.bf16.mxu1 (!%p166_p2), %vm3367_vm1, %v3366_v2  ;;  %2848 = vmatprep.mubr.msk.bf16.mxu0 (!%p166_p2), %vm3367_vm1, %v3366_v2  ;;  %v2549_v24 = vld [vmem:[%s4154_s1 + $0x14] sm:$0xf] (!%p166_p2)  ;;  %v513_v33 = vsel (!%p166_p2), %vm385_vm0, %v228_v16, 0  ;;  %vm1295_vm5 = vcmask (!%p166_p2), 1045504   ;;  %vm626_vm6 = vcmask (!%p166_p2), 1046528   ;;  %vm1964_vm8 = vcmask (!%p166_p2), 1044480  }
   0x9   : > { %2884 = vmatprep.subr.bf16.mxu0 (!%p166_p2), %v3366_v2  ;;  %2732 = vmatprep.subr.bf16.mxu1 (!%p166_p2), %v3366_v2  ;;  %v1343_v41 = vsel (!%p166_p2), %vm385_vm0, %v2549_v24, 0  ;;  %vm1715_vm7 = vsmask.f32 (!%p166_p2), 5376  ;;  %vm2322_vm9 = vcmask (!%p166_p2), 57344  }
   0xd   : > { %s4159_s16 = smov (!%p195_p3, %s2470_s16), 3 }
   0xe   : > { %s3308_s21 = smul.u32 92, %s4159_s16  ;;  %s2477_s6 = sshll.u32 %s4159_s16, 1 }
   0xf   : > { %s208_s9 = scalar_lea.vmem %s4157_s4, %s2477_s6 }
  0x10   : > { %s3427_s24 = scalar_lea.vmem %s4153_s0, %s3308_s21 }
  0x11   : > { %v210_v5 = vld [vmem:[%s3427_s24] sm:$0xf]  ;;  %v3431_v6 = vld [vmem:[%s3427_s24 + $0x4] sm:$0xf]  ;;  %v3437_v8 = vld [vmem:[%s3427_s24 + $0x8] sm:$0xff]  }
  0x12   : > { %v3434_v7 = vcombine.low %v210_v5, %v3431_v6  ;;  %v799_v9 = vld [vmem:[%s3427_s24 + $0x8] sm:$0xe]  ;;  %v3441_v10 = vld [vmem:[%s3427_s24 + $0xc] sm:$0xf]  ;;  %v289_v13 = vshll.u32 %v3437_v8, 16  ;;  %v3450_v15 = vld [vmem:[%s3427_s24 + $0x10] sm:$0xff]  }
  0x13   : > { %v3447_v14 = vcombine.low %v799_v9, %v3441_v10  ;;  %v3456_v17 = vld [vmem:[%s3427_s24 + $0x10] sm:$0xff]   ;;  %v1056_v22 = vshrl.u32 %v3450_v15, 16  ;;  %v1059_v23 = vshll.u32 %v3450_v15, 16  ;;  %v293_v25 = vshrl.u32 %v3437_v8, 16  ;;  %v3467_v26 = vld [vmem:[%s3427_s24 + $0x18] sm:$0xff]   ;;  %v3476_v40 = vld [vmem:[%s3427_s24 + $0x20] sm:$0xff]  }
  0x14   : > { %v282_v11 = vshrl.u32 %v3434_v7, 16  ;;  %v284_v12 = vshll.u32 %v3434_v7, 16  ;;  %v291_v19 = vrot.slane %v289_v13, 1  ;;  %v297_v30 = vshll.u32 %v3456_v17, 16  ;;  %v3482_v45 = vld [vmem:[%s3427_s24 + $0x18] sm:$0xff]   ;;  %v3498_v56 = vld [vmem:[%s3427_s24 + $0x28] sm:$0xff]  }
  0x15   : > { %v1048_v20 = vshrl.u32 %v3447_v14, 16  ;;  %v1051_v21 = vshll.u32 %v3447_v14, 16  ;;  %v1058_v31 = vrot.slane %v1056_v22, 1  ;;  %v1061_v32 = vrot.slane %v1059_v23, 2  ;;  %v3503_v59 = vld [vmem:[%s3427_s24 + $0x20] sm:$0xff]   ;;  %v3521_v16 = vld [vmem:[%s3427_s24 + $0x28] sm:$0xff]  }
  0x16   : > { %v286_v18 = vrot.slane %v284_v12, 1  ;;  %v1065_v34 = vshrl.u32 %v3467_v26, 16  ;;  %v1068_v37 = vshll.u32 %v3467_v26, 16  ;;  %v295_v42 = vor.u32 %v293_v25, %v291_v19 }
  0x17   : > { %v1050_v28 = vrot.slane %v1048_v20, 1  ;;  %v1053_v29 = vrot.slane %v1051_v21, 2  ;;  %v1062_v38 = vor.u32 %v1061_v32, %v1058_v31  ;;  %v299_v43 = vrot.slane %v297_v30, 1  ;;  %v3536_v30 = vld [vmem:[%s3427_s24 + $0x30] sm:$0xff]  }
  0x18   : > { %v287_v27 = vor.u32 %v286_v18, %v282_v11  ;;  %v1067_v39 = vrot.slane %v1065_v34, 1  ;;  %v1070_v44 = vrot.slane %v1068_v37, 2  ;;  %v1074_v48 = vshrl.u32 %v3476_v40, 16  ;;  %v3516_v11 = vld [vmem:[%s3427_s24 + $0x30] sm:$0xff]  }
  0x19   : > { %v1054_v36 = vor.u32 %v1053_v29, %v1050_v28  ;;  %v1077_v49 = vshll.u32 %v3476_v40, 16  ;;  %v300_v50 = vsel %vm280_vm2, %v295_v42, %v299_v43  ;;  %v301_v51 = vshrl.u32 %v3456_v17, 16 }
  0x1a   : > { %v292_v35 = vsel %vm280_vm2, %v287_v27, %v291_v19  ;;  %v1071_v47 = vor.u32 %v1070_v44, %v1067_v39  ;;  %v305_v52 = vshll.u32 %v3482_v45, 16  ;;  %v1076_v54 = vrot.slane %v1074_v48, 1 }
  0x1b   : > { %2697 = vmatmul.mubr.msk.bf16.vlgmr.msra.gmra.mrb[0].mxu1 %vm357_vm4, %v292_v35  ;;  %v1063_v46 = vsel %vm1046_vm3, %v1054_v36, %v1062_v38  ;;  %v1079_v55 = vrot.slane %v1077_v49, 2  ;;  %v303_v57 = vor.u32 %v301_v51, %v299_v43  ;;  %v1083_v61 = vshrl.u32 %v3498_v56, 16  ;;  %v1289_v35 = vld [vmem:[%s3427_s24 + $0x8] sm:$0xc] }
  0x1c   : > { %2700 = vmatprep.mubr.msk.bf16.mxu1 %vm3367_vm1, %v3366_v2  ;;  %2733 = vmatpush3.bf16.msra.mxu1 %v513_v33  ;;  %v1072_v53 = vsel %vm1046_vm3, %v1062_v38, %v1071_v47  ;;  %v307_v58 = vrot.slane %v305_v52, 1  ;;  %v1086_v62 = vshll.u32 %v3498_v56, 16  ;;  %v309_v0 = vshrl.u32 %v3482_v45, 16  ;;  %v3572_v52 = vld [vmem:[%s3427_s24 + $0x40] sm:$0xff]  }
  0x1d   : > { %2770 = vmatprep.subr.bf16.mxu1 %v3366_v2  ;;  %2849 = vmatmul.mubr.msk.bf16.vlgmr.msra.gmra.mrb[0].mxu0 %vm357_vm4, %v1063_v46  ;;  %v1080_v60 = vor.u32 %v1079_v55, %v1076_v54  ;;  %v313_v1 = vshll.u32 %v3503_v59, 16  ;;  %v1085_v5 = vrot.slane %v1083_v61, 1  ;;  %v1092_v19 = vshrl.u32 %v3516_v11, 16 }
  0x1e   : > { %2885 = vmatpush3.bf16.msra.mxu0 %v1343_v41  ;;  %2852 = vmatprep.mubr.msk.bf16.mxu0 %vm3367_vm1, %v3366_v2  ;;  %v308_v63 = vsel %vm280_vm2, %v303_v57, %v307_v58  ;;  %v1088_v9 = vrot.slane %v1086_v62, 2  ;;  %v311_v12 = vor.u32 %v309_v0, %v307_v58  ;;  %v1095_v20 = vshll.u32 %v3516_v11, 16  ;;  %v3554_v41 = vld [vmem:[%s3427_s24 + $0x38] sm:$0xff]   ;;  %v3587_v62 = vld [vmem:[%s3427_s24 + $0x48] ss:$0 sps:$4 sm:$0x11]  }
  0x1f   : > { %2922 = vmatprep.subr.bf16.mxu0 %v3366_v2  ;;  %v1081_v4 = vsel %vm1046_vm3, %v1071_v47, %v1080_v60  ;;  %v315_v13 = vrot.slane %v313_v1, 1  ;;  %v317_v22 = vshrl.u32 %v3503_v59, 16  ;;  %v321_v23 = vshll.u32 %v3521_v16, 16  ;;  %v2560_v47 = vld [vmem:[%s4154_s1 + $0x18] sm:$0xf] }
  0x20   : > { %v1089_v18 = vor.u32 %v1088_v9, %v1085_v5  ;;  %v1094_v25 = vrot.slane %v1092_v19, 1  ;;  %v1097_v27 = vrot.slane %v1095_v20, 2  ;;  %v325_v33 = vshrl.u32 %v3521_v16, 16  ;;  %v2507_v20 = vld [vmem:[%s4154_s1 + $0x8] sm:$0xf] }
  0x21   : > { %v316_v21 = vsel %vm280_vm2, %v311_v12, %v315_v13  ;;  %v319_v28 = vor.u32 %v317_v22, %v315_v13  ;;  %v323_v29 = vrot.slane %v321_v23, 1  ;;  %v329_v34 = vshll.u32 %v3536_v30, 16 }
  0x22   : > { %v1090_v24 = vsel %vm1046_vm3, %v1080_v60, %v1089_v18  ;;  %v3541_v31 = vor.u32 %v1097_v27, %v1094_v25  ;;  %v2550_v37 = vcombine.low %v1289_v35, %v3441_v10  ;;  %v1297_v43 = vrot.slane %v3450_v15, 2  ;;  %v3634_v27 = vld [vmem:[%s3427_s24 + $0x40] sm:$0xff]   ;;  %v3658_v35 = vld [vmem:[%s3427_s24 + $0x50] ss:$0 sps:$4 sm:$0x33]  }
  0x23   : > { %2701 = vmatmul.mubr.msk.bf16.gmra.mrb[4].mxu1 %vm357_vm4, %v300_v50  ;;  %v324_v32 = vsel %vm280_vm2, %v319_v28, %v323_v29  ;;  %v327_v38 = vor.u32 %v325_v33, %v323_v29  ;;  %v331_v39 = vrot.slane %v329_v34, 1  ;;  %v333_v10 = vshrl.u32 %v3536_v30, 16 }
  0x24   : > { %2704 = vmatprep.mubr.msk.bf16.mxu1 %vm3367_vm1, %v3366_v2  ;;  %v1099_v36 = vsel %vm1046_vm3, %v1089_v18, %v3541_v31  ;;  %v1296_v42 = vrot.slane %v2550_v37, 2  ;;  %v337_v46 = vshll.u32 %v3554_v41, 16  ;;  %v1584_v49 = vsel %vm385_vm0, %v2560_v47, 0  ;;  %v1468_v37 = vld [vmem:[%s3427_s24 + $0x10] sm:$0xc] }
  0x25   : > { %2853 = vmatmul.mubr.msk.bf16.gmra.mrb[4].mxu0 %vm357_vm4, %v1072_v53  ;;  %v332_v44 = vsel %vm280_vm2, %v327_v38, %v331_v39  ;;  %v335_v50 = vor.u32 %v333_v10, %v331_v39  ;;  %v1299_v53 = vrot.slane %v3467_v26, 2  ;;  %v341_v55 = vshrl.u32 %v3554_v41, 16  ;;  %v3668_v38 = vld [vmem:[%s3427_s24 + $0x14] sm:$0xf] }
  0x26   : > { %2856 = vmatprep.mubr.msk.bf16.mxu0 %vm3367_vm1, %v3366_v2  ;;  %v1298_v48 = vsel %vm1295_vm5, %v1296_v42, %v1297_v43  ;;  %v339_v51 = vrot.slane %v337_v46, 1  ;;  %v345_v57 = vshll.u32 %v3572_v52, 16  ;;  %v349_v1 = vshrl.u32 %v3572_v52, 16  ;;  %v2580_v46 = vld [vmem:[%s4154_s1 + $0x1c] sm:$0xf] }
  0x27   : > { %v1300_v58 = vsel %vm1295_vm5, %v1297_v43, %v1299_v53  ;;  %v1303_v13 = vrot.slane %v3498_v56, 2  ;;  %v674_v22 = vsel %vm385_vm0, %v2507_v20, 0  ;;  %v1309_v28 = vrot.slane %v3634_v27, 2  ;;  %v3677_v43 = vld [vmem:[%s3427_s24 + $0x18] sm:$0xff]  }
  0x28   : > { %v340_v54 = vsel %vm280_vm2, %v335_v50, %v339_v51  ;;  %v343_v60 = vor.u32 %v341_v55, %v339_v51  ;;  %v347_v61 = vrot.slane %v345_v57, 1  ;;  %v3674_v42 = vcombine.low %v1468_v37, %v3668_v38  ;;  %v3719_v57 = vld [vmem:[%s3427_s24 + $0x30] sm:$0xff]  }
  0x29   : > { %v1538_v10 = vrot.slane %v3677_v43, 2  ;;  %v636_v37 = vrot.slane %v3521_v16, 1 }
  0x2a   : > { %v348_v0 = vsel %vm280_vm2, %v343_v60, %v347_v61  ;;  %v351_v9 = vor.u32 %v349_v1, %v347_v61  ;;  %v1544_v60 = vrot.slane %v3719_v57, 2 }
  0x2b   : > { %2705 = vmatmul.mubr.msk.bf16.gmra.mrb[8].mxu1 %vm357_vm4, %v308_v63  ;;  %v1301_v63 = vrot.slane %v3476_v40, 2 }
  0x2c   : > { %2708 = vmatprep.mubr.msk.bf16.mxu1 %vm3367_vm1, %v3366_v2 }
  0x2d   : > { %2857 = vmatmul.mubr.msk.bf16.gmra.mrb[8].mxu0 %vm357_vm4, %v1081_v4  ;;  %v353_v4 = vshll.u32 %v3587_v62, 16  ;;  %v1302_v5 = vsel %vm1295_vm5, %v1299_v53, %v1301_v63  ;;  %v1304_v19 = vsel %vm1295_vm5, %v1301_v63, %v1303_v13  ;;  %v3707_v53 = vld [vmem:[%s3427_s24 + $0x28] sm:$0xff]  }
  0x2e   : > { %2860 = vmatprep.mubr.msk.bf16.mxu0 %vm3367_vm1, %v3366_v2 }
  0x2f   : > { %v355_v12 = vrot.slane %v353_v4, 1  ;;  %v628_v4 = vrot.slane %v3437_v8, 1 }
  0x31   : > { %v356_v18 = vsel %vm280_vm2, %v351_v9, %v355_v12 }
  0x33   : > { %2709 = vmatmul.mubr.msk.bf16.gmra.mrb[12].mxu1 %vm357_vm4, %v316_v21  ;;  %v1305_v21 = vrot.slane %v3516_v11, 2 }
  0x34   : > { %2712 = vmatprep.mubr.msk.bf16.mxu1 %vm3367_vm1, %v3366_v2 }
  0x35   : > { %2861 = vmatmul.mubr.msk.bf16.gmra.mrb[12].mxu0 %vm357_vm4, %v1090_v24  ;;  %v1306_v23 = vsel %vm1295_vm5, %v1303_v13, %v1305_v21  ;;  %v3621_v24 = vld [vmem:[%s3427_s24 + $0x38] sm:$0xff]   ;;  %v3750_v13 = vld [vmem:[%s3427_s24 + $0x40] sm:$0xff]  }
  0x36   : > { %2864 = vmatprep.mubr.msk.bf16.mxu0 %vm3367_vm1, %v3366_v2  ;;  %v1307_v25 = vrot.slane %v3621_v24, 2 }
  0x38   : > { %v1310_v29 = vsel %vm1295_vm5, %v1307_v25, %v1309_v28 }
  0x3b   : > { %2713 = vmatmul.mubr.msk.bf16.gmra.mrb[16].mxu1 %vm357_vm4, %v324_v32  ;;  %v3646_v32 = vld [vmem:[%s3427_s24 + $0x48] sm:$0xff]  }
  0x3c   : > { %2716 = vmatprep.mubr.msk.bf16.mxu1 %vm3367_vm1, %v3366_v2  ;;  %v1311_v33 = vrot.slane %v3646_v32, 2 }
  0x3d   : > { %2865 = vmatmul.mubr.msk.bf16.gmra.mrb[16].mxu0 %vm357_vm4, %v1099_v36  ;;  %v1313_v36 = vrot.slane %v3658_v35, 2 }
  0x3e   : > { %2886 = vmatprep.mubr.msk.bf16.mxu0 %vm3367_vm1, %v3366_v2  ;;  %v1312_v34 = vsel %vm1295_vm5, %v1309_v28, %v1311_v33  ;;  %v3777_v28 = vld [vmem:[%s3427_s24 + $0x50] sm:$0xff]  }
  0x3f   : > { %v1314_v39 = vsel %vm1295_vm5, %v1311_v33, %v1313_v36 }
  0x43   : > { %2717 = vmatmul.mubr.msk.bf16.gmra.mrb[20].mxu1 %vm357_vm4, %v332_v44  ;;  %v1537_v44 = vrot.slane %v3674_v42, 2 }
  0x44   : > { %2720 = vmatprep.mubr.msk.bf16.mxu1 %vm3367_vm1, %v3366_v2 }
  0x45   : > { %2887 = vmatmul.mubr.msk.bf16.vlgmr.msra.gmra.mrb[0].mxu0 %vm357_vm4, %v1298_v48  ;;  %v1539_v47 = vsel %vm1295_vm5, %v1537_v44, %v1538_v10  ;;  %v3693_v48 = vld [vmem:[%s3427_s24 + $0x20] sm:$0xff]   ;;  %v1720_v44 = vshll.u32 %v3674_v42, 16 }
  0x46   : > { %2923 = vmatpush3.bf16.msra.mxu0 %v1584_v49  ;;  %2890 = vmatprep.mubr.msk.bf16.mxu0 %vm3367_vm1, %v3366_v2  ;;  %v1833_v49 = vsel %vm385_vm0, %v2580_v46, 0  ;;  %v1540_v50 = vrot.slane %v3693_v48, 2  ;;  %v1728_v46 = vshll.u32 %v3677_v43, 16 }
  0x47   : > { %2960 = vmatprep.subr.bf16.mxu0 %v3366_v2 }
  0x48   : > { %v1541_v51 = vsel %vm1295_vm5, %v1538_v10, %v1540_v50  ;;  %v1725_v10 = vshrl.u32 %v3677_v43, 16 }
  0x4b   : > { %2721 = vmatmul.mubr.msk.bf16.gmra.mrb[24].mxu1 %vm357_vm4, %v340_v54  ;;  %v1542_v54 = vrot.slane %v3707_v53, 2 }
  0x4c   : > { %2724 = vmatprep.mubr.msk.bf16.mxu1 %vm3367_vm1, %v3366_v2 }
  0x4d   : > { %2891 = vmatmul.mubr.msk.bf16.gmra.mrb[4].mxu0 %vm357_vm4, %v1300_v58  ;;  %v1543_v55 = vsel %vm1295_vm5, %v1540_v50, %v1542_v54  ;;  %v620_v58 = vld [vmem:[%s3427_s24] sm:$0xe]  ;;  %v1545_v63 = vsel %vm1295_vm5, %v1542_v54, %v1544_v60  ;;  %v1722_v50 = vrot.slane %v1720_v44, 3  ;;  %v1730_v54 = vrot.slane %v1728_v46, 3  ;;  %v2160_v46 = vld [vmem:[%s4155_s2 + $0x28] sm:$0xff] }
  0x4e   : > { %2894 = vmatprep.mubr.msk.bf16.mxu0 %vm3367_vm1, %v3366_v2  ;;  %v2508_v61 = vcombine.low %v620_v58, %v3431_v6  ;;  %v2518_v6 = vld [vmem:[%s4154_s1 + $0xc] sm:$0xf]  ;;  %v644_v44 = vrot.slane %v3587_v62, 1 }
  0x4f   : > { %v915_v12 = vsel %vm385_vm0, %v2518_v6, 0 }
  0x50   : > { %v627_v1 = vrot.slane %v2508_v61, 1  ;;  %v1737_v61 = vshll.u32 %v3693_v48, 16 }
  0x52   : > { %v629_v9 = vsel %vm626_vm6, %v627_v1, %v628_v4  ;;  %v2591_v1 = vld [vmem:[%s4154_s1 + $0x20] sm:$0xf]  ;;  %v1739_v6 = vrot.slane %v1737_v61, 3 }
  0x53   : > { %2725 = vmatmul.mubr.msk.bf16.gmra.mrb[28].mxu1 %vm357_vm4, %v348_v0  ;;  %v3733_v0 = vld [vmem:[%s3427_s24 + $0x38] sm:$0xff]   ;;  %v2163_v61 = vld [vmem:[%s4155_s2 + $0x40] sm:$0xff] }
  0x54   : > { %2728 = vmatprep.mubr.msk.bf16.mxu1 %vm3367_vm1, %v3366_v2  ;;  %v1764_v62 = vshll.u32 %v3733_v0, 16 }
  0x55   : > { %2895 = vmatmul.mubr.msk.bf16.gmra.mrb[8].mxu0 %vm357_vm4, %v1302_v5  ;;  %v1546_v5 = vrot.slane %v3733_v0, 2 }
  0x56   : > { %2898 = vmatprep.mubr.msk.bf16.mxu0 %vm3367_vm1, %v3366_v2 }
  0x5b   : > { %2729 = vmatmul.mubr.msk.bf16.gmra.mrb[32].mxu1 %vm357_vm4, %v356_v18  ;;  %v630_v18 = vrot.slane %v3456_v17, 1 }
  0x5c   : > { %2734 = vmatprep.mubr.msk.bf16.mxu1 %vm3367_vm1, %v3366_v2 }
  0x5d   : > { %2899 = vmatmul.mubr.msk.bf16.gmra.mrb[12].mxu0 %vm357_vm4, %v1304_v19  ;;  %v1548_v19 = vrot.slane %v3750_v13, 2  ;;  %v631_v20 = vsel %vm626_vm6, %v628_v4, %v630_v18 }
  0x5e   : > { %2902 = vmatprep.mubr.msk.bf16.mxu0 %vm3367_vm1, %v3366_v2 }
  0x63   : > { %2735 = vmatmul.mubr.msk.bf16.vlgmr.msra.gmra.mrb[0].mxu1 %vm357_vm4, %v3434_v7  ;;  %v1308_v7 = vsel %vm1295_vm5, %v1305_v21, %v1307_v25  ;;  %v1549_v21 = vsel %vm1295_vm5, %v1546_v5, %v1548_v19 }
  0x64   : > { %2738 = vmatprep.mubr.msk.bf16.mxu1 %vm3367_vm1, %v3366_v2  ;;  %2771 = vmatpush3.bf16.msra.mxu1 %v674_v22  ;;  %v3764_v22 = vld [vmem:[%s3427_s24 + $0x48] sm:$0xff]  }
  0x65   : > { %2808 = vmatprep.subr.bf16.mxu1 %v3366_v2  ;;  %2903 = vmatmul.mubr.msk.bf16.gmra.mrb[16].mxu0 %vm357_vm4, %v1306_v23  ;;  %v1550_v23 = vrot.slane %v3764_v22, 2 }
  0x66   : > { %2906 = vmatprep.mubr.msk.bf16.mxu0 %vm3367_vm1, %v3366_v2 }
  0x6b   : > { %2739 = vmatmul.mubr.msk.bf16.gmra.mrb[4].mxu1 %vm357_vm4, %v3437_v8  ;;  %v1547_v8 = vsel %vm1295_vm5, %v1544_v60, %v1546_v5  ;;  %v1734_v60 = vshrl.u32 %v3693_v48, 16  ;;  %v2012_v5 = vsel %vm385_vm0, %v2591_v1, 0 }
  0x6c   : > { %2742 = vmatprep.mubr.msk.bf16.mxu1 %vm3367_vm1, %v3366_v2 }
  0x6d   : > { %2907 = vmatmul.mubr.msk.bf16.gmra.mrb[20].mxu0 %vm357_vm4, %v1308_v7  ;;  %v1551_v7 = vsel %vm1295_vm5, %v1548_v19, %v1550_v23  ;;  %v1736_v4 = vrot.slane %v1734_v60, 2  ;;  %v869_v60 = vrot.slane %v3450_v15, 1  ;;  %v1773_v15 = vshll.u32 %v3750_v13, 16 }
  0x6e   : > { %2910 = vmatprep.mubr.msk.bf16.mxu0 %vm3367_vm1, %v3366_v2 }
  0x73   : > { %2743 = vmatmul.mubr.msk.bf16.gmra.mrb[8].mxu1 %vm357_vm4, %v3456_v17  ;;  %v632_v17 = vrot.slane %v3482_v45, 1 }
  0x74   : > { %2746 = vmatprep.mubr.msk.bf16.mxu1 %vm3367_vm1, %v3366_v2 }
  0x75   : > { %2911 = vmatmul.mubr.msk.bf16.gmra.mrb[24].mxu0 %vm357_vm4, %v1310_v29  ;;  %v633_v25 = vsel %vm626_vm6, %v630_v18, %v632_v17  ;;  %v1552_v29 = vrot.slane %v3777_v28, 2  ;;  %v1746_v18 = vshll.u32 %v3707_v53, 16 }
  0x76   : > { %2914 = vmatprep.mubr.msk.bf16.mxu0 %vm3367_vm1, %v3366_v2 }
  0x77   : > { %v1553_v36 = vsel %vm1295_vm5, %v1550_v23, %v1552_v29  ;;  %v2155_v23 = vld [vmem:[%s4155_s2] sm:$0xff] }
  0x7b   : > { %2747 = vmatmul.mubr.msk.bf16.gmra.mrb[12].mxu1 %vm357_vm4, %v3482_v45  ;;  %v634_v45 = vrot.slane %v3503_v59, 1 }
  0x7c   : > { %2750 = vmatprep.mubr.msk.bf16.mxu1 %vm3367_vm1, %v3366_v2 }
  0x7d   : > { %2915 = vmatmul.mubr.msk.bf16.gmra.mrb[28].mxu0 %vm357_vm4, %v1312_v34  ;;  %v635_v33 = vsel %vm626_vm6, %v632_v17, %v634_v45  ;;  %v3354_v34 = vld [vmem:[%s3427_s24 + $0x58] ss:$0 sps:$4 sm:$0x33]   ;;  %v1748_v17 = vrot.slane %v1746_v18, 3  ;;  %v2167_v18 = vld [vmem:[%s4155_s2 + $0x60] sm:$0xff] }
  0x7e   : > { %2918 = vmatprep.mubr.msk.bf16.mxu0 %vm3367_vm1, %v3366_v2 }
  0x83   : > { %2751 = vmatmul.mubr.msk.bf16.gmra.mrb[16].mxu1 %vm357_vm4, %v3503_v59  ;;  %v1554_v59 = vrot.slane %v3354_v34, 2  ;;  %v2156_v34 = vld [vmem:[%s4155_s2 + $0x8] sm:$0xff] }
  0x84   : > { %2754 = vmatprep.mubr.msk.bf16.mxu1 %vm3367_vm1, %v3366_v2 }
  0x85   : > { %2919 = vmatmul.mubr.msk.bf16.gmra.mrb[32].mxu0 %vm357_vm4, %v1314_v39  ;;  %v1717_v39 = vshrl.u32 %v3674_v42, 16 }
  0x86   : > { %2924 = vmatprep.mubr.msk.bf16.mxu0 %vm3367_vm1, %v3366_v2 }
  0x8b   : > { %2755 = vmatmul.mubr.msk.bf16.gmra.mrb[20].mxu1 %vm357_vm4, %v3521_v16  ;;  %v1719_v16 = vrot.slane %v1717_v39, 2 }
  0x8c   : > { %2758 = vmatprep.mubr.msk.bf16.mxu1 %vm3367_vm1, %v3366_v2 }
  0x8d   : > { %2925 = vmatmul.mubr.msk.bf16.vlgmr.msra.gmra.mrb[0].mxu0 %vm357_vm4, %v1539_v47  ;;  %v637_v47 = vsel %vm626_vm6, %v634_v45, %v636_v37  ;;  %v1723_v42 = vor.u32 %v1722_v50, %v1719_v16  ;;  %v1752_v45 = vshrl.u32 %v3719_v57, 16  ;;  %v2161_v50 = vld [vmem:[%s4155_s2 + $0x30] sm:$0xff] }
  0x8e   : > { %2961 = vmatpush3.bf16.msra.mxu0 %v1833_v49  ;;  %2928 = vmatprep.mubr.msk.bf16.mxu0 %vm3367_vm1, %v3366_v2  ;;  %v1555_v49 = vsel %vm1295_vm5, %v1552_v29, %v1554_v59  ;;  %v1755_v29 = vshll.u32 %v3719_v57, 16 }
  0x8f   : > { %2998 = vmatprep.subr.bf16.mxu0 %v3366_v2  ;;  %v1754_v59 = vrot.slane %v1752_v45, 2  ;;  %v873_v45 = vrot.slane %v3476_v40, 1  ;;  %v1791_v40 = vshll.u32 %v3777_v28, 16 }
  0x90   : > { %v1757_v39 = vrot.slane %v1755_v29, 3  ;;  %v2171_v29 = vld [vmem:[%s4155_s2 + $0x80] sm:$0xff] }
  0x93   : > { %2759 = vmatmul.mubr.msk.bf16.gmra.mrb[24].mxu1 %vm357_vm4, %v3536_v30 }
  0x94   : > { %2762 = vmatprep.mubr.msk.bf16.mxu1 %vm3367_vm1, %v3366_v2 }
  0x95   : > { %2929 = vmatmul.mubr.msk.bf16.gmra.mrb[4].mxu0 %vm357_vm4, %v1541_v51  ;;  %v1727_v51 = vrot.slane %v1725_v10, 2  ;;  %v2159_v10 = vld [vmem:[%s4155_s2 + $0x20] sm:$0xff] }
  0x96   : > { %2932 = vmatprep.mubr.msk.bf16.mxu0 %vm3367_vm1, %v3366_v2 }
  0x97   : > { %v1731_v58 = vor.u32 %v1730_v54, %v1727_v51  ;;  %v2162_v51 = vld [vmem:[%s4155_s2 + $0x38] sm:$0xff] }
  0x9b   : > { %2763 = vmatmul.mubr.msk.bf16.gmra.mrb[28].mxu1 %vm357_vm4, %v3554_v41 }
  0x9c   : > { %2766 = vmatprep.mubr.msk.bf16.mxu1 %vm3367_vm1, %v3366_v2 }
  0x9d   : > { %2933 = vmatmul.mubr.msk.bf16.gmra.mrb[8].mxu0 %vm357_vm4, %v1543_v55  ;;  %v638_v55 = vrot.slane %v3536_v30, 1  ;;  %v1732_v30 = vsel %vm1715_vm7, %v1723_v42, %v1731_v58  ;;  %v1766_v42 = vrot.slane %v1764_v62, 3 }
  0x9e   : > { %2936 = vmatprep.mubr.msk.bf16.mxu0 %vm3367_vm1, %v3366_v2 }
  0xa3   : > { %2767 = vmatmul.mubr.msk.bf16.gmra.mrb[32].mxu1 %vm357_vm4, %v3572_v52 }
  0xa4   : > { %2772 = vmatprep.mubr.msk.bf16.mxu1 %vm3367_vm1, %v3366_v2 }
  0xa5   : > { %2937 = vmatmul.mubr.msk.bf16.gmra.mrb[12].mxu0 %vm357_vm4, %v1545_v63  ;;  %v639_v63 = vsel %vm626_vm6, %v636_v37, %v638_v55 }
  0xa6   : > { %2940 = vmatprep.mubr.msk.bf16.mxu0 %vm3367_vm1, %v3366_v2 }
  0xab   : > { %2773 = vmatmul.mubr.msk.bf16.vlgmr.msra.gmra.mrb[0].mxu1 %vm357_vm4, %v629_v9  ;;  %v640_v9 = vrot.slane %v3554_v41, 1  ;;  %v642_v41 = vrot.slane %v3572_v52, 1 }
  0xac   : > { %2776 = vmatprep.mubr.msk.bf16.mxu1 %vm3367_vm1, %v3366_v2  ;;  %2809 = vmatpush3.bf16.msra.mxu1 %v915_v12  ;;  %v1740_v12 = vor.u32 %v1739_v6, %v1736_v4  ;;  %v2165_v4 = vld [vmem:[%s4155_s2 + $0x50] sm:$0xff]  ;;  %v2166_v6 = vld [vmem:[%s4155_s2 + $0x58] sm:$0xff] }
  0xad   : > { %3036 = vmatprep.subr.bf16.mxu1 %v3366_v2  ;;  %2941 = vmatmul.mubr.msk.bf16.gmra.mrb[16].mxu0 %vm357_vm4, %v1547_v8  ;;  %v1743_v8 = vshrl.u32 %v3707_v53, 16  ;;  %v641_v19 = vsel %vm626_vm6, %v638_v55, %v640_v9  ;;  %v643_v52 = vsel %vm626_vm6, %v640_v9, %v642_v41  ;;  %v645_v16 = vsel %vm626_vm6, %v642_v41, %v644_v44  ;;  %v2170_v41 = vld [vmem:[%s4155_s2 + $0x78] sm:$0xff] }
  0xae   : > { %2944 = vmatprep.mubr.msk.bf16.mxu0 %vm3367_vm1, %v3366_v2  ;;  %v3941_v44 = vld [vmem:[%s3427_s24 + $0x58] ss:$0 sps:$4 sm:$0x77]  }
  0xb3   : > { %2777 = vmatmul.mubr.msk.bf16.gmra.mrb[4].mxu1 %vm357_vm4, %v631_v20  ;;  %v1741_v20 = vsel %vm1715_vm7, %v1731_v58, %v1740_v12  ;;  %v868_v58 = vrot.slane %v3447_v14, 1  ;;  %v1770_v14 = vshrl.u32 %v3750_v13, 16 }
  0xb4   : > { %2780 = vmatprep.mubr.msk.bf16.mxu1 %vm3367_vm1, %v3366_v2 }
  0xb5   : > { %2945 = vmatmul.mubr.msk.bf16.gmra.mrb[20].mxu0 %vm357_vm4, %v1549_v21  ;;  %v1745_v21 = vrot.slane %v1743_v8, 2  ;;  %v1772_v9 = vrot.slane %v1770_v14, 2  ;;  %v871_v8 = vrot.slane %v3467_v26, 1  ;;  %v1779_v26 = vshrl.u32 %v3764_v22, 16 }
  0xb6   : > { %2948 = vmatprep.mubr.msk.bf16.mxu0 %vm3367_vm1, %v3366_v2  ;;  %v881_v14 = vrot.slane %v3634_v27, 1 }
  0xbb   : > { %2781 = vmatmul.mubr.msk.bf16.gmra.mrb[8].mxu1 %vm357_vm4, %v633_v25  ;;  %v2157_v25 = vld [vmem:[%s4155_s2 + $0x10] sm:$0xff] }
  0xbc   : > { %2784 = vmatprep.mubr.msk.bf16.mxu1 %vm3367_vm1, %v3366_v2 }
  0xbd   : > { %2949 = vmatmul.mubr.msk.bf16.gmra.mrb[24].mxu0 %vm357_vm4, %v1551_v7  ;;  %v1749_v7 = vor.u32 %v1748_v17, %v1745_v21  ;;  %v872_v21 = vsel %vm626_vm6, %v869_v60, %v871_v8  ;;  %v2169_v17 = vld [vmem:[%s4155_s2 + $0x70] sm:$0xff] }
  0xbe   : > { %2952 = vmatprep.mubr.msk.bf16.mxu0 %vm3367_vm1, %v3366_v2 }
  0xbf   : > { %v1750_v37 = vsel %vm1715_vm7, %v1740_v12, %v1749_v7  ;;  %v1775_v12 = vrot.slane %v1773_v15, 3 }
  0xc3   : > { %2785 = vmatmul.mubr.msk.bf16.gmra.mrb[12].mxu1 %vm357_vm4, %v635_v33  ;;  %v3368_v33 = vmov 0  }
  0xc4   : > { %2788 = vmatprep.mubr.msk.bf16.mxu1 %vm3367_vm1, %v3366_v2  ;;  %3321 = vset.pattern.permute.xlu0 %v3368_v33 }
  0xc5   : > { %2953 = vmatmul.mubr.msk.bf16.gmra.mrb[28].mxu0 %vm357_vm4, %v1553_v36  ;;  %2175 = vperm.xlu0 %3321, %v2155_v23   ;;  %v2158_v36 = vld [vmem:[%s4155_s2 + $0x18] sm:$0xff] }
  0xc6   : > { %2956 = vmatprep.mubr.msk.bf16.mxu0 %vm3367_vm1, %v3366_v2  ;;  %3322 = vset.pattern.permute.xlu1 %v3368_v33  ;;  %v2172_v33 = vld [vmem:[%s4155_s2 + $0x88] sm:$0xff] }
  0xc7   : > { %2185 = vperm.xlu1 %3322, %v2157_v25   ;;  %v1781_v25 = vrot.slane %v1779_v26, 2 }
  0xc9   : > { %2180 = vperm.xlu0 %3321, %v2156_v34   ;;  %v1788_v34 = vshrl.u32 %v3777_v28, 16 }
  0xcb   : > { %2789 = vmatmul.mubr.msk.bf16.gmra.mrb[16].mxu1 %vm357_vm4, %v637_v47  ;;  %2190 = vperm.xlu1 %3322, %v2158_v36   ;;  %v1758_v47 = vor.u32 %v1757_v39, %v1754_v59  ;;  %v874_v36 = vsel %vm626_vm6, %v871_v8, %v873_v45  ;;  %v1790_v59 = vrot.slane %v1788_v34, 2  ;;  %v1793_v39 = vrot.slane %v1791_v40, 3 }
  0xcc   : > { %2792 = vmatprep.mubr.msk.bf16.mxu1 %vm3367_vm1, %v3366_v2  ;;  %v1101_v8 = vshrl.u32 %v3621_v24, 16 }
  0xcd   : > { %2957 = vmatmul.mubr.msk.bf16.gmra.mrb[32].mxu0 %vm357_vm4, %v1555_v49  ;;  %v1761_v49 = vshrl.u32 %v3733_v0, 16  ;;  %2195 = vperm.xlu0 %3321, %v2159_v10   ;;  %v1759_v54 = vsel %vm1715_vm7, %v1749_v7, %v1758_v47  ;;  %v875_v10 = vrot.slane %v3498_v56, 1  ;;  %v877_v56 = vrot.slane %v3516_v11, 1 }
  0xce   : > { %2962 = vmatprep.mubr.msk.bf16.mxu0 %vm3367_vm1, %v3366_v2  ;;  %v879_v11 = vrot.slane %v3621_v24, 1 }
  0xcf   : > { %2200 = vperm.xlu1 %3322, %v2160_v46   ;;  %v1763_v55 = vrot.slane %v1761_v49, 2  ;;  %v1794_v46 = vor.u32 %v1793_v39, %v1790_v59  ;;  %v1800_v49 = vshll.u32 %v3941_v44, 16  ;;  %v876_v62 = vsel %vm626_vm6, %v873_v45, %v875_v10 }
  0xd0   : > { %v882_v15 = vsel %vm626_vm6, %v879_v11, %v881_v14  ;;  %v1119_v45 = vshrl.u32 %v3646_v32, 16 }
  0xd1   : > { %2205 = vperm.xlu0 %3321, %v2161_v50   ;;  %v1767_v1 = vor.u32 %v1766_v42, %v1763_v55  ;;  %v878_v55 = vsel %vm626_vm6, %v875_v10, %v877_v56  ;;  %v1958_v42 = vld [vmem:[%s3427_s24 + $0x10] sm:$0x8] }
  0xd3   : > { %2793 = vmatmul.mubr.msk.bf16.gmra.mrb[20].mxu1 %vm357_vm4, %v639_v63  ;;  %2210 = vperm.xlu1 %3322, %v2162_v51   ;;  %v2164_v63 = vld [vmem:[%s4155_s2 + $0x48] sm:$0xff]  ;;  %v1802_v51 = vrot.slane %v1800_v49, 3  ;;  %v1982_v49 = vrot.slane %v3941_v44, 3 }
  0xd4   : > { %2796 = vmatprep.mubr.msk.bf16.mxu1 %vm3367_vm1, %v3366_v2 }
  0xd5   : > { %2963 = vmatmul.mubr.msk.bf16.vlgmr.msra.gmra.mrb[0].mxu0 %vm357_vm4, %v1732_v30  ;;  %v870_v30 = vsel %vm626_vm6, %v868_v58, %v869_v60  ;;  %2215 = vperm.xlu0 %3321, %v2163_v61   ;;  %v2592_v60 = vcombine.low %v1958_v42, %v3668_v38 }
  0xd6   : > { %2999 = vmatpush3.bf16.msra.mxu0 %v2012_v5  ;;  %2966 = vmatprep.mubr.msk.bf16.mxu0 %vm3367_vm1, %v3366_v2  ;;  %v1768_v5 = vsel %vm1715_vm7, %v1758_v47, %v1767_v1  ;;  %v1797_v47 = vshrl.u32 %v3941_v44, 16 }
  0xd7   : > { %2220 = vperm.xlu1 %3322, %v2164_v63   ;;  %v1965_v61 = vrot.slane %v2592_v60, 3  ;;  %v1966_v63 = vrot.slane %v3677_v43, 3  ;;  %v1968_v43 = vrot.slane %v3693_v48, 3 }
  0xd8   : > { %v1799_v50 = vrot.slane %v1797_v47, 2 }
  0xd9   : > { %2225 = vperm.xlu0 %3321, %v2165_v4   ;;  %v1967_v38 = vsel %vm1964_vm8, %v1965_v61, %v1966_v63  ;;  %v883_v4 = vrot.slane %v3646_v32, 1 }
  0xdb   : > { %2797 = vmatmul.mubr.msk.bf16.gmra.mrb[24].mxu1 %vm357_vm4, %v641_v19  ;;  %2230 = vperm.xlu1 %3322, %v2166_v6   ;;  %v2168_v19 = vld [vmem:[%s4155_s2 + $0x68] sm:$0xff]  ;;  %v1970_v6 = vrot.slane %v3707_v53, 3  ;;  %v884_v48 = vsel %vm626_vm6, %v881_v14, %v883_v4  ;;  %v1972_v53 = vrot.slane %v3719_v57, 3  ;;  %v1974_v57 = vrot.slane %v3733_v0, 3 }
  0xdc   : > { %2800 = vmatprep.mubr.msk.bf16.mxu1 %vm3367_vm1, %v3366_v2 }
  0xdd   : > { %2967 = vmatmul.mubr.msk.bf16.gmra.mrb[4].mxu0 %vm357_vm4, %v1741_v20  ;;  %v1776_v20 = vor.u32 %v1775_v12, %v1772_v9  ;;  %2235 = vperm.xlu0 %3321, %v2167_v18   ;;  %v1971_v9 = vsel %vm1964_vm8, %v1968_v43, %v1970_v6  ;;  %v1104_v18 = vshll.u32 %v3621_v24, 16  ;;  %v1110_v24 = vshrl.u32 %v3634_v27, 16 }
  0xde   : > { %2970 = vmatprep.mubr.msk.bf16.mxu0 %vm3367_vm1, %v3366_v2 }
  0xdf   : > { %2240 = vperm.xlu1 %3322, %v2168_v19   ;;  %v1777_v23 = vsel %vm1715_vm7, %v1767_v1, %v1776_v20  ;;  %v880_v1 = vsel %vm626_vm6, %v877_v56, %v879_v11  ;;  %v1106_v26 = vrot.slane %v1104_v18, 2 }
  0xe1   : > { %2245 = vperm.xlu0 %3321, %v2169_v17   ;;  %v1113_v17 = vshll.u32 %v3634_v27, 16 }
  0xe3   : > { %2801 = vmatmul.mubr.msk.bf16.gmra.mrb[28].mxu1 %vm357_vm4, %v643_v52  ;;  %2250 = vperm.xlu1 %3322, %v2170_v41  }
  0xe4   : > { %2804 = vmatprep.mubr.msk.bf16.mxu1 %vm3367_vm1, %v3366_v2 }
  0xe5   : > { %2971 = vmatmul.mubr.msk.bf16.gmra.mrb[8].mxu0 %vm357_vm4, %v1750_v37  ;;  %2255 = vperm.xlu0 %3321, %v2171_v29   ;;  %v1122_v29 = vshll.u32 %v3646_v32, 16  ;;  %v1128_v32 = vshrl.u32 %v3658_v35, 16 }
  0xe6   : > { %2974 = vmatprep.mubr.msk.bf16.mxu0 %vm3367_vm1, %v3366_v2 }
  0xe7   : > { %2260 = vperm.xlu1 %3322, %v2172_v33   ;;  %v1121_v33 = vrot.slane %v1119_v45, 1  ;;  %v1130_v59 = vrot.slane %v1128_v32, 1 }
  0xeb   : > { %2805 = vmatmul.mubr.msk.bf16.gmra.mrb[32].mxu1 %vm357_vm4, %v645_v16 }
  0xec   : > { %2810 = vmatprep.mubr.msk.bf16.mxu1 %vm3367_vm1, %v3366_v2 }
  0xed   : > { %2975 = vmatmul.mubr.msk.bf16.gmra.mrb[12].mxu0 %vm357_vm4, %v1759_v54  ;;  %v1803_v54 = vor.u32 %v1802_v51, %v1799_v50 }
  0xee   : > { %2978 = vmatprep.mubr.msk.bf16.mxu0 %vm3367_vm1, %v3366_v2 }
  0xef   : > { %v1804_v58 = vsel %vm1715_vm7, %v1794_v46, %v1803_v54 }
  0xf3   : > { %2811 = vmatmul.mubr.msk.bf16.vlgmr.msra.gmra.mrb[0].mxu1 %vm357_vm4, %v870_v30  ;;  %v1969_v30 = vsel %vm1964_vm8, %v1966_v63, %v1968_v43 }
  0xf4   : > { %2814 = vmatprep.mubr.msk.bf16.mxu1 %vm3367_vm1, %v3366_v2  ;;  %3037 = vmatpush3.bf16.msra.mxu1 %v3411_v3  ;;  %v1782_v3 = vshll.u32 %v3764_v22, 16 }
  0xf5   : > { %2979 = vmatmul.mubr.msk.bf16.gmra.mrb[16].mxu0 %vm357_vm4, %v1768_v5  ;;  %v3357_v5 = vld [vmem:[%s3427_s24 + $0x50] ss:$0 sps:$4 sm:$0x11]   ;;  %s3309_s24 = smul.u32 144, %s4159_s16 }
  0xf6   : > { %2982 = vmatprep.mubr.msk.bf16.mxu0 %vm3367_vm1, %v3366_v2  ;;  %v1784_v7 = vrot.slane %v1782_v3, 3  ;;  %v885_v12 = vrot.slane %v3357_v5, 1  ;;  %v1973_v3 = vsel %vm1964_vm8, %v1970_v6, %v1972_v53 }
  0xf7   : > { %s4068_s5 = scalar_lea.vmem %s4156_s3, %s3309_s24 }
  0xf8   : > { %v1785_v52 = vor.u32 %v1784_v7, %v1781_v25  ;;  %v886_v19 = vsel %vm626_vm6, %v883_v4, %v885_v12  ;;  %v1115_v25 = vrot.slane %v1113_v17, 2  ;;  %v1975_v7 = vsel %vm1964_vm8, %v1972_v53, %v1974_v57 }
  0xfa   : > { %v1786_v37 = vsel %vm1715_vm7, %v1776_v20, %v1785_v52  ;;  %v1795_v16 = vsel %vm1715_vm7, %v1785_v52, %v1794_v46  ;;  %v1103_v20 = vrot.slane %v1101_v8, 1  ;;  %v1124_v52 = vrot.slane %v1122_v29, 2 }
  0xfb   : > { %2815 = vmatmul.mubr.msk.bf16.gmra.mrb[4].mxu1 %vm357_vm4, %v872_v21 }
  0xfc   : > { %2818 = vmatprep.mubr.msk.bf16.mxu1 %vm3367_vm1, %v3366_v2  ;;  %v1107_v21 = vor.u32 %v1106_v26, %v1103_v20  ;;  %v1125_v40 = vor.u32 %v1124_v52, %v1121_v33 }
  0xfd   : > { %2983 = vmatmul.mubr.msk.bf16.gmra.mrb[20].mxu0 %vm357_vm4, %v1777_v23  ;;  %v1112_v23 = vrot.slane %v1110_v24, 1 }
  0xfe   : > { %2986 = vmatprep.mubr.msk.bf16.mxu0 %vm3367_vm1, %v3366_v2  ;;  %v1108_v41 = vsel %vm1046_vm3, %v3541_v31, %v1107_v21  ;;  %v1976_v31 = vrot.slane %v3750_v13, 3  ;;  %v1978_v13 = vrot.slane %v3764_v22, 3 }
  0xff   : > { %v1116_v27 = vor.u32 %v1115_v25, %v1112_v23 }
 0x100   : > { %v1977_v34 = vsel %vm1964_vm8, %v1974_v57, %v1976_v31  ;;  %v1979_v10 = vsel %vm1964_vm8, %v1976_v31, %v1978_v13 }
 0x101   : > { %v1117_v0 = vsel %vm1046_vm3, %v1107_v21, %v1116_v27 }
 0x103   : > { %2819 = vmatmul.mubr.msk.bf16.gmra.mrb[8].mxu1 %vm357_vm4, %v874_v36  ;;  %v1131_v36 = vshll.u32 %v3658_v35, 16  ;;  %v1980_v35 = vrot.slane %v3777_v28, 3 }
 0x104   : > { %2822 = vmatprep.mubr.msk.bf16.mxu1 %vm3367_vm1, %v3366_v2 }
 0x105   : > { %2987 = vmatmul.mubr.msk.bf16.gmra.mrb[24].mxu0 %vm357_vm4, %v1786_v37  ;;  %v1126_v37 = vsel %vm1046_vm3, %v1116_v27, %v1125_v40  ;;  %v1133_v39 = vrot.slane %v1131_v36, 2  ;;  %v1981_v47 = vsel %vm1964_vm8, %v1978_v13, %v1980_v35 }
 0x106   : > { %2990 = vmatprep.mubr.msk.bf16.mxu0 %vm3367_vm1, %v3366_v2 }
 0x107   : > { %v1134_v46 = vor.u32 %v1133_v39, %v1130_v59 }
 0x109   : > { %v1135_v22 = vsel %vm1046_vm3, %v1125_v40, %v1134_v46 }
 0x10b   : > { %2823 = vmatmul.mubr.msk.bf16.gmra.mrb[12].mxu1 %vm357_vm4, %v876_v62  ;;  %v1983_v62 = vsel %vm1964_vm8, %v1980_v35, %v1982_v49 }
 0x10c   : > { %2826 = vmatprep.mubr.msk.bf16.mxu1 %vm3367_vm1, %v3366_v2 }
 0x10d   : > { %2991 = vmatmul.mubr.msk.bf16.gmra.mrb[28].mxu0 %vm357_vm4, %v1795_v16 }
 0x10e   : > { %2994 = vmatprep.mubr.msk.bf16.mxu0 %vm3367_vm1, %v3366_v2 }
 0x113   : > { %2827 = vmatmul.mubr.msk.bf16.gmra.mrb[16].mxu1 %vm357_vm4, %v878_v55 }
 0x114   : > { %2830 = vmatprep.mubr.msk.bf16.mxu1 %vm3367_vm1, %v3366_v2 }
 0x115   : > { %2995 = vmatmul.mubr.msk.bf16.gmra.mrb[32].mxu0 %vm357_vm4, %v1804_v58 }
 0x116   : > { %3000 = vmatprep.mubr.msk.bf16.mxu0 %vm3367_vm1, %v3366_v2 }
 0x11b   : > { %2831 = vmatmul.mubr.msk.bf16.gmra.mrb[20].mxu1 %vm357_vm4, %v880_v1 }
 0x11c   : > { %2834 = vmatprep.mubr.msk.bf16.mxu1 %vm3367_vm1, %v3366_v2 }
 0x11d   : > { %3001 = vmatmul.mubr.msk.bf16.vlgmr.msra.gmra.mrb[0].mxu0 %vm357_vm4, %v1967_v38 }
 0x11e   : > { %3004 = vmatprep.mubr.msk.bf16.mxu0 %vm3367_vm1, %v3366_v2 }
 0x123   : > { %2835 = vmatmul.mubr.msk.bf16.gmra.mrb[24].mxu1 %vm357_vm4, %v882_v15 }
 0x124   : > { %2838 = vmatprep.mubr.msk.bf16.mxu1 %vm3367_vm1, %v3366_v2 }
 0x125   : > { %3005 = vmatmul.mubr.msk.bf16.gmra.mrb[4].mxu0 %vm357_vm4, %v1969_v30 }
 0x126   : > { %3008 = vmatprep.mubr.msk.bf16.mxu0 %vm3367_vm1, %v3366_v2 }
 0x12b   : > { %2839 = vmatmul.mubr.msk.bf16.gmra.mrb[28].mxu1 %vm357_vm4, %v884_v48 }
 0x12c   : > { %2842 = vmatprep.mubr.msk.bf16.mxu1 %vm3367_vm1, %v3366_v2 }
 0x12d   : > { %3009 = vmatmul.mubr.msk.bf16.gmra.mrb[8].mxu0 %vm357_vm4, %v1971_v9 }
 0x12e   : > { %3012 = vmatprep.mubr.msk.bf16.mxu0 %vm3367_vm1, %v3366_v2 }
 0x133   : > { %2843 = vmatmul.mubr.msk.bf16.gmra.mrb[32].mxu1 %vm357_vm4, %v886_v19 }
 0x134   : > { %2868 = vmatprep.mubr.msk.bf16.mxu1 %vm3367_vm1, %v3366_v2 }
 0x135   : > { %3013 = vmatmul.mubr.msk.bf16.gmra.mrb[12].mxu0 %vm357_vm4, %v1973_v3 }
 0x136   : > { %3016 = vmatprep.mubr.msk.bf16.mxu0 %vm3367_vm1, %v3366_v2 }
 0x13b   : > { %2869 = vmatmul.mubr.msk.bf16.vlgmr.msra.gmra.mrb[20].mxu1 %vm357_vm4, %v1108_v41 }
 0x13c   : > { %2872 = vmatprep.mubr.msk.bf16.mxu1 %vm3367_vm1, %v3366_v2 }
 0x13d   : > { %3017 = vmatmul.mubr.msk.bf16.gmra.mrb[16].mxu0 %vm357_vm4, %v1975_v7 }
 0x13e   : > { %3020 = vmatprep.mubr.msk.bf16.mxu0 %vm3367_vm1, %v3366_v2 }
 0x143   : > { %2873 = vmatmul.mubr.msk.bf16.gmra.mrb[24].mxu1 %vm357_vm4, %v1117_v0 }
 0x144   : > { %2876 = vmatprep.mubr.msk.bf16.mxu1 %vm3367_vm1, %v3366_v2  ;;  %v2176_v30 = vpop.permute.xlu0 %2175 }
 0x145   : > { %3021 = vmatmul.mubr.msk.bf16.gmra.mrb[20].mxu0 %vm357_vm4, %v1977_v34 }
 0x146   : > { %3024 = vmatprep.mubr.msk.bf16.mxu0 %vm3367_vm1, %v3366_v2  ;;  %v2186_v20 = vpop.permute.xlu1 %2185 }
 0x148   : > { %v2181_v9 = vpop.permute.xlu0 %2180 }
 0x14a   : > { %v2191_v0 = vpop.permute.xlu1 %2190 }
 0x14b   : > { %2877 = vmatmul.mubr.msk.bf16.gmra.mrb[28].mxu1 %vm357_vm4, %v1126_v37 }
 0x14c   : > { %2880 = vmatprep.mubr.msk.bf16.mxu1 %vm3367_vm1, %v3366_v2 }
 0x14d   : > { %3025 = vmatmul.mubr.msk.bf16.gmra.mrb[24].mxu0 %vm357_vm4, %v1979_v10 }
 0x14e   : > { %3028 = vmatprep.mubr.msk.bf16.mxu0 %vm3367_vm1, %v3366_v2 }
 0x153   : > { %2881 = vmatmul.mubr.msk.bf16.gmra.mrb[32].mxu1 %vm357_vm4, %v1135_v22  ;;  %v2196_v22 = vpop.permute.xlu0 %2195 }
 0x155   : > { %3029 = vmatmul.mubr.msk.bf16.gmra.mrb[28].mxu0 %vm357_vm4, %v1981_v47 }
 0x156   : > { %3032 = vmatprep.mubr.msk.bf16.mxu0 %vm3367_vm1, %v3366_v2 }
 0x15d   : > { %3033 = vmatmul.mubr.msk.bf16.gmra.mrb[32].mxu0 %vm357_vm4, %v1983_v62 }
 0x1c6   : > { %v951_v16 = vpop.f32.mrb[0].mxu1 }
 0x1c7   : > { %v2812_v50 = vpop.f32.mrb[1].mxu1 }
 0x1c8   : > { %v954_v28 = vpop.f32.mrb[2].mxu1 }
 0x1c9   : > { %v2813_v51 = vpop.f32.mrb[3].mxu1 }
 0x1ce   : > { %v959_v56 = vpop.f32.mrb[4].mxu1 }
 0x1cf   : > { %v2816_v54 = vpop.f32.mrb[5].mxu1 }
 0x1d0   : > { %v962_v55 = vpop.f32.mrb[6].mxu1 }
 0x1d1   : > { %v2817_v42 = vpop.f32.mrb[7].mxu1 }
 0x1d6   : > { %v967_v58 = vpop.f32.mrb[8].mxu1 }
 0x1d7   : > { %v2820_v60 = vpop.f32.mrb[9].mxu1 }
 0x1d8   : > { %v970_v11 = vpop.f32.mrb[10].mxu1 }
 0x1d9   : > { %v2821_v61 = vpop.f32.mrb[11].mxu1 }
 0x1de   : > { %v4056_v2 = vpop.f32.mrb[12].mxu1 }
 0x1df   : > { %v2824_v44 = vpop.f32.mrb[13].mxu1 }
 0x1e0   : > { %v4058_v63 = vpop.f32.mrb[14].mxu1 }
 0x1e1   : > { %v2825_v1 = vpop.f32.mrb[15].mxu1 }
 0x1e6   : > { %v4060_v38 = vpop.f32.mrb[16].mxu1 }
 0x1e7   : > { %v2828_v14 = vpop.f32.mrb[17].mxu1 }
 0x1e8   : > { %v4062_v43 = vpop.f32.mrb[18].mxu1 }
 0x1e9   : > { %v2829_v15 = vpop.f32.mrb[19].mxu1 }
 0x1f0   : > { %v2048_v4 = vpop.f32.mrb[0].mxu0 }
 0x1f1   : > { %v3038_v6 = vadd.f32 %v2048_v4, %v951_v16  ;;  %v3002_v48 = vpop.f32.mrb[1].mxu0 }
 0x1f2   : > { %v2051_v5 = vpop.f32.mrb[2].mxu0 }
 0x1f3   : > { %2137 = vst.msk [vmem:[%s4068_s5] sm:$0xff] %vm357_vm4, %v3038_v6  ;;  %v2263_v12 = vmul.f32 %v3038_v6, %v2176_v30  ;;  %v3039_v8 = vadd.f32 %v2051_v5, %v954_v28  ;;  %v3003_v18 = vpop.f32.mrb[3].mxu0  ;;  %v2201_v28 = vpop.permute.xlu1 %2200 }
 0x1f4   : > { %v2206_v30 = vpop.permute.xlu0 %2205 }
 0x1f5   : > { %v2324_v53 = vmul.f32 %v3038_v6, %v2263_v12  ;;  %2138 = vst.msk [vmem:[%s4068_s5 + $0x8] sm:$0xff] %vm357_vm4, %v3039_v8  ;;  %v2264_v19 = vmul.f32 %v3039_v8, %v2181_v9  ;;  %v2281_v26 = vsel %vm357_vm4, %v2263_v12, 0.0 }
 0x1f7   : > { %v2282_v3 = vsel %vm357_vm4, %v2264_v19, 0.0  ;;  %v2325_v21 = vmul.f32 %v3039_v8, %v2264_v19  ;;  %v2342_v57 = vsel %vm357_vm4, %v2324_v53, 0.0  ;;  %v2211_v12 = vpop.permute.xlu1 %2210 }
 0x1f8   : > { %v2283_v24 = vadd.f32 %v2282_v3, %v2281_v26  ;;  %v2056_v17 = vpop.f32.mrb[4].mxu0 }
 0x1f9   : > { %v2343_v41 = vsel %vm357_vm4, %v2325_v21, 0.0  ;;  %v3040_v23 = vadd.f32 %v2056_v17, %v959_v56  ;;  %v3006_v25 = vpop.f32.mrb[5].mxu0 }
 0x1fa   : > { %v2344_v7 = vadd.f32 %v2343_v41, %v2342_v57  ;;  %v2059_v27 = vpop.f32.mrb[6].mxu0 }
 0x1fb   : > { %2139 = vst.msk [vmem:[%s4068_s5 + $0x10] sm:$0xff] %vm357_vm4, %v3040_v23  ;;  %v2265_v45 = vmul.f32 %v3040_v23, %v2186_v20  ;;  %v3041_v29 = vadd.f32 %v2059_v27, %v962_v55  ;;  %v3007_v31 = vpop.f32.mrb[7].mxu0  ;;  %v2216_v27 = vpop.permute.xlu0 %2215 }
 0x1fd   : > { %v2284_v33 = vsel %vm357_vm4, %v2265_v45, 0.0  ;;  %v2326_v52 = vmul.f32 %v3040_v23, %v2265_v45  ;;  %2140 = vst.msk [vmem:[%s4068_s5 + $0x18] sm:$0xff] %vm357_vm4, %v3041_v29  ;;  %v2266_v34 = vmul.f32 %v3041_v29, %v2191_v0 }
 0x1fe   : > { %v2285_v40 = vadd.f32 %v2284_v33, %v2283_v24 }
 0x1ff   : > { %v2345_v32 = vsel %vm357_vm4, %v2326_v52, 0.0  ;;  %v2286_v36 = vsel %vm357_vm4, %v2266_v34, 0.0  ;;  %v2327_v13 = vmul.f32 %v3041_v29, %v2266_v34  ;;  %v2221_v52 = vpop.permute.xlu1 %2220 }
 0x200   : > { %v2346_v37 = vadd.f32 %v2345_v32, %v2344_v7  ;;  %v2287_v59 = vadd.f32 %v2286_v36, %v2285_v40  ;;  %v2064_v39 = vpop.f32.mrb[8].mxu0 }
 0x201   : > { %v2347_v10 = vsel %vm357_vm4, %v2327_v13, 0.0  ;;  %v3042_v46 = vadd.f32 %v2064_v39, %v967_v58  ;;  %v3010_v35 = vpop.f32.mrb[9].mxu0 }
 0x202   : > { %v2348_v47 = vadd.f32 %v2347_v10, %v2346_v37  ;;  %v2067_v49 = vpop.f32.mrb[10].mxu0 }
 0x203   : > { %2141 = vst.msk [vmem:[%s4068_s5 + $0x20] sm:$0xff] %vm357_vm4, %v3042_v46  ;;  %v2267_v62 = vmul.f32 %v3042_v46, %v2196_v22  ;;  %v3043_v16 = vadd.f32 %v2067_v49, %v970_v11  ;;  %v3011_v50 = vpop.f32.mrb[11].mxu0 }
 0x205   : > { %v2288_v51 = vsel %vm357_vm4, %v2267_v62, 0.0  ;;  %v2328_v56 = vmul.f32 %v3042_v46, %v2267_v62  ;;  %2142 = vst.msk [vmem:[%s4068_s5 + $0x28] sm:$0xff] %vm357_vm4, %v3043_v16  ;;  %v2268_v54 = vmul.f32 %v3043_v16, %v2201_v28 }
 0x206   : > { %v2289_v55 = vadd.f32 %v2288_v51, %v2287_v59 }
 0x207   : > { %v2349_v42 = vsel %vm357_vm4, %v2328_v56, 0.0  ;;  %v2290_v58 = vsel %vm357_vm4, %v2268_v54, 0.0  ;;  %v2329_v60 = vmul.f32 %v3043_v16, %v2268_v54  ;;  %v2226_v16 = vpop.permute.xlu0 %2225 }
 0x208   : > { %v2350_v61 = vadd.f32 %v2349_v42, %v2348_v47  ;;  %v2291_v44 = vadd.f32 %v2290_v58, %v2289_v55  ;;  %v2072_v1 = vpop.f32.mrb[12].mxu0  ;;  %v2231_v55 = vpop.permute.xlu1 %2230 }
 0x209   : > { %v2351_v11 = vsel %vm357_vm4, %v2329_v60, 0.0  ;;  %v3044_v14 = vadd.f32 %v2072_v1, %v4056_v2  ;;  %v3014_v15 = vpop.f32.mrb[13].mxu0 }
 0x20a   : > { %v2352_v4 = vadd.f32 %v2351_v11, %v2350_v61  ;;  %v2075_v6 = vpop.f32.mrb[14].mxu0 }
 0x20b   : > { %2143 = vst.msk [vmem:[%s4068_s5 + $0x30] sm:$0xff] %vm357_vm4, %v3044_v14  ;;  %v2269_v48 = vmul.f32 %v3044_v14, %v2206_v30  ;;  %v3045_v5 = vadd.f32 %v2075_v6, %v4058_v63  ;;  %v3015_v9 = vpop.f32.mrb[15].mxu0 }
 0x20d   : > { %v2292_v8 = vsel %vm357_vm4, %v2269_v48, 0.0  ;;  %v2330_v18 = vmul.f32 %v3044_v14, %v2269_v48  ;;  %2144 = vst.msk [vmem:[%s4068_s5 + $0x38] sm:$0xff] %vm357_vm4, %v3045_v5  ;;  %v2270_v53 = vmul.f32 %v3045_v5, %v2211_v12 }
 0x20e   : > { %v1240_v19 = vpop.f32.mrb[20].mxu1  ;;  %v2293_v20 = vadd.f32 %v2292_v8, %v2291_v44 }
 0x20f   : > { %v2870_v2 = vpop.f32.mrb[21].mxu1  ;;  %v2353_v26 = vsel %vm357_vm4, %v2330_v18, 0.0  ;;  %v2294_v3 = vsel %vm357_vm4, %v2270_v53, 0.0  ;;  %v2331_v21 = vmul.f32 %v3045_v5, %v2270_v53  ;;  %v2236_v18 = vpop.permute.xlu0 %2235 }
 0x210   : > { %v1243_v24 = vpop.f32.mrb[22].mxu1  ;;  %v2354_v17 = vadd.f32 %v2353_v26, %v2352_v4  ;;  %v2295_v63 = vadd.f32 %v2294_v3, %v2293_v20  ;;  %v2080_v57 = vpop.f32.mrb[16].mxu0 }
 0x211   : > { %v2871_v41 = vpop.f32.mrb[23].mxu1  ;;  %v2355_v23 = vsel %vm357_vm4, %v2331_v21, 0.0  ;;  %v3046_v25 = vadd.f32 %v2080_v57, %v4060_v38  ;;  %v3018_v7 = vpop.f32.mrb[17].mxu0 }
 0x212   : > { %v2356_v45 = vadd.f32 %v2355_v23, %v2354_v17  ;;  %v2083_v29 = vpop.f32.mrb[18].mxu0  ;;  %v2241_v3 = vpop.permute.xlu1 %2240 }
 0x213   : > { %2145 = vst.msk [vmem:[%s4068_s5 + $0x40] sm:$0xff] %vm357_vm4, %v3046_v25  ;;  %v2271_v31 = vmul.f32 %v3046_v25, %v2216_v27  ;;  %v3047_v0 = vadd.f32 %v2083_v29, %v4062_v43  ;;  %v3019_v33 = vpop.f32.mrb[19].mxu0 }
 0x215   : > { %v2296_v34 = vsel %vm357_vm4, %v2271_v31, 0.0  ;;  %v2332_v40 = vmul.f32 %v3046_v25, %v2271_v31  ;;  %2146 = vst.msk [vmem:[%s4068_s5 + $0x48] sm:$0xff] %vm357_vm4, %v3047_v0  ;;  %v2272_v32 = vmul.f32 %v3047_v0, %v2221_v52 }
 0x216   : > { %v1248_v36 = vpop.f32.mrb[24].mxu1  ;;  %v2297_v13 = vadd.f32 %v2296_v34, %v2295_v63 }
 0x217   : > { %v2874_v38 = vpop.f32.mrb[25].mxu1  ;;  %v2357_v37 = vsel %vm357_vm4, %v2332_v40, 0.0  ;;  %v2298_v59 = vsel %vm357_vm4, %v2272_v32, 0.0  ;;  %v2333_v39 = vmul.f32 %v3047_v0, %v2272_v32  ;;  %v2246_v40 = vpop.permute.xlu0 %2245 }
 0x218   : > { %v1251_v10 = vpop.f32.mrb[26].mxu1  ;;  %v2358_v46 = vadd.f32 %v2357_v37, %v2356_v45  ;;  %v2299_v43 = vadd.f32 %v2298_v59, %v2297_v13  ;;  %v2088_v35 = vpop.f32.mrb[20].mxu0 }
 0x219   : > { %v2875_v22 = vpop.f32.mrb[27].mxu1  ;;  %v2359_v47 = vsel %vm357_vm4, %v2333_v39, 0.0  ;;  %v3048_v49 = vadd.f32 %v2088_v35, %v1240_v19  ;;  %v3022_v62 = vpop.f32.mrb[21].mxu0 }
 0x21a   : > { %v2360_v50 = vadd.f32 %v2359_v47, %v2358_v46  ;;  %v2091_v28 = vpop.f32.mrb[22].mxu0  ;;  %v2251_v59 = vpop.permute.xlu1 %2250 }
 0x21b   : > { %2147 = vst.msk [vmem:[%s4068_s5 + $0x50] sm:$0xff] %vm357_vm4, %v3048_v49  ;;  %v2273_v51 = vmul.f32 %v3048_v49, %v2226_v16  ;;  %v3049_v56 = vadd.f32 %v2091_v28, %v1243_v24  ;;  %v3023_v54 = vpop.f32.mrb[23].mxu0 }
 0x21d   : > { %v2300_v42 = vsel %vm357_vm4, %v2273_v51, 0.0  ;;  %v2334_v58 = vmul.f32 %v3048_v49, %v2273_v51  ;;  %2148 = vst.msk [vmem:[%s4068_s5 + $0x58] sm:$0xff] %vm357_vm4, %v3049_v56  ;;  %v2274_v60 = vmul.f32 %v3049_v56, %v2231_v55 }
 0x21e   : > { %v1256_v61 = vpop.f32.mrb[28].mxu1  ;;  %v2301_v44 = vadd.f32 %v2300_v42, %v2299_v43 }
 0x21f   : > { %v2878_v1 = vpop.f32.mrb[29].mxu1  ;;  %v2361_v11 = vsel %vm357_vm4, %v2334_v58, 0.0  ;;  %v2302_v14 = vsel %vm357_vm4, %v2274_v60, 0.0  ;;  %v2335_v15 = vmul.f32 %v3049_v56, %v2274_v60  ;;  %v2256_v56 = vpop.permute.xlu0 %2255 }
 0x220   : > { %v1259_v30 = vpop.f32.mrb[30].mxu1  ;;  %v2362_v4 = vadd.f32 %v2361_v11, %v2360_v50  ;;  %v2303_v6 = vadd.f32 %v2302_v14, %v2301_v44  ;;  %v2096_v48 = vpop.f32.mrb[24].mxu0 }
 0x221   : > { %v2879_v5 = vpop.f32.mrb[31].mxu1  ;;  %v2363_v9 = vsel %vm357_vm4, %v2335_v15, 0.0  ;;  %v3050_v12 = vadd.f32 %v2096_v48, %v1248_v36  ;;  %v3026_v8 = vpop.f32.mrb[25].mxu0 }
 0x222   : > { %v2364_v53 = vadd.f32 %v2363_v9, %v2362_v4  ;;  %v2099_v19 = vpop.f32.mrb[26].mxu0 }
 0x223   : > { %2149 = vst.msk [vmem:[%s4068_s5 + $0x60] sm:$0xff] %vm357_vm4, %v3050_v12  ;;  %v2275_v20 = vmul.f32 %v3050_v12, %v2236_v18  ;;  %v3051_v2 = vadd.f32 %v2099_v19, %v1251_v10  ;;  %v3027_v26 = vpop.f32.mrb[27].mxu0 }
 0x225   : > { %v2304_v21 = vsel %vm357_vm4, %v2275_v20, 0.0  ;;  %v2336_v24 = vmul.f32 %v3050_v12, %v2275_v20  ;;  %2150 = vst.msk [vmem:[%s4068_s5 + $0x68] sm:$0xff] %vm357_vm4, %v3051_v2  ;;  %v2276_v17 = vmul.f32 %v3051_v2, %v2241_v3 }
 0x226   : > { %v1264_v63 = vpop.f32.mrb[32].mxu1  ;;  %v2305_v57 = vadd.f32 %v2304_v21, %v2303_v6 }
 0x227   : > { %v2882_v41 = vpop.f32.mrb[33].mxu1  ;;  %v2365_v23 = vsel %vm357_vm4, %v2336_v24, 0.0  ;;  %v2306_v25 = vsel %vm357_vm4, %v2276_v17, 0.0  ;;  %v2337_v7 = vmul.f32 %v3051_v2, %v2276_v17 }
 0x228   : > { %v1267_v27 = vpop.f32.mrb[34].mxu1  ;;  %v2366_v45 = vadd.f32 %v2365_v23, %v2364_v53  ;;  %v2307_v29 = vadd.f32 %v2306_v25, %v2305_v57  ;;  %v2104_v31 = vpop.f32.mrb[28].mxu0 }
 0x229   : > { %v2883_v0 = vpop.f32.mrb[35].mxu1  ;;  %v2367_v33 = vsel %vm357_vm4, %v2337_v7, 0.0  ;;  %v3052_v52 = vadd.f32 %v2104_v31, %v1256_v61  ;;  %v3030_v34 = vpop.f32.mrb[29].mxu0 }
 0x22a   : > { %v2368_v32 = vadd.f32 %v2367_v33, %v2366_v45  ;;  %v2107_v36 = vpop.f32.mrb[30].mxu0  ;;  %v2261_v61 = vpop.permute.xlu1 %2260 }
 0x22b   : > { %2151 = vst.msk [vmem:[%s4068_s5 + $0x70] sm:$0xff] %vm357_vm4, %v3052_v52  ;;  %v2277_v13 = vmul.f32 %v3052_v52, %v2246_v40  ;;  %v3053_v38 = vadd.f32 %v2107_v36, %v1259_v30  ;;  %v3031_v37 = vpop.f32.mrb[31].mxu0 }
 0x22d   : > { %v2308_v39 = vsel %vm357_vm4, %v2277_v13, 0.0  ;;  %v2338_v10 = vmul.f32 %v3052_v52, %v2277_v13  ;;  %2152 = vst.msk [vmem:[%s4068_s5 + $0x78] sm:$0xff] %vm357_vm4, %v3053_v38  ;;  %v2278_v46 = vmul.f32 %v3053_v38, %v2251_v59 }
 0x22e   : > { %v2309_v43 = vadd.f32 %v2308_v39, %v2307_v29 }
 0x22f   : > { %v2369_v35 = vsel %vm357_vm4, %v2338_v10, 0.0  ;;  %v2310_v22 = vsel %vm357_vm4, %v2278_v46, 0.0  ;;  %v2339_v47 = vmul.f32 %v3053_v38, %v2278_v46 }
 0x230   : > { %v2370_v49 = vadd.f32 %v2369_v35, %v2368_v32  ;;  %v2311_v62 = vadd.f32 %v2310_v22, %v2309_v43  ;;  %v2112_v16 = vpop.f32.mrb[32].mxu0 }
 0x231   : > { %v2371_v50 = vsel %vm357_vm4, %v2339_v47, 0.0  ;;  %v3054_v28 = vadd.f32 %v2112_v16, %v1264_v63  ;;  %v3034_v51 = vpop.f32.mrb[33].mxu0 }
 0x232   : > { %v2372_v54 = vadd.f32 %v2371_v50, %v2370_v49  ;;  %v2115_v55 = vpop.f32.mrb[34].mxu0 }
 0x233   : > { %2153 = vst.msk [vmem:[%s4068_s5 + $0x80] sm:$0xff] %vm357_vm4, %v3054_v28  ;;  %v2279_v42 = vmul.f32 %v3054_v28, %v2256_v56  ;;  %v3055_v58 = vadd.f32 %v2115_v55, %v1267_v27  ;;  %v3035_v60 = vpop.f32.mrb[35].mxu0 }
 0x235   : > { %v2312_v44 = vsel %vm357_vm4, %v2279_v42, 0.0  ;;  %v2340_v1 = vmul.f32 %v3054_v28, %v2279_v42  ;;  %2154 = vst.msk [vmem:[%s4068_s5 + $0x88] sm:$0xff] %vm357_vm4, %v3055_v58  ;;  %v2280_v11 = vmul.f32 %v3055_v58, %v2261_v61 }
 0x236   : > { %v2313_v14 = vadd.f32 %v2312_v44, %v2311_v62 }
 0x237   : > { %v2373_v15 = vsel %vm357_vm4, %v2340_v1, 0.0  ;;  %v2314_v30 = vsel %vm357_vm4, %v2280_v11, 0.0  ;;  %v2341_v4 = vmul.f32 %v3055_v58, %v2280_v11 }
 0x238   : > { %v2374_v6 = vadd.f32 %v2373_v15, %v2372_v54  ;;  %v2315_v48 = vadd.f32 %v2314_v30, %v2313_v14 }
 0x239   : > { %v2375_v5 = vsel %vm357_vm4, %v2341_v4, 0.0 }
 0x23a   : > { %v2316_v9 = vrot.slane %v2315_v48, 4  ;;  %v2376_v12 = vadd.f32 %v2375_v5, %v2374_v6 }
 0x23c   : > { %v2317_v8 = vadd.f32 %v2316_v9, %v2315_v48  ;;  %v2377_v18 = vrot.slane %v2376_v12, 4 }
 0x23e   : > { %v2318_v53 = vrot.slane %v2317_v8, 2  ;;  %v2378_v19 = vadd.f32 %v2377_v18, %v2376_v12 }
 0x240   : > { %v2319_v20 = vadd.f32 %v2318_v53, %v2317_v8  ;;  %v2379_v2 = vrot.slane %v2378_v19, 2 }
 0x242   : > { %v2320_v26 = vrot.slane %v2319_v20, 1  ;;  %v2380_v3 = vadd.f32 %v2379_v2, %v2378_v19 }
 0x244   : > { %v2321_v21 = vadd.f32 %v2320_v26, %v2319_v20  ;;  %v2381_v24 = vrot.slane %v2380_v3, 1 }
 0x246   : > { %2323 = vst.msk [vmem:[%s208_s9] sm:$0x1] %vm2322_vm9, %v2321_v21  ;;  %v2382_v17 = vadd.f32 %v2381_v24, %v2380_v3 }
 0x248   : > { %2383 = vst.msk [vmem:[%s208_s9 + $0x1] sm:$0x1] %vm2322_vm9, %v2382_v17 }
 0x249 PF: > { %s15_s15 = sadd.s32 1, %s3364_s15  }
 0x24a   : > { %p12_p4 = scmp.ge.s32.totalorder %s15_s15, 6  }
 0x24c   :  { %14 = sbr.rel (!%p12_p4) target bundleno = 1 (0x1), region = 82 }

</bundles_post_ra>
